<compile_context>
chip_gen: v5e
topology: v5e:2x2
jax: 0.10.0
libtpu: 0.0.40
codegen_flags: <defaults>
</compile_context>

<pallas_src>
import functools

import jax
import jax.numpy as jnp
import numpy as np
from jax import lax
from jax.experimental import pallas as pl
from jax.experimental.pallas import tpu as pltpu


def _round_up(x, m):
    return (x + m - 1) // m * m


# ----------------------------------------------------------------------------
# Fused ASPP kernel: one (image, row-band) tile per grid step
# ----------------------------------------------------------------------------

def _aspp_fused_kernel(x_hbm, w0_ref, wdil_ref, wproj_ref, bshift_ref,
                       pool_ref, pshift_ref, o_ref, xband, copy_sem,
                       *, row_tile, width, rates, halo, wpad):
    # x_hbm    : (N, H, W, Cin) bf16, unpadded, raw HBM ref (pl.ANY)
    # w0_ref   : (Cin, Cout) bf16, BN scale folded in
    # wdil_ref : (n_rates, 9, Cin, Cout) bf16, BN scale folded in
    # wproj_ref: ((1+n_rates)*Cout, Cout) bf16, projection rows for conv
    #            branches, projection BN scale folded in
    # bshift_ref: (1+n_rates, Cout) f32   per-branch folded BN shift
    # pool_ref : (1, 1, Cout) f32         per-image pooling rank-1 term
    # pshift_ref: (1, Cout) f32           projection folded BN shift
    # o_ref    : (1, row_tile, W, Cout) bf16 output tile
    # xband    : VMEM (2, row_tile+2*halo, wpad+W+wpad, Cin) bf16 double buffer
    # copy_sem : DMA semaphores (2 slots x {mid, top, bottom})
    n = pl.program_id(0)
    band = pl.program_id(1)
    nbands = pl.num_programs(1)
    th, wd, h = row_tile, width, halo
    cin = x_hbm.shape[-1]
    cout = o_ref.shape[-1]
    m = th * wd
    rows = th + 2 * h
    wp_total = wpad + wd + wpad

    # ---- banded manual DMA (double-buffered, halo zero-filled in VMEM) ------
    def mid_copy(b, slot):
        return pltpu.make_async_copy(
            x_hbm.at[n, pl.ds(b * th, th)],
            xband.at[slot, pl.ds(h, th), pl.ds(wpad, wd)],
            copy_sem.at[slot, 0])

    def top_copy(b, slot):
        return pltpu.make_async_copy(
            x_hbm.at[n, pl.ds(b * th - h, h)],
            xband.at[slot, pl.ds(0, h), pl.ds(wpad, wd)],
            copy_sem.at[slot, 1])

    def bot_copy(b, slot):
        return pltpu.make_async_copy(
            x_hbm.at[n, pl.ds((b + 1) * th, h)],
            xband.at[slot, pl.ds(h + th, h), pl.ds(wpad, wd)],
            copy_sem.at[slot, 2])

    def fill_slot(b, slot):
        # Zero the halo regions the DMAs never write: the conv's zero padding
        # is realized in VMEM instead of a padded HBM copy.  W halos are always
        # zero; H halos only at the image's first/last band.
        zcol = jnp.zeros((rows, wpad, cin), xband.dtype)
        zrow = jnp.zeros((h, wp_total, cin), xband.dtype)
        xband[slot, :, 0:wpad, :] = zcol
        xband[slot, :, wpad + wd:, :] = zcol

        @pl.when(b == 0)
        def _():
            xband[slot, 0:h, :, :] = zrow

        @pl.when(b == nbands - 1)
        def _():
            xband[slot, h + th:, :, :] = zrow

        mid_copy(b, slot).start()

        @pl.when(b > 0)
        def _():
            top_copy(b, slot).start()

        @pl.when(b < nbands - 1)
        def _():
            bot_copy(b, slot).start()

    def wait_slot(b, slot):
        # Waits mirror the starts exactly (same conditions, shapes, semaphores).
        mid_copy(b, slot).wait()

        @pl.when(b > 0)
        def _():
            top_copy(b, slot).wait()

        @pl.when(b < nbands - 1)
        def _():
            bot_copy(b, slot).wait()

    slot = band % 2

    @pl.when(band == 0)            # cold start: first band of this image
    def _():
        fill_slot(band, slot)

    wait_slot(band, slot)          # band `band` was prefetched (or cold-started)

    @pl.when(band + 1 < nbands)    # prefetch the next band while computing
    def _():
        fill_slot(band + 1, 1 - slot)

    # ---- compute -------------------------------------------------------------
    def tap(dy, dx):
        return xband[slot, h + dy:h + dy + th,
                     wpad + dx:wpad + dx + wd, :].reshape(m, cin)

    # branch 0: 1x1 conv (BN scale folded into weight) + shift + ReLU.
    y = jnp.dot(tap(0, 0), w0_ref[...], preferred_element_type=jnp.float32)
    y = jnp.maximum(y + bshift_ref[0:1, :], 0.0)
    # Branch activations go to bf16 before the projection matmul (perf
    # tradeoff vs. projecting f32; covered by the test tolerance).
    acc = jnp.dot(y.astype(jnp.bfloat16), wproj_ref[0:cout, :],
                  preferred_element_type=jnp.float32)

    # dilated 3x3 branches: 9 per-tap K=Cin dots accumulated in f32 (no im2col
    # slab -> lowest VMEM ld/st; on v6e/v7x switch back to a single K=9*Cin
    # matmul only if a bundle dump shows the MXU push slot binds).
    for ri, r in enumerate(rates):
        yb = jnp.zeros((m, cout), jnp.float32)
        for ky in range(3):
            for kx in range(3):
                yb = yb + jnp.dot(tap((ky - 1) * r, (kx - 1) * r),
                                  wdil_ref[ri, ky * 3 + kx],
                                  preferred_element_type=jnp.float32)
        yb = jnp.maximum(yb + bshift_ref[ri + 1:ri + 2, :], 0.0)
        acc = acc + jnp.dot(yb.astype(jnp.bfloat16),
                            wproj_ref[(ri + 1) * cout:(ri + 2) * cout, :],
                            preferred_element_type=jnp.float32)

    # pooling branch enters as a per-image rank-1 projection term.
    acc = acc + pool_ref[0]

    # projection shift + ReLU (scale folded into wproj; Dropout = identity).
    y = jnp.maximum(acc + pshift_ref[...], 0.0)
    o_ref[...] = y.reshape(1, th, wd, cout).astype(o_ref.dtype)


# ----------------------------------------------------------------------------
# Parameter folding shared by the kernel wrapper and the reference
# ----------------------------------------------------------------------------

def fold_params(params, rates):
    """Fold each branch's eval-mode BN scale into its conv weight (bf16),
    keep the additive shifts in f32."""
    cin, cout = params["w0"].shape
    nr = len(rates)
    bf = lambda a: a.astype(jnp.bfloat16)
    f = {}
    f["w0"] = bf(params["w0"] * params["s0"])
    f["wdil"] = jnp.stack([
        bf(params[f"w_r{i}"] * params[f"s_r{i}"]).reshape(9, cin, cout)
        for i in range(nr)])                                    # (nr, 9, Cin, Cout)
    f["w_pool"] = bf(params["w_pool"] * params["s_pool"])
    wproj_s = params["w_proj"] * params["s_proj"]               # proj BN scale folded
    f["w_proj_main"] = bf(wproj_s[:(1 + nr) * cout])
    f["w_proj_pool"] = bf(wproj_s[(1 + nr) * cout:])
    f["bshift"] = jnp.stack([params["b0"]] + [params[f"b_r{i}"] for i in range(nr)])
    f["b_proj"] = params["b_proj"].reshape(1, cout)
    return f


# ----------------------------------------------------------------------------
# Wrapper: pooling rank-1 precompute + pallas_call
# ----------------------------------------------------------------------------

def aspp_forward(x_nhwc, params, rates, *, row_tile=8):
    n, hgt, wd, cin = x_nhwc.shape
    cout = params["w0"].shape[1]
    nr = len(rates)
    halo = max(rates)
    assert hgt % row_tile == 0, "demo assumes row_tile divides H"
    assert row_tile >= halo, "interior bands need the top halo inside the previous band"
    assert cout % 128 == 0 and wd % 16 == 0, "demo assumes lane/sublane friendly W, Cout"
    # TODO(synk): pad/mask W and Cout in-kernel for production sizes (129x129, rates (6,12,18)).
    nbands = hgt // row_tile
    wpad = _round_up(halo, 16)         # bf16 sublane packing -> aligned DMA destination
    wp_total = wpad + wd + wpad

    folded = fold_params(params, rates)

    # Single bf16 cast of the input; the pooling mean reads the same rounded
    # values and fuses with the cast under jit.  No padded HBM copy is made,
    # so the input makes ~one HBM round trip before the kernel's banded reads.
    xbf = x_nhwc.astype(jnp.bfloat16)
    xm = jnp.mean(xbf.astype(jnp.float32), axis=(1, 2))                       # (N, Cin)
    yp = jnp.maximum(xm @ folded["w_pool"].astype(jnp.float32)
                     + params["b_pool"], 0.0)                                 # (N, Cout)
    pool_proj = (yp @ folded["w_proj_pool"].astype(jnp.float32)
                 ).reshape(n, 1, cout)                                        # (N,1,Cout)

    kern = functools.partial(_aspp_fused_kernel, row_tile=row_tile, width=wd,
                             rates=tuple(rates), halo=halo, wpad=wpad)
    # Grid-invariant weights/BN terms live whole in VMEM: one copy for the
    # entire call (no per-step double buffering) -- keeps the v7x 64 MiB VMEM
    # budget for the band double buffer.
    vmem_full = pl.BlockSpec(memory_space=pltpu.MemorySpace.VMEM)
    return pl.pallas_call(
        kern,
        grid=(n, nbands),
        in_specs=[
            pl.BlockSpec(memory_space=pl.ANY),       # unpadded bf16 x stays in HBM
            vmem_full,                               # w0   (scale-folded)
            vmem_full,                               # wdil (nr, 9, Cin, Cout)
            vmem_full,                               # w_proj rows for conv branches
            vmem_full,                               # per-branch BN shifts
            pl.BlockSpec((1, 1, cout), lambda i, b: (i, 0, 0)),  # pool rank-1 term
            vmem_full,                               # projection BN shift
        ],
        out_specs=pl.BlockSpec((1, row_tile, wd, cout), lambda i, b: (i, b, 0, 0)),
        out_shape=jax.ShapeDtypeStruct((n, hgt, wd, cout), jnp.bfloat16),
        scratch_shapes=[
            pltpu.VMEM((2, row_tile + 2 * halo, wp_total, cin), jnp.bfloat16),
            pltpu.SemaphoreType.DMA((2, 3)),
        ],
        compiler_params=pltpu.CompilerParams(
            # image axis feeds the v7x megacore; band axis is the in-order
            # streaming/prefetch axis (no-op on single-core v5e/v6e).
            dimension_semantics=("parallel", "arbitrary"),
            # 48 MiB fits every generation (v7x: 64 MiB physical); v5e/v6e can
            # raise this and use larger row_tile at production sizes.
            vmem_limit_bytes=48 * 1024 * 1024),
    )(xbf, folded["w0"], folded["wdil"], folded["w_proj_main"],
      folded["bshift"], pool_proj, folded["b_proj"])


# ----------------------------------------------------------------------------
# Pure-JAX reference (module semantics on the same bf16-rounded inputs/weights)
# ----------------------------------------------------------------------------

def ref_aspp(x_f32, params, rates):
    folded = fold_params(params, rates)
    cin, cout = params["w0"].shape
    hi = lax.Precision.HIGHEST
    f32 = lambda a: a.astype(jnp.float32)

    outs = [jnp.maximum(
        jnp.einsum("nhwi,io->nhwo", x_f32, f32(folded["w0"]), precision=hi)
        + params["b0"], 0.0)]
    for i, r in enumerate(rates):
        w = f32(folded["wdil"][i]).reshape(3, 3, cin, cout)
        y = lax.conv_general_dilated(
            x_f32, w, window_strides=(1, 1), padding=[(r, r), (r, r)],
            rhs_dilation=(r, r), dimension_numbers=("NHWC", "HWIO", "NHWC"),
            precision=hi)
        outs.append(jnp.maximum(y + params[f"b_r{i}"], 0.0))
    xm = jnp.mean(x_f32, axis=(1, 2))
    yp = jnp.maximum(xm @ f32(folded["w_pool"]) + params["b_pool"], 0.0)
    outs.append(jnp.broadcast_to(yp[:, None, None, :], outs[0].shape))
    cat = jnp.concatenate(outs, axis=-1)
    wproj = jnp.concatenate([f32(folded["w_proj_main"]),
                             f32(folded["w_proj_pool"])], axis=0)
    return jnp.maximum(
        jnp.einsum("nhwi,io->nhwo", cat, wproj, precision=hi)
        + params["b_proj"], 0.0)


# ----------------------------------------------------------------------------
# Deterministic parameter construction (eval-mode folded BN)
# ----------------------------------------------------------------------------

def fold_bn(gamma, beta, mean, var, eps=1e-5):
    scale = gamma / jnp.sqrt(var + eps)
    shift = beta - mean * scale
    return scale, shift


def make_bn(key, c):
    k1, k2, k3, k4 = jax.random.split(key, 4)
    gamma = jax.random.uniform(k1, (c,), jnp.float32, 0.5, 1.5)
    beta = 0.1 * jax.random.normal(k2, (c,), jnp.float32)
    mean = 0.1 * jax.random.normal(k3, (c,), jnp.float32)
    var = jax.random.uniform(k4, (c,), jnp.float32, 0.5, 1.5)
    return fold_bn(gamma, beta, mean, var)


def make_params(key, cin, cout, rates):
    n_branches = 1 + len(rates) + 1  # 1x1 + atrous + pooling
    keys = jax.random.split(key, 2 * n_branches + 2)
    params = {}
    ki = iter(keys)

    params["w0"] = jax.random.normal(next(ki), (cin, cout), jnp.float32) / np.sqrt(cin)
    params["s0"], params["b0"] = make_bn(next(ki), cout)

    for idx, _ in enumerate(rates):
        params[f"w_r{idx}"] = (jax.random.normal(next(ki), (3, 3, cin, cout), jnp.float32)
                               / np.sqrt(9 * cin))
        params[f"s_r{idx}"], params[f"b_r{idx}"] = make_bn(next(ki), cout)

    params["w_pool"] = jax.random.normal(next(ki), (cin, cout), jnp.float32) / np.sqrt(cin)
    params["s_pool"], params["b_pool"] = make_bn(next(ki), cout)

    ccat = n_branches * cout
    params["w_proj"] = jax.random.normal(next(ki), (ccat, cout), jnp.float32) / np.sqrt(ccat)
    params["s_proj"], params["b_proj"] = make_bn(next(ki), cout)
    return params


# ----------------------------------------------------------------------------
# Main
# ----------------------------------------------------------------------------

if __name__ == "__main__":
    N, Cin, H, W = 2, 128, 16, 16     # lane-friendly channels, small spatial demo
    Cout = 128                        # keeps the final store lane-dense
    rates = (2, 4)                    # production DeepLab uses (6, 12, 18) at larger H, W

    key = jax.random.PRNGKey(0)
    kx, kp = jax.random.split(key)

    # PyTorch-layout input (NCHW), transposed to NHWC for the TPU kernel.
    x_nchw = jax.random.normal(kx, (N, Cin, H, W), jnp.float32)
    x_nhwc = jnp.transpose(x_nchw, (0, 2, 3, 1))
    params = make_params(kp, Cin, Cout, rates)

    # row_tile=8 -> 2 bands per image: exercises the interior halo DMA, the
    # edge zero-fill paths and the double-buffered prefetch.  At production
    # sizes choose row_tile so row_tile*W ~ 512-1024 and halo <= ~25% of band.
    fwd = jax.jit(functools.partial(aspp_forward, rates=rates, row_tile=8))
    out = jax.block_until_ready(fwd(x_nhwc, params))

    # Reference consumes the same bf16-rounded input and the same scale-folded
    # bf16 weights, so only the kernel's internal rounding (f32 accumulation,
    # bf16 branch activations) contributes to the delta.
    x_rounded = x_nhwc.astype(jnp.bfloat16).astype(jnp.float32)
    ref = jax.block_until_ready(ref_aspp(x_rounded, params, rates))

    np.testing.assert_allclose(np.asarray(out.astype(jnp.float32)), np.asarray(ref),
                               rtol=2e-2, atol=2e-2)
    assert out.shape == (N, H, W, Cout)
    print("KERNEL_OK")
</pallas_src>

<mosaic_0001>
module attributes {stable_mosaic.version = 11 : i64} {
  func.func @_aspp_fused_kernel(%arg0: i32, %arg1: i32, %arg2: memref<2x16x16x128xbf16, #tpu.memory_space<any>>, %arg3: memref<128x128xbf16, #tpu.memory_space<vmem>>, %arg4: memref<2x9x128x128xbf16, #tpu.memory_space<vmem>>, %arg5: memref<384x128xbf16, #tpu.memory_space<vmem>>, %arg6: memref<3x128xf32, #tpu.memory_space<vmem>>, %arg7: memref<1x1x128xf32, #tpu.memory_space<vmem>>, %arg8: memref<1x128xf32, #tpu.memory_space<vmem>>, %arg9: memref<1x8x16x128xbf16, #tpu.memory_space<vmem>>, %arg10: memref<2x16x48x128xbf16, #tpu.memory_space<vmem>>, %arg11: memref<2x3x!tpu.dma_semaphore, #tpu.memory_space<semaphore_mem>>) attributes {dimension_semantics = [#tpu.dimension_semantics<parallel>, #tpu.dimension_semantics<arbitrary>], iteration_bounds = array<i64: 2, 2>, scalar_prefetch = 0 : i64, scratch_operands = 2 : i64, tpu.core_type = #tpu.core_type<tc>, window_params = [{}, {pipeline_mode = #tpu.pipeline_mode<synchronous>, transform_indices = @transform_1, window_bounds = array<i64: 128, 128>}, {pipeline_mode = #tpu.pipeline_mode<synchronous>, transform_indices = @transform_2, window_bounds = array<i64: 2, 9, 128, 128>}, {pipeline_mode = #tpu.pipeline_mode<synchronous>, transform_indices = @transform_3, window_bounds = array<i64: 384, 128>}, {pipeline_mode = #tpu.pipeline_mode<synchronous>, transform_indices = @transform_4, window_bounds = array<i64: 3, 128>}, {transform_indices = @transform_5, window_bounds = array<i64: 1, 1, 128>}, {pipeline_mode = #tpu.pipeline_mode<synchronous>, transform_indices = @transform_6, window_bounds = array<i64: 1, 128>}, {transform_indices = @transform_7, window_bounds = array<i64: 1, 8, 16, 128>}]} {
    %c2_i32 = arith.constant 2 : i32
    %c0_i32 = arith.constant 0 : i32
    %0 = arith.cmpi eq, %c2_i32, %c0_i32 : i32
    %c1_i32 = arith.constant 1 : i32
    %1 = arith.select %0, %c1_i32, %c2_i32 : i32
    %2 = arith.remsi %arg1, %1 : i32
    %c0_i32_0 = arith.constant 0 : i32
    %3 = arith.cmpi ne, %2, %c0_i32_0 : i32
    %c0_i32_1 = arith.constant 0 : i32
    %4 = arith.cmpi slt, %2, %c0_i32_1 : i32
    %c0_i32_2 = arith.constant 0 : i32
    %5 = arith.cmpi slt, %1, %c0_i32_2 : i32
    %6 = arith.xori %4, %5 : i1
    %7 = arith.andi %6, %3 : i1
    %8 = arith.addi %2, %1 : i32
    %9 = arith.select %7, %8, %2 : i32
    %c0_i32_3 = arith.constant 0 : i32
    %10 = arith.cmpi eq, %arg1, %c0_i32_3 : i32
    %11 = arith.extui %10 : i1 to i32
    %c0_i32_4 = arith.constant 0 : i32
    %12 = arith.cmpi ne, %11, %c0_i32_4 : i32
    scf.if %12 {
      %cst_179 = arith.constant 0.000000e+00 : bf16
      %220 = vector.broadcast %cst_179 : bf16 to vector<16x16x128xbf16>
      %cst_180 = arith.constant 0.000000e+00 : bf16
      %221 = vector.broadcast %cst_180 : bf16 to vector<4x48x128xbf16>
      %222 = arith.index_cast %9 : i32 to index
      %c0_181 = arith.constant 0 : index
      %c0_182 = arith.constant 0 : index
      %c0_183 = arith.constant 0 : index
      %223 = vector.load %arg10[%222, %c0_181, %c0_182, %c0_183] : memref<2x16x48x128xbf16, #tpu.memory_space<vmem>>, vector<1x16x16x128xbf16>
      %224 = vector.shape_cast %223 : vector<1x16x16x128xbf16> to vector<16x16x128xbf16>
      %225 = vector.shape_cast %220 : vector<16x16x128xbf16> to vector<1x16x16x128xbf16>
      tpu.vector_store %arg10[%222, %c0_181, %c0_182, %c0_183], %225 {strides = array<i32>} : memref<2x16x48x128xbf16, #tpu.memory_space<vmem>>, vector<1x16x16x128xbf16>,
      %226 = arith.index_cast %9 : i32 to index
      %c0_184 = arith.constant 0 : index
      %c32 = arith.constant 32 : index
      %c0_185 = arith.constant 0 : index
      %227 = vector.load %arg10[%226, %c0_184, %c32, %c0_185] : memref<2x16x48x128xbf16, #tpu.memory_space<vmem>>, vector<1x16x16x128xbf16>
      %228 = vector.shape_cast %227 : vector<1x16x16x128xbf16> to vector<16x16x128xbf16>
      %229 = vector.shape_cast %220 : vector<16x16x128xbf16> to vector<1x16x16x128xbf16>
      tpu.vector_store %arg10[%226, %c0_184, %c32, %c0_185], %229 {strides = array<i32>} : memref<2x16x48x128xbf16, #tpu.memory_space<vmem>>, vector<1x16x16x128xbf16>,
      %c0_i32_186 = arith.constant 0 : i32
      %230 = arith.cmpi eq, %arg1, %c0_i32_186 : i32
      %231 = arith.extui %230 : i1 to i32
      %c0_i32_187 = arith.constant 0 : i32
      %232 = arith.cmpi ne, %231, %c0_i32_187 : i32
      scf.if %232 {
        %249 = arith.index_cast %9 : i32 to index
        %c0_201 = arith.constant 0 : index
        %c0_202 = arith.constant 0 : index
        %c0_203 = arith.constant 0 : index
        %250 = vector.load %arg10[%249, %c0_201, %c0_202, %c0_203] : memref<2x16x48x128xbf16, #tpu.memory_space<vmem>>, vector<1x4x48x128xbf16>
        %251 = vector.shape_cast %250 : vector<1x4x48x128xbf16> to vector<4x48x128xbf16>
        %252 = vector.shape_cast %221 : vector<4x48x128xbf16> to vector<1x4x48x128xbf16>
        tpu.vector_store %arg10[%249, %c0_201, %c0_202, %c0_203], %252 {strides = array<i32>} : memref<2x16x48x128xbf16, #tpu.memory_space<vmem>>, vector<1x4x48x128xbf16>,
      } else {
      }
      %c1_i32_188 = arith.constant 1 : i32
      %233 = arith.cmpi eq, %arg1, %c1_i32_188 : i32
      %234 = arith.extui %233 : i1 to i32
      %c0_i32_189 = arith.constant 0 : i32
      %235 = arith.cmpi ne, %234, %c0_i32_189 : i32
      scf.if %235 {
        %249 = arith.index_cast %9 : i32 to index
        %c12_201 = arith.constant 12 : index
        %c0_202 = arith.constant 0 : index
        %c0_203 = arith.constant 0 : index
        %250 = vector.load %arg10[%249, %c12_201, %c0_202, %c0_203] : memref<2x16x48x128xbf16, #tpu.memory_space<vmem>>, vector<1x4x48x128xbf16>
        %251 = vector.shape_cast %250 : vector<1x4x48x128xbf16> to vector<4x48x128xbf16>
        %252 = vector.shape_cast %221 : vector<4x48x128xbf16> to vector<1x4x48x128xbf16>
        tpu.vector_store %arg10[%249, %c12_201, %c0_202, %c0_203], %252 {strides = array<i32>} : memref<2x16x48x128xbf16, #tpu.memory_space<vmem>>, vector<1x4x48x128xbf16>,
      } else {
      }
      %c8_i32_190 = arith.constant 8 : i32
      %236 = arith.muli %arg1, %c8_i32_190 : i32
      %c0_i32_191 = arith.constant 0 : i32
      %c0_i32_192 = arith.constant 0 : i32
      %c0_i32_193 = arith.constant 0 : i32
      %237 = tpu.memref_slice %arg2[%arg0, %236, %c0_i32_192, %c0_i32_193] : memref<2x16x16x128xbf16, #tpu.memory_space<any>> -> memref<1x8x16x128xbf16, #tpu.memory_space<any>>
      %238 = tpu.memref_squeeze %237 : memref<1x8x16x128xbf16, #tpu.memory_space<any>> -> memref<8x16x128xbf16, #tpu.memory_space<any>>
      %c4_i32_194 = arith.constant 4 : i32
      %c16_i32_195 = arith.constant 16 : i32
      %c0_i32_196 = arith.constant 0 : i32
      %239 = tpu.memref_slice %arg10[%9, %c4_i32_194, %c16_i32_195, %c0_i32_196] : memref<2x16x48x128xbf16, #tpu.memory_space<vmem>> -> memref<1x8x16x128xbf16, #tpu.memory_space<vmem>>
      %240 = tpu.memref_squeeze %239 : memref<1x8x16x128xbf16, #tpu.memory_space<vmem>> -> memref<8x16x128xbf16, #tpu.memory_space<vmem>>
      %241 = tpu.memref_slice %arg11[%9, %c0_i32_191] : memref<2x3x!tpu.dma_semaphore, #tpu.memory_space<semaphore_mem>> -> memref<1x1x!tpu.dma_semaphore, #tpu.memory_space<semaphore_mem>>
      %242 = tpu.memref_squeeze %241 : memref<1x1x!tpu.dma_semaphore, #tpu.memory_space<semaphore_mem>> -> memref<!tpu.dma_semaphore, #tpu.memory_space<semaphore_mem>>
      tpu.enqueue_dma source(%238 : memref<8x16x128xbf16, #tpu.memory_space<any>>) target(%240 : memref<8x16x128xbf16, #tpu.memory_space<vmem>>) target_semaphore(%242 : memref<!tpu.dma_semaphore, #tpu.memory_space<semaphore_mem>>)
      %c0_i32_197 = arith.constant 0 : i32
      %243 = arith.cmpi sgt, %arg1, %c0_i32_197 : i32
      %244 = arith.extui %243 : i1 to i32
      %c0_i32_198 = arith.constant 0 : i32
      %245 = arith.cmpi ne, %244, %c0_i32_198 : i32
      scf.if %245 {
        %c8_i32_201 = arith.constant 8 : i32
        %249 = arith.muli %arg1, %c8_i32_201 : i32
        %c4_i32_202 = arith.constant 4 : i32
        %250 = arith.subi %249, %c4_i32_202 : i32
        %c1_i32_203 = arith.constant 1 : i32
        %c0_i32_204 = arith.constant 0 : i32
        %c0_i32_205 = arith.constant 0 : i32
        %251 = tpu.memref_slice %arg2[%arg0, %250, %c0_i32_204, %c0_i32_205] : memref<2x16x16x128xbf16, #tpu.memory_space<any>> -> memref<1x4x16x128xbf16, #tpu.memory_space<any>>
        %252 = tpu.memref_squeeze %251 : memref<1x4x16x128xbf16, #tpu.memory_space<any>> -> memref<4x16x128xbf16, #tpu.memory_space<any>>
        %c0_i32_206 = arith.constant 0 : i32
        %c16_i32_207 = arith.constant 16 : i32
        %c0_i32_208 = arith.constant 0 : i32
        %253 = tpu.memref_slice %arg10[%9, %c0_i32_206, %c16_i32_207, %c0_i32_208] : memref<2x16x48x128xbf16, #tpu.memory_space<vmem>> -> memref<1x4x16x128xbf16, #tpu.memory_space<vmem>>
        %254 = tpu.memref_squeeze %253 : memref<1x4x16x128xbf16, #tpu.memory_space<vmem>> -> memref<4x16x128xbf16, #tpu.memory_space<vmem>>
        %255 = tpu.memref_slice %arg11[%9, %c1_i32_203] : memref<2x3x!tpu.dma_semaphore, #tpu.memory_space<semaphore_mem>> -> memref<1x1x!tpu.dma_semaphore, #tpu.memory_space<semaphore_mem>>
        %256 = tpu.memref_squeeze %255 : memref<1x1x!tpu.dma_semaphore, #tpu.memory_space<semaphore_mem>> -> memref<!tpu.dma_semaphore, #tpu.memory_space<semaphore_mem>>
        tpu.enqueue_dma source(%252 : memref<4x16x128xbf16, #tpu.memory_space<any>>) target(%254 : memref<4x16x128xbf16, #tpu.memory_space<vmem>>) target_semaphore(%256 : memref<!tpu.dma_semaphore, #tpu.memory_space<semaphore_mem>>)
      } else {
      }
      %c1_i32_199 = arith.constant 1 : i32
      %246 = arith.cmpi slt, %arg1, %c1_i32_199 : i32
      %247 = arith.extui %246 : i1 to i32
      %c0_i32_200 = arith.constant 0 : i32
      %248 = arith.cmpi ne, %247, %c0_i32_200 : i32
      scf.if %248 {
        %c1_i32_201 = arith.constant 1 : i32
        %249 = arith.addi %arg1, %c1_i32_201 : i32
        %c8_i32_202 = arith.constant 8 : i32
        %250 = arith.muli %249, %c8_i32_202 : i32
        %c2_i32_203 = arith.constant 2 : i32
        %c0_i32_204 = arith.constant 0 : i32
        %c0_i32_205 = arith.constant 0 : i32
        %251 = tpu.memref_slice %arg2[%arg0, %250, %c0_i32_204, %c0_i32_205] : memref<2x16x16x128xbf16, #tpu.memory_space<any>> -> memref<1x4x16x128xbf16, #tpu.memory_space<any>>
        %252 = tpu.memref_squeeze %251 : memref<1x4x16x128xbf16, #tpu.memory_space<any>> -> memref<4x16x128xbf16, #tpu.memory_space<any>>
        %c12_i32 = arith.constant 12 : i32
        %c16_i32_206 = arith.constant 16 : i32
        %c0_i32_207 = arith.constant 0 : i32
        %253 = tpu.memref_slice %arg10[%9, %c12_i32, %c16_i32_206, %c0_i32_207] : memref<2x16x48x128xbf16, #tpu.memory_space<vmem>> -> memref<1x4x16x128xbf16, #tpu.memory_space<vmem>>
        %254 = tpu.memref_squeeze %253 : memref<1x4x16x128xbf16, #tpu.memory_space<vmem>> -> memref<4x16x128xbf16, #tpu.memory_space<vmem>>
        %255 = tpu.memref_slice %arg11[%9, %c2_i32_203] : memref<2x3x!tpu.dma_semaphore, #tpu.memory_space<semaphore_mem>> -> memref<1x1x!tpu.dma_semaphore, #tpu.memory_space<semaphore_mem>>
        %256 = tpu.memref_squeeze %255 : memref<1x1x!tpu.dma_semaphore, #tpu.memory_space<semaphore_mem>> -> memref<!tpu.dma_semaphore, #tpu.memory_space<semaphore_mem>>
        tpu.enqueue_dma source(%252 : memref<4x16x128xbf16, #tpu.memory_space<any>>) target(%254 : memref<4x16x128xbf16, #tpu.memory_space<vmem>>) target_semaphore(%256 : memref<!tpu.dma_semaphore, #tpu.memory_space<semaphore_mem>>)
      } else {
      }
    } else {
    }
    %c8_i32 = arith.constant 8 : i32
    %13 = arith.muli %arg1, %c8_i32 : i32
    %c0_i32_5 = arith.constant 0 : i32
    %c0_i32_6 = arith.constant 0 : i32
    %c0_i32_7 = arith.constant 0 : i32
    %14 = tpu.memref_slice %arg2[%arg0, %13, %c0_i32_6, %c0_i32_7] : memref<2x16x16x128xbf16, #tpu.memory_space<any>> -> memref<1x8x16x128xbf16, #tpu.memory_space<any>>
    %15 = tpu.memref_squeeze %14 : memref<1x8x16x128xbf16, #tpu.memory_space<any>> -> memref<8x16x128xbf16, #tpu.memory_space<any>>
    %c4_i32 = arith.constant 4 : i32
    %c16_i32 = arith.constant 16 : i32
    %c0_i32_8 = arith.constant 0 : i32
    %16 = tpu.memref_slice %arg10[%9, %c4_i32, %c16_i32, %c0_i32_8] : memref<2x16x48x128xbf16, #tpu.memory_space<vmem>> -> memref<1x8x16x128xbf16, #tpu.memory_space<vmem>>
    %17 = tpu.memref_squeeze %16 : memref<1x8x16x128xbf16, #tpu.memory_space<vmem>> -> memref<8x16x128xbf16, #tpu.memory_space<vmem>>
    %18 = tpu.memref_slice %arg11[%9, %c0_i32_5] : memref<2x3x!tpu.dma_semaphore, #tpu.memory_space<semaphore_mem>> -> memref<1x1x!tpu.dma_semaphore, #tpu.memory_space<semaphore_mem>>
    %19 = tpu.memref_squeeze %18 : memref<1x1x!tpu.dma_semaphore, #tpu.memory_space<semaphore_mem>> -> memref<!tpu.dma_semaphore, #tpu.memory_space<semaphore_mem>>
    tpu.wait_dma2 semaphore(%19 : memref<!tpu.dma_semaphore, #tpu.memory_space<semaphore_mem>>) src(%15 : memref<8x16x128xbf16, #tpu.memory_space<any>>) dst(%17 : memref<8x16x128xbf16, #tpu.memory_space<vmem>>)
    %c0_i32_9 = arith.constant 0 : i32
    %20 = arith.cmpi sgt, %arg1, %c0_i32_9 : i32
    %21 = arith.extui %20 : i1 to i32
    %c0_i32_10 = arith.constant 0 : i32
    %22 = arith.cmpi ne, %21, %c0_i32_10 : i32
    scf.if %22 {
      %c8_i32_179 = arith.constant 8 : i32
      %220 = arith.muli %arg1, %c8_i32_179 : i32
      %c4_i32_180 = arith.constant 4 : i32
      %221 = arith.subi %220, %c4_i32_180 : i32
      %c1_i32_181 = arith.constant 1 : i32
      %c0_i32_182 = arith.constant 0 : i32
      %c0_i32_183 = arith.constant 0 : i32
      %222 = tpu.memref_slice %arg2[%arg0, %221, %c0_i32_182, %c0_i32_183] : memref<2x16x16x128xbf16, #tpu.memory_space<any>> -> memref<1x4x16x128xbf16, #tpu.memory_space<any>>
      %223 = tpu.memref_squeeze %222 : memref<1x4x16x128xbf16, #tpu.memory_space<any>> -> memref<4x16x128xbf16, #tpu.memory_space<any>>
      %c0_i32_184 = arith.constant 0 : i32
      %c16_i32_185 = arith.constant 16 : i32
      %c0_i32_186 = arith.constant 0 : i32
      %224 = tpu.memref_slice %arg10[%9, %c0_i32_184, %c16_i32_185, %c0_i32_186] : memref<2x16x48x128xbf16, #tpu.memory_space<vmem>> -> memref<1x4x16x128xbf16, #tpu.memory_space<vmem>>
      %225 = tpu.memref_squeeze %224 : memref<1x4x16x128xbf16, #tpu.memory_space<vmem>> -> memref<4x16x128xbf16, #tpu.memory_space<vmem>>
      %226 = tpu.memref_slice %arg11[%9, %c1_i32_181] : memref<2x3x!tpu.dma_semaphore, #tpu.memory_space<semaphore_mem>> -> memref<1x1x!tpu.dma_semaphore, #tpu.memory_space<semaphore_mem>>
      %227 = tpu.memref_squeeze %226 : memref<1x1x!tpu.dma_semaphore, #tpu.memory_space<semaphore_mem>> -> memref<!tpu.dma_semaphore, #tpu.memory_space<semaphore_mem>>
      tpu.wait_dma2 semaphore(%227 : memref<!tpu.dma_semaphore, #tpu.memory_space<semaphore_mem>>) src(%223 : memref<4x16x128xbf16, #tpu.memory_space<any>>) dst(%225 : memref<4x16x128xbf16, #tpu.memory_space<vmem>>)
    } else {
    }
    %c1_i32_11 = arith.constant 1 : i32
    %23 = arith.cmpi slt, %arg1, %c1_i32_11 : i32
    %24 = arith.extui %23 : i1 to i32
    %c0_i32_12 = arith.constant 0 : i32
    %25 = arith.cmpi ne, %24, %c0_i32_12 : i32
    scf.if %25 {
      %c1_i32_179 = arith.constant 1 : i32
      %220 = arith.addi %arg1, %c1_i32_179 : i32
      %c8_i32_180 = arith.constant 8 : i32
      %221 = arith.muli %220, %c8_i32_180 : i32
      %c2_i32_181 = arith.constant 2 : i32
      %c0_i32_182 = arith.constant 0 : i32
      %c0_i32_183 = arith.constant 0 : i32
      %222 = tpu.memref_slice %arg2[%arg0, %221, %c0_i32_182, %c0_i32_183] : memref<2x16x16x128xbf16, #tpu.memory_space<any>> -> memref<1x4x16x128xbf16, #tpu.memory_space<any>>
      %223 = tpu.memref_squeeze %222 : memref<1x4x16x128xbf16, #tpu.memory_space<any>> -> memref<4x16x128xbf16, #tpu.memory_space<any>>
      %c12_i32 = arith.constant 12 : i32
      %c16_i32_184 = arith.constant 16 : i32
      %c0_i32_185 = arith.constant 0 : i32
      %224 = tpu.memref_slice %arg10[%9, %c12_i32, %c16_i32_184, %c0_i32_185] : memref<2x16x48x128xbf16, #tpu.memory_space<vmem>> -> memref<1x4x16x128xbf16, #tpu.memory_space<vmem>>
      %225 = tpu.memref_squeeze %224 : memref<1x4x16x128xbf16, #tpu.memory_space<vmem>> -> memref<4x16x128xbf16, #tpu.memory_space<vmem>>
      %226 = tpu.memref_slice %arg11[%9, %c2_i32_181] : memref<2x3x!tpu.dma_semaphore, #tpu.memory_space<semaphore_mem>> -> memref<1x1x!tpu.dma_semaphore, #tpu.memory_space<semaphore_mem>>
      %227 = tpu.memref_squeeze %226 : memref<1x1x!tpu.dma_semaphore, #tpu.memory_space<semaphore_mem>> -> memref<!tpu.dma_semaphore, #tpu.memory_space<semaphore_mem>>
      tpu.wait_dma2 semaphore(%227 : memref<!tpu.dma_semaphore, #tpu.memory_space<semaphore_mem>>) src(%223 : memref<4x16x128xbf16, #tpu.memory_space<any>>) dst(%225 : memref<4x16x128xbf16, #tpu.memory_space<vmem>>)
    } else {
    }
    %c1_i32_13 = arith.constant 1 : i32
    %26 = arith.addi %arg1, %c1_i32_13 : i32
    %c2_i32_14 = arith.constant 2 : i32
    %27 = arith.cmpi slt, %26, %c2_i32_14 : i32
    %28 = arith.extui %27 : i1 to i32
    %c0_i32_15 = arith.constant 0 : i32
    %29 = arith.cmpi ne, %28, %c0_i32_15 : i32
    scf.if %29 {
      %c1_i32_179 = arith.constant 1 : i32
      %220 = arith.addi %arg1, %c1_i32_179 : i32
      %c1_i32_180 = arith.constant 1 : i32
      %221 = arith.subi %c1_i32_180, %9 : i32
      %cst_181 = arith.constant 0.000000e+00 : bf16
      %222 = vector.broadcast %cst_181 : bf16 to vector<16x16x128xbf16>
      %cst_182 = arith.constant 0.000000e+00 : bf16
      %223 = vector.broadcast %cst_182 : bf16 to vector<4x48x128xbf16>
      %224 = arith.index_cast %221 : i32 to index
      %c0_183 = arith.constant 0 : index
      %c0_184 = arith.constant 0 : index
      %c0_185 = arith.constant 0 : index
      %225 = vector.load %arg10[%224, %c0_183, %c0_184, %c0_185] : memref<2x16x48x128xbf16, #tpu.memory_space<vmem>>, vector<1x16x16x128xbf16>
      %226 = vector.shape_cast %225 : vector<1x16x16x128xbf16> to vector<16x16x128xbf16>
      %227 = vector.shape_cast %222 : vector<16x16x128xbf16> to vector<1x16x16x128xbf16>
      tpu.vector_store %arg10[%224, %c0_183, %c0_184, %c0_185], %227 {strides = array<i32>} : memref<2x16x48x128xbf16, #tpu.memory_space<vmem>>, vector<1x16x16x128xbf16>,
      %228 = arith.index_cast %221 : i32 to index
      %c0_186 = arith.constant 0 : index
      %c32 = arith.constant 32 : index
      %c0_187 = arith.constant 0 : index
      %229 = vector.load %arg10[%228, %c0_186, %c32, %c0_187] : memref<2x16x48x128xbf16, #tpu.memory_space<vmem>>, vector<1x16x16x128xbf16>
      %230 = vector.shape_cast %229 : vector<1x16x16x128xbf16> to vector<16x16x128xbf16>
      %231 = vector.shape_cast %222 : vector<16x16x128xbf16> to vector<1x16x16x128xbf16>
      tpu.vector_store %arg10[%228, %c0_186, %c32, %c0_187], %231 {strides = array<i32>} : memref<2x16x48x128xbf16, #tpu.memory_space<vmem>>, vector<1x16x16x128xbf16>,
      %c0_i32_188 = arith.constant 0 : i32
      %232 = arith.cmpi eq, %220, %c0_i32_188 : i32
      %233 = arith.extui %232 : i1 to i32
      %c0_i32_189 = arith.constant 0 : i32
      %234 = arith.cmpi ne, %233, %c0_i32_189 : i32
      scf.if %234 {
        %251 = arith.index_cast %221 : i32 to index
        %c0_203 = arith.constant 0 : index
        %c0_204 = arith.constant 0 : index
        %c0_205 = arith.constant 0 : index
        %252 = vector.load %arg10[%251, %c0_203, %c0_204, %c0_205] : memref<2x16x48x128xbf16, #tpu.memory_space<vmem>>, vector<1x4x48x128xbf16>
        %253 = vector.shape_cast %252 : vector<1x4x48x128xbf16> to vector<4x48x128xbf16>
        %254 = vector.shape_cast %223 : vector<4x48x128xbf16> to vector<1x4x48x128xbf16>
        tpu.vector_store %arg10[%251, %c0_203, %c0_204, %c0_205], %254 {strides = array<i32>} : memref<2x16x48x128xbf16, #tpu.memory_space<vmem>>, vector<1x4x48x128xbf16>,
      } else {
      }
      %c1_i32_190 = arith.constant 1 : i32
      %235 = arith.cmpi eq, %220, %c1_i32_190 : i32
      %236 = arith.extui %235 : i1 to i32
      %c0_i32_191 = arith.constant 0 : i32
      %237 = arith.cmpi ne, %236, %c0_i32_191 : i32
      scf.if %237 {
        %251 = arith.index_cast %221 : i32 to index
        %c12_203 = arith.constant 12 : index
        %c0_204 = arith.constant 0 : index
        %c0_205 = arith.constant 0 : index
        %252 = vector.load %arg10[%251, %c12_203, %c0_204, %c0_205] : memref<2x16x48x128xbf16, #tpu.memory_space<vmem>>, vector<1x4x48x128xbf16>
        %253 = vector.shape_cast %252 : vector<1x4x48x128xbf16> to vector<4x48x128xbf16>
        %254 = vector.shape_cast %223 : vector<4x48x128xbf16> to vector<1x4x48x128xbf16>
        tpu.vector_store %arg10[%251, %c12_203, %c0_204, %c0_205], %254 {strides = array<i32>} : memref<2x16x48x128xbf16, #tpu.memory_space<vmem>>, vector<1x4x48x128xbf16>,
      } else {
      }
      %c8_i32_192 = arith.constant 8 : i32
      %238 = arith.muli %220, %c8_i32_192 : i32
      %c0_i32_193 = arith.constant 0 : i32
      %c0_i32_194 = arith.constant 0 : i32
      %c0_i32_195 = arith.constant 0 : i32
      %239 = tpu.memref_slice %arg2[%arg0, %238, %c0_i32_194, %c0_i32_195] : memref<2x16x16x128xbf16, #tpu.memory_space<any>> -> memref<1x8x16x128xbf16, #tpu.memory_space<any>>
      %240 = tpu.memref_squeeze %239 : memref<1x8x16x128xbf16, #tpu.memory_space<any>> -> memref<8x16x128xbf16, #tpu.memory_space<any>>
      %c4_i32_196 = arith.constant 4 : i32
      %c16_i32_197 = arith.constant 16 : i32
      %c0_i32_198 = arith.constant 0 : i32
      %241 = tpu.memref_slice %arg10[%221, %c4_i32_196, %c16_i32_197, %c0_i32_198] : memref<2x16x48x128xbf16, #tpu.memory_space<vmem>> -> memref<1x8x16x128xbf16, #tpu.memory_space<vmem>>
      %242 = tpu.memref_squeeze %241 : memref<1x8x16x128xbf16, #tpu.memory_space<vmem>> -> memref<8x16x128xbf16, #tpu.memory_space<vmem>>
      %243 = tpu.memref_slice %arg11[%221, %c0_i32_193] : memref<2x3x!tpu.dma_semaphore, #tpu.memory_space<semaphore_mem>> -> memref<1x1x!tpu.dma_semaphore, #tpu.memory_space<semaphore_mem>>
      %244 = tpu.memref_squeeze %243 : memref<1x1x!tpu.dma_semaphore, #tpu.memory_space<semaphore_mem>> -> memref<!tpu.dma_semaphore, #tpu.memory_space<semaphore_mem>>
      tpu.enqueue_dma source(%240 : memref<8x16x128xbf16, #tpu.memory_space<any>>) target(%242 : memref<8x16x128xbf16, #tpu.memory_space<vmem>>) target_semaphore(%244 : memref<!tpu.dma_semaphore, #tpu.memory_space<semaphore_mem>>)
      %c0_i32_199 = arith.constant 0 : i32
      %245 = arith.cmpi sgt, %220, %c0_i32_199 : i32
      %246 = arith.extui %245 : i1 to i32
      %c0_i32_200 = arith.constant 0 : i32
      %247 = arith.cmpi ne, %246, %c0_i32_200 : i32
      scf.if %247 {
        %c8_i32_203 = arith.constant 8 : i32
        %251 = arith.muli %220, %c8_i32_203 : i32
        %c4_i32_204 = arith.constant 4 : i32
        %252 = arith.subi %251, %c4_i32_204 : i32
        %c1_i32_205 = arith.constant 1 : i32
        %c0_i32_206 = arith.constant 0 : i32
        %c0_i32_207 = arith.constant 0 : i32
        %253 = tpu.memref_slice %arg2[%arg0, %252, %c0_i32_206, %c0_i32_207] : memref<2x16x16x128xbf16, #tpu.memory_space<any>> -> memref<1x4x16x128xbf16, #tpu.memory_space<any>>
        %254 = tpu.memref_squeeze %253 : memref<1x4x16x128xbf16, #tpu.memory_space<any>> -> memref<4x16x128xbf16, #tpu.memory_space<any>>
        %c0_i32_208 = arith.constant 0 : i32
        %c16_i32_209 = arith.constant 16 : i32
        %c0_i32_210 = arith.constant 0 : i32
        %255 = tpu.memref_slice %arg10[%221, %c0_i32_208, %c16_i32_209, %c0_i32_210] : memref<2x16x48x128xbf16, #tpu.memory_space<vmem>> -> memref<1x4x16x128xbf16, #tpu.memory_space<vmem>>
        %256 = tpu.memref_squeeze %255 : memref<1x4x16x128xbf16, #tpu.memory_space<vmem>> -> memref<4x16x128xbf16, #tpu.memory_space<vmem>>
        %257 = tpu.memref_slice %arg11[%221, %c1_i32_205] : memref<2x3x!tpu.dma_semaphore, #tpu.memory_space<semaphore_mem>> -> memref<1x1x!tpu.dma_semaphore, #tpu.memory_space<semaphore_mem>>
        %258 = tpu.memref_squeeze %257 : memref<1x1x!tpu.dma_semaphore, #tpu.memory_space<semaphore_mem>> -> memref<!tpu.dma_semaphore, #tpu.memory_space<semaphore_mem>>
        tpu.enqueue_dma source(%254 : memref<4x16x128xbf16, #tpu.memory_space<any>>) target(%256 : memref<4x16x128xbf16, #tpu.memory_space<vmem>>) target_semaphore(%258 : memref<!tpu.dma_semaphore, #tpu.memory_space<semaphore_mem>>)
      } else {
      }
      %c1_i32_201 = arith.constant 1 : i32
      %248 = arith.cmpi slt, %220, %c1_i32_201 : i32
      %249 = arith.extui %248 : i1 to i32
      %c0_i32_202 = arith.constant 0 : i32
      %250 = arith.cmpi ne, %249, %c0_i32_202 : i32
      scf.if %250 {
        %c1_i32_203 = arith.constant 1 : i32
        %251 = arith.addi %220, %c1_i32_203 : i32
        %c8_i32_204 = arith.constant 8 : i32
        %252 = arith.muli %251, %c8_i32_204 : i32
        %c2_i32_205 = arith.constant 2 : i32
        %c0_i32_206 = arith.constant 0 : i32
        %c0_i32_207 = arith.constant 0 : i32
        %253 = tpu.memref_slice %arg2[%arg0, %252, %c0_i32_206, %c0_i32_207] : memref<2x16x16x128xbf16, #tpu.memory_space<any>> -> memref<1x4x16x128xbf16, #tpu.memory_space<any>>
        %254 = tpu.memref_squeeze %253 : memref<1x4x16x128xbf16, #tpu.memory_space<any>> -> memref<4x16x128xbf16, #tpu.memory_space<any>>
        %c12_i32 = arith.constant 12 : i32
        %c16_i32_208 = arith.constant 16 : i32
        %c0_i32_209 = arith.constant 0 : i32
        %255 = tpu.memref_slice %arg10[%221, %c12_i32, %c16_i32_208, %c0_i32_209] : memref<2x16x48x128xbf16, #tpu.memory_space<vmem>> -> memref<1x4x16x128xbf16, #tpu.memory_space<vmem>>
        %256 = tpu.memref_squeeze %255 : memref<1x4x16x128xbf16, #tpu.memory_space<vmem>> -> memref<4x16x128xbf16, #tpu.memory_space<vmem>>
        %257 = tpu.memref_slice %arg11[%221, %c2_i32_205] : memref<2x3x!tpu.dma_semaphore, #tpu.memory_space<semaphore_mem>> -> memref<1x1x!tpu.dma_semaphore, #tpu.memory_space<semaphore_mem>>
        %258 = tpu.memref_squeeze %257 : memref<1x1x!tpu.dma_semaphore, #tpu.memory_space<semaphore_mem>> -> memref<!tpu.dma_semaphore, #tpu.memory_space<semaphore_mem>>
        tpu.enqueue_dma source(%254 : memref<4x16x128xbf16, #tpu.memory_space<any>>) target(%256 : memref<4x16x128xbf16, #tpu.memory_space<vmem>>) target_semaphore(%258 : memref<!tpu.dma_semaphore, #tpu.memory_space<semaphore_mem>>)
      } else {
      }
    } else {
    }
    %30 = arith.index_cast %9 : i32 to index
    %c4 = arith.constant 4 : index
    %c16 = arith.constant 16 : index
    %c0 = arith.constant 0 : index
    %31 = vector.load %arg10[%30, %c4, %c16, %c0] : memref<2x16x48x128xbf16, #tpu.memory_space<vmem>>, vector<1x8x16x128xbf16>
    %32 = vector.shape_cast %31 : vector<1x8x16x128xbf16> to vector<8x16x128xbf16>
    %33 = vector.shape_cast %32 : vector<8x16x128xbf16> to vector<128x128xbf16>
    %c0_16 = arith.constant 0 : index
    %c0_17 = arith.constant 0 : index
    %34 = vector.load %arg3[%c0_16, %c0_17] : memref<128x128xbf16, #tpu.memory_space<vmem>>, vector<128x128xbf16>
    %cst = arith.constant dense<0.000000e+00> : vector<128x128xf32>
    %35 = tpu.matmul %33, %34, %cst {dimension_numbers = #tpu.dot_dimension_numbers<[1], [0], [0], [1], [0, 0, 1, 1], [], []>} : vector<128x128xbf16>, vector<128x128xbf16>, vector<128x128xf32> -> vector<128x128xf32>
    %c0_18 = arith.constant 0 : index
    %c0_19 = arith.constant 0 : index
    %36 = vector.load %arg6[%c0_18, %c0_19] : memref<3x128xf32, #tpu.memory_space<vmem>>, vector<1x128xf32>
    %37 = vector.broadcast %36 : vector<1x128xf32> to vector<128x128xf32>
    %38 = arith.addf %35, %37 : vector<128x128xf32>
    %cst_20 = arith.constant 0.000000e+00 : f32
    %39 = vector.broadcast %cst_20 : f32 to vector<128x128xf32>
    %40 = arith.maximumf %38, %39 : vector<128x128xf32>
    %41 = arith.truncf %40 : vector<128x128xf32> to vector<128x128xbf16>
    %c0_21 = arith.constant 0 : index
    %c0_22 = arith.constant 0 : index
    %42 = vector.load %arg5[%c0_21, %c0_22] : memref<384x128xbf16, #tpu.memory_space<vmem>>, vector<128x128xbf16>
    %cst_23 = arith.constant dense<0.000000e+00> : vector<128x128xf32>
    %43 = tpu.matmul %41, %42, %cst_23 {dimension_numbers = #tpu.dot_dimension_numbers<[1], [0], [0], [1], [0, 0, 1, 1], [], []>} : vector<128x128xbf16>, vector<128x128xbf16>, vector<128x128xf32> -> vector<128x128xf32>
    %cst_24 = arith.constant 0.000000e+00 : f32
    %44 = vector.broadcast %cst_24 : f32 to vector<128x128xf32>
    %45 = arith.index_cast %9 : i32 to index
    %c2 = arith.constant 2 : index
    %c14 = arith.constant 14 : index
    %c0_25 = arith.constant 0 : index
    %46 = vector.load %arg10[%45, %c2, %c14, %c0_25] : memref<2x16x48x128xbf16, #tpu.memory_space<vmem>>, vector<1x8x16x128xbf16>
    %47 = vector.shape_cast %46 : vector<1x8x16x128xbf16> to vector<8x16x128xbf16>
    %48 = vector.shape_cast %47 : vector<8x16x128xbf16> to vector<128x128xbf16>
    %c0_26 = arith.constant 0 : index
    %c0_27 = arith.constant 0 : index
    %c0_28 = arith.constant 0 : index
    %c0_29 = arith.constant 0 : index
    %49 = vector.load %arg4[%c0_26, %c0_27, %c0_28, %c0_29] : memref<2x9x128x128xbf16, #tpu.memory_space<vmem>>, vector<1x1x128x128xbf16>
    %50 = vector.shape_cast %49 : vector<1x1x128x128xbf16> to vector<128x128xbf16>
    %cst_30 = arith.constant dense<0.000000e+00> : vector<128x128xf32>
    %51 = tpu.matmul %48, %50, %cst_30 {dimension_numbers = #tpu.dot_dimension_numbers<[1], [0], [0], [1], [0, 0, 1, 1], [], []>} : vector<128x128xbf16>, vector<128x128xbf16>, vector<128x128xf32> -> vector<128x128xf32>
    %52 = arith.addf %44, %51 : vector<128x128xf32>
    %53 = arith.index_cast %9 : i32 to index
    %c2_31 = arith.constant 2 : index
    %c16_32 = arith.constant 16 : index
    %c0_33 = arith.constant 0 : index
    %54 = vector.load %arg10[%53, %c2_31, %c16_32, %c0_33] : memref<2x16x48x128xbf16, #tpu.memory_space<vmem>>, vector<1x8x16x128xbf16>
    %55 = vector.shape_cast %54 : vector<1x8x16x128xbf16> to vector<8x16x128xbf16>
    %56 = vector.shape_cast %55 : vector<8x16x128xbf16> to vector<128x128xbf16>
    %c0_34 = arith.constant 0 : index
    %c1 = arith.constant 1 : index
    %c0_35 = arith.constant 0 : index
    %c0_36 = arith.constant 0 : index
    %57 = vector.load %arg4[%c0_34, %c1, %c0_35, %c0_36] : memref<2x9x128x128xbf16, #tpu.memory_space<vmem>>, vector<1x1x128x128xbf16>
    %58 = vector.shape_cast %57 : vector<1x1x128x128xbf16> to vector<128x128xbf16>
    %cst_37 = arith.constant dense<0.000000e+00> : vector<128x128xf32>
    %59 = tpu.matmul %56, %58, %cst_37 {dimension_numbers = #tpu.dot_dimension_numbers<[1], [0], [0], [1], [0, 0, 1, 1], [], []>} : vector<128x128xbf16>, vector<128x128xbf16>, vector<128x128xf32> -> vector<128x128xf32>
    %60 = arith.addf %52, %59 : vector<128x128xf32>
    %61 = arith.index_cast %9 : i32 to index
    %c2_38 = arith.constant 2 : index
    %c18 = arith.constant 18 : index
    %c0_39 = arith.constant 0 : index
    %62 = vector.load %arg10[%61, %c2_38, %c18, %c0_39] : memref<2x16x48x128xbf16, #tpu.memory_space<vmem>>, vector<1x8x16x128xbf16>
    %63 = vector.shape_cast %62 : vector<1x8x16x128xbf16> to vector<8x16x128xbf16>
    %64 = vector.shape_cast %63 : vector<8x16x128xbf16> to vector<128x128xbf16>
    %c0_40 = arith.constant 0 : index
    %c2_41 = arith.constant 2 : index
    %c0_42 = arith.constant 0 : index
    %c0_43 = arith.constant 0 : index
    %65 = vector.load %arg4[%c0_40, %c2_41, %c0_42, %c0_43] : memref<2x9x128x128xbf16, #tpu.memory_space<vmem>>, vector<1x1x128x128xbf16>
    %66 = vector.shape_cast %65 : vector<1x1x128x128xbf16> to vector<128x128xbf16>
    %cst_44 = arith.constant dense<0.000000e+00> : vector<128x128xf32>
    %67 = tpu.matmul %64, %66, %cst_44 {dimension_numbers = #tpu.dot_dimension_numbers<[1], [0], [0], [1], [0, 0, 1, 1], [], []>} : vector<128x128xbf16>, vector<128x128xbf16>, vector<128x128xf32> -> vector<128x128xf32>
    %68 = arith.addf %60, %67 : vector<128x128xf32>
    %69 = arith.index_cast %9 : i32 to index
    %c4_45 = arith.constant 4 : index
    %c14_46 = arith.constant 14 : index
    %c0_47 = arith.constant 0 : index
    %70 = vector.load %arg10[%69, %c4_45, %c14_46, %c0_47] : memref<2x16x48x128xbf16, #tpu.memory_space<vmem>>, vector<1x8x16x128xbf16>
    %71 = vector.shape_cast %70 : vector<1x8x16x128xbf16> to vector<8x16x128xbf16>
    %72 = vector.shape_cast %71 : vector<8x16x128xbf16> to vector<128x128xbf16>
    %c0_48 = arith.constant 0 : index
    %c3 = arith.constant 3 : index
    %c0_49 = arith.constant 0 : index
    %c0_50 = arith.constant 0 : index
    %73 = vector.load %arg4[%c0_48, %c3, %c0_49, %c0_50] : memref<2x9x128x128xbf16, #tpu.memory_space<vmem>>, vector<1x1x128x128xbf16>
    %74 = vector.shape_cast %73 : vector<1x1x128x128xbf16> to vector<128x128xbf16>
    %cst_51 = arith.constant dense<0.000000e+00> : vector<128x128xf32>
    %75 = tpu.matmul %72, %74, %cst_51 {dimension_numbers = #tpu.dot_dimension_numbers<[1], [0], [0], [1], [0, 0, 1, 1], [], []>} : vector<128x128xbf16>, vector<128x128xbf16>, vector<128x128xf32> -> vector<128x128xf32>
    %76 = arith.addf %68, %75 : vector<128x128xf32>
    %77 = arith.index_cast %9 : i32 to index
    %c4_52 = arith.constant 4 : index
    %c16_53 = arith.constant 16 : index
    %c0_54 = arith.constant 0 : index
    %78 = vector.load %arg10[%77, %c4_52, %c16_53, %c0_54] : memref<2x16x48x128xbf16, #tpu.memory_space<vmem>>, vector<1x8x16x128xbf16>
    %79 = vector.shape_cast %78 : vector<1x8x16x128xbf16> to vector<8x16x128xbf16>
    %80 = vector.shape_cast %79 : vector<8x16x128xbf16> to vector<128x128xbf16>
    %c0_55 = arith.constant 0 : index
    %c4_56 = arith.constant 4 : index
    %c0_57 = arith.constant 0 : index
    %c0_58 = arith.constant 0 : index
    %81 = vector.load %arg4[%c0_55, %c4_56, %c0_57, %c0_58] : memref<2x9x128x128xbf16, #tpu.memory_space<vmem>>, vector<1x1x128x128xbf16>
    %82 = vector.shape_cast %81 : vector<1x1x128x128xbf16> to vector<128x128xbf16>
    %cst_59 = arith.constant dense<0.000000e+00> : vector<128x128xf32>
    %83 = tpu.matmul %80, %82, %cst_59 {dimension_numbers = #tpu.dot_dimension_numbers<[1], [0], [0], [1], [0, 0, 1, 1], [], []>} : vector<128x128xbf16>, vector<128x128xbf16>, vector<128x128xf32> -> vector<128x128xf32>
    %84 = arith.addf %76, %83 : vector<128x128xf32>
    %85 = arith.index_cast %9 : i32 to index
    %c4_60 = arith.constant 4 : index
    %c18_61 = arith.constant 18 : index
    %c0_62 = arith.constant 0 : index
    %86 = vector.load %arg10[%85, %c4_60, %c18_61, %c0_62] : memref<2x16x48x128xbf16, #tpu.memory_space<vmem>>, vector<1x8x16x128xbf16>
    %87 = vector.shape_cast %86 : vector<1x8x16x128xbf16> to vector<8x16x128xbf16>
    %88 = vector.shape_cast %87 : vector<8x16x128xbf16> to vector<128x128xbf16>
    %c0_63 = arith.constant 0 : index
    %c5 = arith.constant 5 : index
    %c0_64 = arith.constant 0 : index
    %c0_65 = arith.constant 0 : index
    %89 = vector.load %arg4[%c0_63, %c5, %c0_64, %c0_65] : memref<2x9x128x128xbf16, #tpu.memory_space<vmem>>, vector<1x1x128x128xbf16>
    %90 = vector.shape_cast %89 : vector<1x1x128x128xbf16> to vector<128x128xbf16>
    %cst_66 = arith.constant dense<0.000000e+00> : vector<128x128xf32>
    %91 = tpu.matmul %88, %90, %cst_66 {dimension_numbers = #tpu.dot_dimension_numbers<[1], [0], [0], [1], [0, 0, 1, 1], [], []>} : vector<128x128xbf16>, vector<128x128xbf16>, vector<128x128xf32> -> vector<128x128xf32>
    %92 = arith.addf %84, %91 : vector<128x128xf32>
    %93 = arith.index_cast %9 : i32 to index
    %c6 = arith.constant 6 : index
    %c14_67 = arith.constant 14 : index
    %c0_68 = arith.constant 0 : index
    %94 = vector.load %arg10[%93, %c6, %c14_67, %c0_68] : memref<2x16x48x128xbf16, #tpu.memory_space<vmem>>, vector<1x8x16x128xbf16>
    %95 = vector.shape_cast %94 : vector<1x8x16x128xbf16> to vector<8x16x128xbf16>
    %96 = vector.shape_cast %95 : vector<8x16x128xbf16> to vector<128x128xbf16>
    %c0_69 = arith.constant 0 : index
    %c6_70 = arith.constant 6 : index
    %c0_71 = arith.constant 0 : index
    %c0_72 = arith.constant 0 : index
    %97 = vector.load %arg4[%c0_69, %c6_70, %c0_71, %c0_72] : memref<2x9x128x128xbf16, #tpu.memory_space<vmem>>, vector<1x1x128x128xbf16>
    %98 = vector.shape_cast %97 : vector<1x1x128x128xbf16> to vector<128x128xbf16>
    %cst_73 = arith.constant dense<0.000000e+00> : vector<128x128xf32>
    %99 = tpu.matmul %96, %98, %cst_73 {dimension_numbers = #tpu.dot_dimension_numbers<[1], [0], [0], [1], [0, 0, 1, 1], [], []>} : vector<128x128xbf16>, vector<128x128xbf16>, vector<128x128xf32> -> vector<128x128xf32>
    %100 = arith.addf %92, %99 : vector<128x128xf32>
    %101 = arith.index_cast %9 : i32 to index
    %c6_74 = arith.constant 6 : index
    %c16_75 = arith.constant 16 : index
    %c0_76 = arith.constant 0 : index
    %102 = vector.load %arg10[%101, %c6_74, %c16_75, %c0_76] : memref<2x16x48x128xbf16, #tpu.memory_space<vmem>>, vector<1x8x16x128xbf16>
    %103 = vector.shape_cast %102 : vector<1x8x16x128xbf16> to vector<8x16x128xbf16>
    %104 = vector.shape_cast %103 : vector<8x16x128xbf16> to vector<128x128xbf16>
    %c0_77 = arith.constant 0 : index
    %c7 = arith.constant 7 : index
    %c0_78 = arith.constant 0 : index
    %c0_79 = arith.constant 0 : index
    %105 = vector.load %arg4[%c0_77, %c7, %c0_78, %c0_79] : memref<2x9x128x128xbf16, #tpu.memory_space<vmem>>, vector<1x1x128x128xbf16>
    %106 = vector.shape_cast %105 : vector<1x1x128x128xbf16> to vector<128x128xbf16>
    %cst_80 = arith.constant dense<0.000000e+00> : vector<128x128xf32>
    %107 = tpu.matmul %104, %106, %cst_80 {dimension_numbers = #tpu.dot_dimension_numbers<[1], [0], [0], [1], [0, 0, 1, 1], [], []>} : vector<128x128xbf16>, vector<128x128xbf16>, vector<128x128xf32> -> vector<128x128xf32>
    %108 = arith.addf %100, %107 : vector<128x128xf32>
    %109 = arith.index_cast %9 : i32 to index
    %c6_81 = arith.constant 6 : index
    %c18_82 = arith.constant 18 : index
    %c0_83 = arith.constant 0 : index
    %110 = vector.load %arg10[%109, %c6_81, %c18_82, %c0_83] : memref<2x16x48x128xbf16, #tpu.memory_space<vmem>>, vector<1x8x16x128xbf16>
    %111 = vector.shape_cast %110 : vector<1x8x16x128xbf16> to vector<8x16x128xbf16>
    %112 = vector.shape_cast %111 : vector<8x16x128xbf16> to vector<128x128xbf16>
    %c0_84 = arith.constant 0 : index
    %c8 = arith.constant 8 : index
    %c0_85 = arith.constant 0 : index
    %c0_86 = arith.constant 0 : index
    %113 = vector.load %arg4[%c0_84, %c8, %c0_85, %c0_86] : memref<2x9x128x128xbf16, #tpu.memory_space<vmem>>, vector<1x1x128x128xbf16>
    %114 = vector.shape_cast %113 : vector<1x1x128x128xbf16> to vector<128x128xbf16>
    %cst_87 = arith.constant dense<0.000000e+00> : vector<128x128xf32>
    %115 = tpu.matmul %112, %114, %cst_87 {dimension_numbers = #tpu.dot_dimension_numbers<[1], [0], [0], [1], [0, 0, 1, 1], [], []>} : vector<128x128xbf16>, vector<128x128xbf16>, vector<128x128xf32> -> vector<128x128xf32>
    %116 = arith.addf %108, %115 : vector<128x128xf32>
    %c1_88 = arith.constant 1 : index
    %c0_89 = arith.constant 0 : index
    %117 = vector.load %arg6[%c1_88, %c0_89] : memref<3x128xf32, #tpu.memory_space<vmem>>, vector<1x128xf32>
    %118 = vector.broadcast %117 : vector<1x128xf32> to vector<128x128xf32>
    %119 = arith.addf %116, %118 : vector<128x128xf32>
    %cst_90 = arith.constant 0.000000e+00 : f32
    %120 = vector.broadcast %cst_90 : f32 to vector<128x128xf32>
    %121 = arith.maximumf %119, %120 : vector<128x128xf32>
    %122 = arith.truncf %121 : vector<128x128xf32> to vector<128x128xbf16>
    %c128 = arith.constant 128 : index
    %c0_91 = arith.constant 0 : index
    %123 = vector.load %arg5[%c128, %c0_91] : memref<384x128xbf16, #tpu.memory_space<vmem>>, vector<128x128xbf16>
    %cst_92 = arith.constant dense<0.000000e+00> : vector<128x128xf32>
    %124 = tpu.matmul %122, %123, %cst_92 {dimension_numbers = #tpu.dot_dimension_numbers<[1], [0], [0], [1], [0, 0, 1, 1], [], []>} : vector<128x128xbf16>, vector<128x128xbf16>, vector<128x128xf32> -> vector<128x128xf32>
    %125 = arith.addf %43, %124 : vector<128x128xf32>
    %cst_93 = arith.constant 0.000000e+00 : f32
    %126 = vector.broadcast %cst_93 : f32 to vector<128x128xf32>
    %127 = arith.index_cast %9 : i32 to index
    %c0_94 = arith.constant 0 : index
    %c12 = arith.constant 12 : index
    %c0_95 = arith.constant 0 : index
    %128 = vector.load %arg10[%127, %c0_94, %c12, %c0_95] : memref<2x16x48x128xbf16, #tpu.memory_space<vmem>>, vector<1x8x16x128xbf16>
    %129 = vector.shape_cast %128 : vector<1x8x16x128xbf16> to vector<8x16x128xbf16>
    %130 = vector.shape_cast %129 : vector<8x16x128xbf16> to vector<128x128xbf16>
    %c1_96 = arith.constant 1 : index
    %c0_97 = arith.constant 0 : index
    %c0_98 = arith.constant 0 : index
    %c0_99 = arith.constant 0 : index
    %131 = vector.load %arg4[%c1_96, %c0_97, %c0_98, %c0_99] : memref<2x9x128x128xbf16, #tpu.memory_space<vmem>>, vector<1x1x128x128xbf16>
    %132 = vector.shape_cast %131 : vector<1x1x128x128xbf16> to vector<128x128xbf16>
    %cst_100 = arith.constant dense<0.000000e+00> : vector<128x128xf32>
    %133 = tpu.matmul %130, %132, %cst_100 {dimension_numbers = #tpu.dot_dimension_numbers<[1], [0], [0], [1], [0, 0, 1, 1], [], []>} : vector<128x128xbf16>, vector<128x128xbf16>, vector<128x128xf32> -> vector<128x128xf32>
    %134 = arith.addf %126, %133 : vector<128x128xf32>
    %135 = arith.index_cast %9 : i32 to index
    %c0_101 = arith.constant 0 : index
    %c16_102 = arith.constant 16 : index
    %c0_103 = arith.constant 0 : index
    %136 = vector.load %arg10[%135, %c0_101, %c16_102, %c0_103] : memref<2x16x48x128xbf16, #tpu.memory_space<vmem>>, vector<1x8x16x128xbf16>
    %137 = vector.shape_cast %136 : vector<1x8x16x128xbf16> to vector<8x16x128xbf16>
    %138 = vector.shape_cast %137 : vector<8x16x128xbf16> to vector<128x128xbf16>
    %c1_104 = arith.constant 1 : index
    %c1_105 = arith.constant 1 : index
    %c0_106 = arith.constant 0 : index
    %c0_107 = arith.constant 0 : index
    %139 = vector.load %arg4[%c1_104, %c1_105, %c0_106, %c0_107] : memref<2x9x128x128xbf16, #tpu.memory_space<vmem>>, vector<1x1x128x128xbf16>
    %140 = vector.shape_cast %139 : vector<1x1x128x128xbf16> to vector<128x128xbf16>
    %cst_108 = arith.constant dense<0.000000e+00> : vector<128x128xf32>
    %141 = tpu.matmul %138, %140, %cst_108 {dimension_numbers = #tpu.dot_dimension_numbers<[1], [0], [0], [1], [0, 0, 1, 1], [], []>} : vector<128x128xbf16>, vector<128x128xbf16>, vector<128x128xf32> -> vector<128x128xf32>
    %142 = arith.addf %134, %141 : vector<128x128xf32>
    %143 = arith.index_cast %9 : i32 to index
    %c0_109 = arith.constant 0 : index
    %c20 = arith.constant 20 : index
    %c0_110 = arith.constant 0 : index
    %144 = vector.load %arg10[%143, %c0_109, %c20, %c0_110] : memref<2x16x48x128xbf16, #tpu.memory_space<vmem>>, vector<1x8x16x128xbf16>
    %145 = vector.shape_cast %144 : vector<1x8x16x128xbf16> to vector<8x16x128xbf16>
    %146 = vector.shape_cast %145 : vector<8x16x128xbf16> to vector<128x128xbf16>
    %c1_111 = arith.constant 1 : index
    %c2_112 = arith.constant 2 : index
    %c0_113 = arith.constant 0 : index
    %c0_114 = arith.constant 0 : index
    %147 = vector.load %arg4[%c1_111, %c2_112, %c0_113, %c0_114] : memref<2x9x128x128xbf16, #tpu.memory_space<vmem>>, vector<1x1x128x128xbf16>
    %148 = vector.shape_cast %147 : vector<1x1x128x128xbf16> to vector<128x128xbf16>
    %cst_115 = arith.constant dense<0.000000e+00> : vector<128x128xf32>
    %149 = tpu.matmul %146, %148, %cst_115 {dimension_numbers = #tpu.dot_dimension_numbers<[1], [0], [0], [1], [0, 0, 1, 1], [], []>} : vector<128x128xbf16>, vector<128x128xbf16>, vector<128x128xf32> -> vector<128x128xf32>
    %150 = arith.addf %142, %149 : vector<128x128xf32>
    %151 = arith.index_cast %9 : i32 to index
    %c4_116 = arith.constant 4 : index
    %c12_117 = arith.constant 12 : index
    %c0_118 = arith.constant 0 : index
    %152 = vector.load %arg10[%151, %c4_116, %c12_117, %c0_118] : memref<2x16x48x128xbf16, #tpu.memory_space<vmem>>, vector<1x8x16x128xbf16>
    %153 = vector.shape_cast %152 : vector<1x8x16x128xbf16> to vector<8x16x128xbf16>
    %154 = vector.shape_cast %153 : vector<8x16x128xbf16> to vector<128x128xbf16>
    %c1_119 = arith.constant 1 : index
    %c3_120 = arith.constant 3 : index
    %c0_121 = arith.constant 0 : index
    %c0_122 = arith.constant 0 : index
    %155 = vector.load %arg4[%c1_119, %c3_120, %c0_121, %c0_122] : memref<2x9x128x128xbf16, #tpu.memory_space<vmem>>, vector<1x1x128x128xbf16>
    %156 = vector.shape_cast %155 : vector<1x1x128x128xbf16> to vector<128x128xbf16>
    %cst_123 = arith.constant dense<0.000000e+00> : vector<128x128xf32>
    %157 = tpu.matmul %154, %156, %cst_123 {dimension_numbers = #tpu.dot_dimension_numbers<[1], [0], [0], [1], [0, 0, 1, 1], [], []>} : vector<128x128xbf16>, vector<128x128xbf16>, vector<128x128xf32> -> vector<128x128xf32>
    %158 = arith.addf %150, %157 : vector<128x128xf32>
    %159 = arith.index_cast %9 : i32 to index
    %c4_124 = arith.constant 4 : index
    %c16_125 = arith.constant 16 : index
    %c0_126 = arith.constant 0 : index
    %160 = vector.load %arg10[%159, %c4_124, %c16_125, %c0_126] : memref<2x16x48x128xbf16, #tpu.memory_space<vmem>>, vector<1x8x16x128xbf16>
    %161 = vector.shape_cast %160 : vector<1x8x16x128xbf16> to vector<8x16x128xbf16>
    %162 = vector.shape_cast %161 : vector<8x16x128xbf16> to vector<128x128xbf16>
    %c1_127 = arith.constant 1 : index
    %c4_128 = arith.constant 4 : index
    %c0_129 = arith.constant 0 : index
    %c0_130 = arith.constant 0 : index
    %163 = vector.load %arg4[%c1_127, %c4_128, %c0_129, %c0_130] : memref<2x9x128x128xbf16, #tpu.memory_space<vmem>>, vector<1x1x128x128xbf16>
    %164 = vector.shape_cast %163 : vector<1x1x128x128xbf16> to vector<128x128xbf16>
    %cst_131 = arith.constant dense<0.000000e+00> : vector<128x128xf32>
    %165 = tpu.matmul %162, %164, %cst_131 {dimension_numbers = #tpu.dot_dimension_numbers<[1], [0], [0], [1], [0, 0, 1, 1], [], []>} : vector<128x128xbf16>, vector<128x128xbf16>, vector<128x128xf32> -> vector<128x128xf32>
    %166 = arith.addf %158, %165 : vector<128x128xf32>
    %167 = arith.index_cast %9 : i32 to index
    %c4_132 = arith.constant 4 : index
    %c20_133 = arith.constant 20 : index
    %c0_134 = arith.constant 0 : index
    %168 = vector.load %arg10[%167, %c4_132, %c20_133, %c0_134] : memref<2x16x48x128xbf16, #tpu.memory_space<vmem>>, vector<1x8x16x128xbf16>
    %169 = vector.shape_cast %168 : vector<1x8x16x128xbf16> to vector<8x16x128xbf16>
    %170 = vector.shape_cast %169 : vector<8x16x128xbf16> to vector<128x128xbf16>
    %c1_135 = arith.constant 1 : index
    %c5_136 = arith.constant 5 : index
    %c0_137 = arith.constant 0 : index
    %c0_138 = arith.constant 0 : index
    %171 = vector.load %arg4[%c1_135, %c5_136, %c0_137, %c0_138] : memref<2x9x128x128xbf16, #tpu.memory_space<vmem>>, vector<1x1x128x128xbf16>
    %172 = vector.shape_cast %171 : vector<1x1x128x128xbf16> to vector<128x128xbf16>
    %cst_139 = arith.constant dense<0.000000e+00> : vector<128x128xf32>
    %173 = tpu.matmul %170, %172, %cst_139 {dimension_numbers = #tpu.dot_dimension_numbers<[1], [0], [0], [1], [0, 0, 1, 1], [], []>} : vector<128x128xbf16>, vector<128x128xbf16>, vector<128x128xf32> -> vector<128x128xf32>
    %174 = arith.addf %166, %173 : vector<128x128xf32>
    %175 = arith.index_cast %9 : i32 to index
    %c8_140 = arith.constant 8 : index
    %c12_141 = arith.constant 12 : index
    %c0_142 = arith.constant 0 : index
    %176 = vector.load %arg10[%175, %c8_140, %c12_141, %c0_142] : memref<2x16x48x128xbf16, #tpu.memory_space<vmem>>, vector<1x8x16x128xbf16>
    %177 = vector.shape_cast %176 : vector<1x8x16x128xbf16> to vector<8x16x128xbf16>
    %178 = vector.shape_cast %177 : vector<8x16x128xbf16> to vector<128x128xbf16>
    %c1_143 = arith.constant 1 : index
    %c6_144 = arith.constant 6 : index
    %c0_145 = arith.constant 0 : index
    %c0_146 = arith.constant 0 : index
    %179 = vector.load %arg4[%c1_143, %c6_144, %c0_145, %c0_146] : memref<2x9x128x128xbf16, #tpu.memory_space<vmem>>, vector<1x1x128x128xbf16>
    %180 = vector.shape_cast %179 : vector<1x1x128x128xbf16> to vector<128x128xbf16>
    %cst_147 = arith.constant dense<0.000000e+00> : vector<128x128xf32>
    %181 = tpu.matmul %178, %180, %cst_147 {dimension_numbers = #tpu.dot_dimension_numbers<[1], [0], [0], [1], [0, 0, 1, 1], [], []>} : vector<128x128xbf16>, vector<128x128xbf16>, vector<128x128xf32> -> vector<128x128xf32>
    %182 = arith.addf %174, %181 : vector<128x128xf32>
    %183 = arith.index_cast %9 : i32 to index
    %c8_148 = arith.constant 8 : index
    %c16_149 = arith.constant 16 : index
    %c0_150 = arith.constant 0 : index
    %184 = vector.load %arg10[%183, %c8_148, %c16_149, %c0_150] : memref<2x16x48x128xbf16, #tpu.memory_space<vmem>>, vector<1x8x16x128xbf16>
    %185 = vector.shape_cast %184 : vector<1x8x16x128xbf16> to vector<8x16x128xbf16>
    %186 = vector.shape_cast %185 : vector<8x16x128xbf16> to vector<128x128xbf16>
    %c1_151 = arith.constant 1 : index
    %c7_152 = arith.constant 7 : index
    %c0_153 = arith.constant 0 : index
    %c0_154 = arith.constant 0 : index
    %187 = vector.load %arg4[%c1_151, %c7_152, %c0_153, %c0_154] : memref<2x9x128x128xbf16, #tpu.memory_space<vmem>>, vector<1x1x128x128xbf16>
    %188 = vector.shape_cast %187 : vector<1x1x128x128xbf16> to vector<128x128xbf16>
    %cst_155 = arith.constant dense<0.000000e+00> : vector<128x128xf32>
    %189 = tpu.matmul %186, %188, %cst_155 {dimension_numbers = #tpu.dot_dimension_numbers<[1], [0], [0], [1], [0, 0, 1, 1], [], []>} : vector<128x128xbf16>, vector<128x128xbf16>, vector<128x128xf32> -> vector<128x128xf32>
    %190 = arith.addf %182, %189 : vector<128x128xf32>
    %191 = arith.index_cast %9 : i32 to index
    %c8_156 = arith.constant 8 : index
    %c20_157 = arith.constant 20 : index
    %c0_158 = arith.constant 0 : index
    %192 = vector.load %arg10[%191, %c8_156, %c20_157, %c0_158] : memref<2x16x48x128xbf16, #tpu.memory_space<vmem>>, vector<1x8x16x128xbf16>
    %193 = vector.shape_cast %192 : vector<1x8x16x128xbf16> to vector<8x16x128xbf16>
    %194 = vector.shape_cast %193 : vector<8x16x128xbf16> to vector<128x128xbf16>
    %c1_159 = arith.constant 1 : index
    %c8_160 = arith.constant 8 : index
    %c0_161 = arith.constant 0 : index
    %c0_162 = arith.constant 0 : index
    %195 = vector.load %arg4[%c1_159, %c8_160, %c0_161, %c0_162] : memref<2x9x128x128xbf16, #tpu.memory_space<vmem>>, vector<1x1x128x128xbf16>
    %196 = vector.shape_cast %195 : vector<1x1x128x128xbf16> to vector<128x128xbf16>
    %cst_163 = arith.constant dense<0.000000e+00> : vector<128x128xf32>
    %197 = tpu.matmul %194, %196, %cst_163 {dimension_numbers = #tpu.dot_dimension_numbers<[1], [0], [0], [1], [0, 0, 1, 1], [], []>} : vector<128x128xbf16>, vector<128x128xbf16>, vector<128x128xf32> -> vector<128x128xf32>
    %198 = arith.addf %190, %197 : vector<128x128xf32>
    %c2_164 = arith.constant 2 : index
    %c0_165 = arith.constant 0 : index
    %199 = vector.load %arg6[%c2_164, %c0_165] : memref<3x128xf32, #tpu.memory_space<vmem>>, vector<1x128xf32>
    %200 = vector.broadcast %199 : vector<1x128xf32> to vector<128x128xf32>
    %201 = arith.addf %198, %200 : vector<128x128xf32>
    %cst_166 = arith.constant 0.000000e+00 : f32
    %202 = vector.broadcast %cst_166 : f32 to vector<128x128xf32>
    %203 = arith.maximumf %201, %202 : vector<128x128xf32>
    %204 = arith.truncf %203 : vector<128x128xf32> to vector<128x128xbf16>
    %c256 = arith.constant 256 : index
    %c0_167 = arith.constant 0 : index
    %205 = vector.load %arg5[%c256, %c0_167] : memref<384x128xbf16, #tpu.memory_space<vmem>>, vector<128x128xbf16>
    %cst_168 = arith.constant dense<0.000000e+00> : vector<128x128xf32>
    %206 = tpu.matmul %204, %205, %cst_168 {dimension_numbers = #tpu.dot_dimension_numbers<[1], [0], [0], [1], [0, 0, 1, 1], [], []>} : vector<128x128xbf16>, vector<128x128xbf16>, vector<128x128xf32> -> vector<128x128xf32>
    %207 = arith.addf %125, %206 : vector<128x128xf32>
    %c0_169 = arith.constant 0 : index
    %c0_170 = arith.constant 0 : index
    %c0_171 = arith.constant 0 : index
    %208 = vector.load %arg7[%c0_169, %c0_170, %c0_171] : memref<1x1x128xf32, #tpu.memory_space<vmem>>, vector<1x1x128xf32>
    %209 = vector.shape_cast %208 : vector<1x1x128xf32> to vector<1x128xf32>
    %210 = vector.broadcast %209 : vector<1x128xf32> to vector<128x128xf32>
    %211 = arith.addf %207, %210 : vector<128x128xf32>
    %c0_172 = arith.constant 0 : index
    %c0_173 = arith.constant 0 : index
    %212 = vector.load %arg8[%c0_172, %c0_173] : memref<1x128xf32, #tpu.memory_space<vmem>>, vector<1x128xf32>
    %213 = vector.broadcast %212 : vector<1x128xf32> to vector<128x128xf32>
    %214 = arith.addf %211, %213 : vector<128x128xf32>
    %cst_174 = arith.constant 0.000000e+00 : f32
    %215 = vector.broadcast %cst_174 : f32 to vector<128x128xf32>
    %216 = arith.maximumf %214, %215 : vector<128x128xf32>
    %217 = vector.shape_cast %216 : vector<128x128xf32> to vector<1x8x16x128xf32>
    %218 = arith.truncf %217 : vector<1x8x16x128xf32> to vector<1x8x16x128xbf16>
    %c0_175 = arith.constant 0 : index
    %c0_176 = arith.constant 0 : index
    %c0_177 = arith.constant 0 : index
    %c0_178 = arith.constant 0 : index
    %219 = vector.load %arg9[%c0_175, %c0_176, %c0_177, %c0_178] : memref<1x8x16x128xbf16, #tpu.memory_space<vmem>>, vector<1x8x16x128xbf16>
    tpu.vector_store %arg9[%c0_175, %c0_176, %c0_177, %c0_178], %218 {strides = array<i32>} : memref<1x8x16x128xbf16, #tpu.memory_space<vmem>>, vector<1x8x16x128xbf16>,
    return
  }
  func.func @transform_1(%arg0: i32, %arg1: i32) -> (i32, i32) {
    %c0_i32 = arith.constant 0 : i32
    %c0_i32_0 = arith.constant 0 : i32
    %c0_i32_1 = arith.constant 0 : i32
    return %c0_i32, %c0_i32_0 : i32, i32
  }
  func.func @transform_2(%arg0: i32, %arg1: i32) -> (i32, i32, i32, i32) {
    %c0_i32 = arith.constant 0 : i32
    %c0_i32_0 = arith.constant 0 : i32
    %c0_i32_1 = arith.constant 0 : i32
    %c0_i32_2 = arith.constant 0 : i32
    %c0_i32_3 = arith.constant 0 : i32
    return %c0_i32, %c0_i32_0, %c0_i32_1, %c0_i32_2 : i32, i32, i32, i32
  }
  func.func @transform_3(%arg0: i32, %arg1: i32) -> (i32, i32) {
    %c0_i32 = arith.constant 0 : i32
    %c0_i32_0 = arith.constant 0 : i32
    %c0_i32_1 = arith.constant 0 : i32
    return %c0_i32, %c0_i32_0 : i32, i32
  }
  func.func @transform_4(%arg0: i32, %arg1: i32) -> (i32, i32) {
    %c0_i32 = arith.constant 0 : i32
    %c0_i32_0 = arith.constant 0 : i32
    %c0_i32_1 = arith.constant 0 : i32
    return %c0_i32, %c0_i32_0 : i32, i32
  }
  func.func @transform_5(%arg0: i32, %arg1: i32) -> (i32, i32, i32) {
    %c0_i32 = arith.constant 0 : i32
    %c0_i32_0 = arith.constant 0 : i32
    %c0_i32_1 = arith.constant 0 : i32
    return %arg0, %c0_i32, %c0_i32_0 : i32, i32, i32
  }
  func.func @transform_6(%arg0: i32, %arg1: i32) -> (i32, i32) {
    %c0_i32 = arith.constant 0 : i32
    %c0_i32_0 = arith.constant 0 : i32
    %c0_i32_1 = arith.constant 0 : i32
    return %c0_i32, %c0_i32_0 : i32, i32
  }
  func.func @transform_7(%arg0: i32, %arg1: i32) -> (i32, i32, i32, i32) {
    %c0_i32 = arith.constant 0 : i32
    %c0_i32_0 = arith.constant 0 : i32
    %c0_i32_1 = arith.constant 0 : i32
    return %arg0, %arg1, %c0_i32, %c0_i32_0 : i32, i32, i32, i32
  }
}

</mosaic_0001>

<bundles_post_ra>
// kernel: aspp_forward.1
= control target key start
LH: loop header
LB: loop body
LE: loop exit
PB: predicated region body
PF: predicated region fallthrough
CT: control target
= control target key end

     0   :  { %12 = vsyncpa [#allocation5], 0  ;;  %s10679_s0 = inlined_call_operand.vmem [shape: bf16[2,16,16,128], index: 0, kind: input, shape index: {}]   ;;  %s10680_s1 = inlined_call_operand.vmem [shape: bf16[128,128], index: 1, kind: input, shape index: {}]   ;;  %s10681_s2 = inlined_call_operand.vmem [shape: bf16[2,9,128,128], index: 2, kind: input, shape index: {}]   ;;  %s10682_s3 = inlined_call_operand.vmem [shape: bf16[384,128], index: 3, kind: input, shape index: {}]   ;;  %s10683_s4 = inlined_call_operand.vmem [shape: f32[3,128], index: 4, kind: input, shape index: {}]   ;;  %s10684_s5 = inlined_call_operand.vmem [shape: f32[2,1,128], index: 5, kind: input, shape index: {}]   ;;  %s10685_s6 = inlined_call_operand.vmem [shape: f32[1,128], index: 6, kind: input, shape index: {}]   ;;  %s10686_s7 = inlined_call_operand.hbm [shape: bf16[2,16,16,128], index: 7, kind: output, shape index: {}]  }
   0x1   :  { %14 = vsyncpa [#allocation5 + $0x1], 0  ;;  %s8226_s24 = smov 0   ;;  %s8228_s25 = smov 0  }
   0x2   :  { %s8230_s26 = smov 0   ;;  %s8232_s27 = smov 0  }
   0x3   :  { %s8234_s28 = smov 0   ;;  %s8236_s29 = smov 0  }
   0x4   :  { %s8238_s30 = smov 0   ;;  %s8240_s8 = smov 0  }
   0x5 LB: > { %10694 = sst [smem:[#allocation16_spill]] %s8157_s26  ;;  %s6021_s9 = sadd.s32 4294967295, %s8177_s8   ;;  %s8177_s8 = sphi %s8240_s8, %s20_s8   ;;  %s8173_s30 = sphi %s8238_s30, %s10723_s30   ;;  %s8169_s29 = sphi %s8236_s29, %s10722_s29   ;;  %s8165_s28 = sphi %s8234_s28, %s10721_s28   ;;  %s8161_s27 = sphi %s8232_s27, %s10720_s27   ;;  %s8157_s26 = sphi %s8230_s26, %s10719_s26   ;;  %s8153_s25 = sphi %s8228_s25, %s10725_s25   ;;  %s8149_s24 = sphi %s8226_s24, %s10724_s24  }
   0x6   : > { %10695 = sst [smem:[#allocation17_spill]] %s8169_s29  ;;  %s6022_s10 = sadd.s32 4294967294, %s8177_s8  }
   0x7   : > { %10696 = sst [smem:[#allocation18_spill]] %s8173_s30  ;;  %s29_s11 = sadd.s32 1, %s8169_s29 }
   0x8   : > { %p30_p0 = scmp.ge.s32.totalorder %s29_s11, 2  ;;  %s32_s12 = sadd.s32 1, %s8173_s30 }
   0x9   : > { %p182_p1 = scmp.ne.s32.totalorder %s8157_s26, %s8153_s25  ;;  %p183_p2 = scmp.eq.s32.totalorder %s6021_s9, 3 }
   0xa   : > { %s10727_s11 = smov (%p30_p0, %s29_s11), 0  ;;  %s10729_s12 = smov (!%p30_p0, %s32_s12), %s8173_s30 }
   0xb   : > { %10697 = sst [smem:[#allocation19_spill]] %s10727_s11  ;;  %s168_s13 = ssub.s32 %s8169_s29, %s10727_s11 }
   0xc   : > { %p8277_p3 = por %p183_p2, %p182_p1  ;;  %p34_p4 = scmp.ge.s32.totalorder %s10729_s12, 2 }
   0xd   : > { %p188_p5 = scmp.ne.s32.totalorder %s8153_s25, %s8149_s24  ;;  %p189_p6 = scmp.eq.s32.totalorder %s6022_s10, 3 }
   0xe   : > { %p6025_p7 = scmp.ge.s32.totalorder %s8177_s8, 1  ;;  %s10731_s12 = smov (%p34_p4, %s10729_s12), 0 }
   0xf   : > { %10699 = sst [smem:[#allocation20_spill]] %s10731_s12  ;;  %p8286_p8 = por %p189_p6, %p188_p5 }
  0x10   : > { %p228_p9 = scmp.lt.s32.totalorder %s8177_s8, 5  ;;  %s167_s16 = ssub.s32 %s8173_s30, %s10731_s12 }
  0x11   : > { %s10700_s15 = scalar_select %p8286_p8, 1, 0 }
  0x12   : > { %s172_s17 = sadd.s32 1, %s8157_s26  ;;  %s169_s18 = sor.u32 %s168_s13, %s167_s16 }
  0x13   : > { %10701 = sst [smem:[#allocation21_spill]] %s10700_s15  ;;  %p229_p10 = pnand %p6025_p7, %p228_p9 }
  0x14   : > { %p170_p11 = scmp.eq.s32.totalorder %s169_s18, 0 }
  0x15   : > { %232 = sbr.rel (%p229_p10) target bundleno = 1419 (0x58b), region = 44 }
  0x16   : > { %s8295_s19 = scalar_select %p170_p11, %s8157_s26, %s172_s17  }
  0x18   : > { %10702 = sst [smem:[#allocation22_spill]] %s8295_s19 }
  0x1a   : > { %s10689_s20 = sand.u32 1, %s8153_s25   ;;  %p256_p12 = scmp.lt.s32.totalorder %s8165_s28, 1 }
  0x1b   : > { %s6026_s21 = sshll.u32 %s10689_s20, 6  ;;  %p261_p13 = scmp.lt.s32.totalorder %s8161_s27, 0 }
  0x1c   : > { %s262_s22 = ssub.s32 0, %s8161_s27  ;;  %s8313_s11 = scalar_lea.vmem [#allocation4], %s6026_s21 }
  0x1d   : > { %s8304_s23 = scalar_select %p256_p12, %s8165_s28, 1 }
  0x1e   : > { %s6027_s9 = smin.u32 %s8161_s27, %s262_s22  ;;  %p6030_p1 = scmp.ne.s32.totalorder %s8161_s27, 0 }
  0x1f   : > { %s264_s17 = sand.u32 1, %s6027_s9   ;;  %p6032_p2 = scmp.ne.s32.totalorder (!%p6030_p1), %s8161_s27, 1 }
  0x20   : > { %s265_s18 = ssub.s32 0, %s264_s17  ;;  %276 = sbr.rel (%p6030_p1) target bundleno = 193 (0xc1), region = 48 }
  0x21   : > { %s10733_s18 = smov (!%p261_p13, %s265_s18), %s264_s17 }
  0x22   : > { %p6029_p0 = scmp.lt.s32.totalorder %s10733_s18, 0  ;;  %s271_s12 = sadd.s32 2, %s10733_s18 }
  0x24   : > { %s10735_s12 = smov (!%p6029_p0, %s271_s12), %s10733_s18 }
  0x25   : > { %s7674_s20 = smul.u32 384, %s10735_s12  ;;  %v8179_v0 = vmov 0  }
  0x27   : > { %s8317_s30 = scalar_lea.vmem [#allocation2], %s7674_s20 }
  0x28   : > { %280 = vst [vmem:[%s8317_s30] sm:$0xf] %v8179_v0 }
  0x29   : > { %281 = vst [vmem:[%s8317_s30 + $0x4] sm:$0xf] %v8179_v0 }
  0x2a   : > { %282 = vst [vmem:[%s8317_s30 + $0x18] sm:$0xf] %v8179_v0 }
  0x2b   : > { %283 = vst [vmem:[%s8317_s30 + $0x1c] sm:$0xf] %v8179_v0 }
  0x2c   : > { %284 = vst [vmem:[%s8317_s30 + $0x30] sm:$0xf] %v8179_v0 }
  0x2d   : > { %285 = vst [vmem:[%s8317_s30 + $0x34] sm:$0xf] %v8179_v0 }
  0x2e   : > { %286 = vst [vmem:[%s8317_s30 + $0x48] sm:$0xf] %v8179_v0 }
  0x2f   : > { %287 = vst [vmem:[%s8317_s30 + $0x4c] sm:$0xf] %v8179_v0 }
  0x30   : > { %288 = vst [vmem:[%s8317_s30 + $0x60] sm:$0xf] %v8179_v0 }
  0x31   : > { %289 = vst [vmem:[%s8317_s30 + $0x64] sm:$0xf] %v8179_v0 }
  0x32   : > { %290 = vst [vmem:[%s8317_s30 + $0x78] sm:$0xf] %v8179_v0 }
  0x33   : > { %291 = vst [vmem:[%s8317_s30 + $0x7c] sm:$0xf] %v8179_v0 }
  0x34   : > { %292 = vst [vmem:[%s8317_s30 + $0x90] sm:$0xf] %v8179_v0 }
  0x35   : > { %293 = vst [vmem:[%s8317_s30 + $0x94] sm:$0xf] %v8179_v0 }
  0x36   : > { %294 = vst [vmem:[%s8317_s30 + $0xa8] sm:$0xf] %v8179_v0 }
  0x37   : > { %295 = vst [vmem:[%s8317_s30 + $0xac] sm:$0xf] %v8179_v0 }
  0x38   : > { %296 = vst [vmem:[%s8317_s30 + $0xc0] sm:$0xf] %v8179_v0 }
  0x39   : > { %297 = vst [vmem:[%s8317_s30 + $0xc4] sm:$0xf] %v8179_v0 }
  0x3a   : > { %298 = vst [vmem:[%s8317_s30 + $0xd8] sm:$0xf] %v8179_v0 }
  0x3b   : > { %299 = vst [vmem:[%s8317_s30 + $0xdc] sm:$0xf] %v8179_v0 }
  0x3c   : > { %300 = vst [vmem:[%s8317_s30 + $0xf0] sm:$0xf] %v8179_v0 }
  0x3d   : > { %301 = vst [vmem:[%s8317_s30 + $0xf4] sm:$0xf] %v8179_v0 }
  0x3e   : > { %302 = vst [vmem:[%s8317_s30 + $0x108] sm:$0xf] %v8179_v0 }
  0x3f   : > { %303 = vst [vmem:[%s8317_s30 + $0x10c] sm:$0xf] %v8179_v0 }
  0x40   : > { %304 = vst [vmem:[%s8317_s30 + $0x120] sm:$0xf] %v8179_v0 }
  0x41   : > { %305 = vst [vmem:[%s8317_s30 + $0x124] sm:$0xf] %v8179_v0 }
  0x42   : > { %306 = vst [vmem:[%s8317_s30 + $0x138] sm:$0xf] %v8179_v0 }
  0x43   : > { %307 = vst [vmem:[%s8317_s30 + $0x13c] sm:$0xf] %v8179_v0 }
  0x44   : > { %308 = vst [vmem:[%s8317_s30 + $0x150] sm:$0xf] %v8179_v0 }
  0x45   : > { %309 = vst [vmem:[%s8317_s30 + $0x154] sm:$0xf] %v8179_v0 }
  0x46   : > { %310 = vst [vmem:[%s8317_s30 + $0x168] sm:$0xf] %v8179_v0 }
  0x47   : > { %311 = vst [vmem:[%s8317_s30 + $0x16c] sm:$0xf] %v8179_v0 }
  0x48   : > { %312 = vst [vmem:[%s8317_s30 + $0x10] sm:$0xf] %v8179_v0 }
  0x49   : > { %313 = vst [vmem:[%s8317_s30 + $0x14] sm:$0xf] %v8179_v0 }
  0x4a   : > { %314 = vst [vmem:[%s8317_s30 + $0x28] sm:$0xf] %v8179_v0 }
  0x4b   : > { %315 = vst [vmem:[%s8317_s30 + $0x2c] sm:$0xf] %v8179_v0 }
  0x4c   : > { %316 = vst [vmem:[%s8317_s30 + $0x40] sm:$0xf] %v8179_v0 }
  0x4d   : > { %317 = vst [vmem:[%s8317_s30 + $0x44] sm:$0xf] %v8179_v0 }
  0x4e   : > { %318 = vst [vmem:[%s8317_s30 + $0x58] sm:$0xf] %v8179_v0 }
  0x4f   : > { %319 = vst [vmem:[%s8317_s30 + $0x5c] sm:$0xf] %v8179_v0 }
  0x50   : > { %320 = vst [vmem:[%s8317_s30 + $0x70] sm:$0xf] %v8179_v0 }
  0x51   : > { %321 = vst [vmem:[%s8317_s30 + $0x74] sm:$0xf] %v8179_v0 }
  0x52   : > { %322 = vst [vmem:[%s8317_s30 + $0x88] sm:$0xf] %v8179_v0 }
  0x53   : > { %323 = vst [vmem:[%s8317_s30 + $0x8c] sm:$0xf] %v8179_v0 }
  0x54   : > { %324 = vst [vmem:[%s8317_s30 + $0xa0] sm:$0xf] %v8179_v0 }
  0x55   : > { %325 = vst [vmem:[%s8317_s30 + $0xa4] sm:$0xf] %v8179_v0 }
  0x56   : > { %326 = vst [vmem:[%s8317_s30 + $0xb8] sm:$0xf] %v8179_v0 }
  0x57   : > { %327 = vst [vmem:[%s8317_s30 + $0xbc] sm:$0xf] %v8179_v0 }
  0x58   : > { %328 = vst [vmem:[%s8317_s30 + $0xd0] sm:$0xf] %v8179_v0 }
  0x59   : > { %329 = vst [vmem:[%s8317_s30 + $0xd4] sm:$0xf] %v8179_v0 }
  0x5a   : > { %330 = vst [vmem:[%s8317_s30 + $0xe8] sm:$0xf] %v8179_v0 }
  0x5b   : > { %331 = vst [vmem:[%s8317_s30 + $0xec] sm:$0xf] %v8179_v0 }
  0x5c   : > { %332 = vst [vmem:[%s8317_s30 + $0x100] sm:$0xf] %v8179_v0 }
  0x5d   : > { %333 = vst [vmem:[%s8317_s30 + $0x104] sm:$0xf] %v8179_v0 }
  0x5e   : > { %334 = vst [vmem:[%s8317_s30 + $0x118] sm:$0xf] %v8179_v0 }
  0x5f   : > { %335 = vst [vmem:[%s8317_s30 + $0x11c] sm:$0xf] %v8179_v0 }
  0x60   : > { %336 = vst [vmem:[%s8317_s30 + $0x130] sm:$0xf] %v8179_v0 }
  0x61   : > { %337 = vst [vmem:[%s8317_s30 + $0x134] sm:$0xf] %v8179_v0 }
  0x62   : > { %338 = vst [vmem:[%s8317_s30 + $0x148] sm:$0xf] %v8179_v0 }
  0x63   : > { %339 = vst [vmem:[%s8317_s30 + $0x14c] sm:$0xf] %v8179_v0 }
  0x64   : > { %340 = vst [vmem:[%s8317_s30 + $0x160] sm:$0xf] %v8179_v0 }
  0x65   : > { %341 = vst [vmem:[%s8317_s30 + $0x164] sm:$0xf] %v8179_v0 }
  0x66   : > { %342 = vst [vmem:[%s8317_s30 + $0x178] sm:$0xf] %v8179_v0 }
  0x67   : > { %343 = vst [vmem:[%s8317_s30 + $0x17c] sm:$0xf] %v8179_v0 }
  0x68   : > { %344 = vst [vmem:[%s8317_s30] sm:$0xf] %v8179_v0 }
  0x69   : > { %346 = vst [vmem:[%s8317_s30 + $0x8] sm:$0xf] %v8179_v0 }
  0x6a   : > { %347 = vst [vmem:[%s8317_s30 + $0xc] sm:$0xf] %v8179_v0 }
  0x6b   : > { %352 = vst [vmem:[%s8317_s30 + $0x20] sm:$0xf] %v8179_v0 }
  0x6c   : > { %353 = vst [vmem:[%s8317_s30 + $0x24] sm:$0xf] %v8179_v0 }
  0x6d   : > { %358 = vst [vmem:[%s8317_s30 + $0x38] sm:$0xf] %v8179_v0 }
  0x6e   : > { %359 = vst [vmem:[%s8317_s30 + $0x3c] sm:$0xf] %v8179_v0 }
  0x6f   : > { %364 = vst [vmem:[%s8317_s30 + $0x50] sm:$0xf] %v8179_v0 }
  0x70   : > { %365 = vst [vmem:[%s8317_s30 + $0x54] sm:$0xf] %v8179_v0 }
  0x71   : > { %345 = vst [vmem:[%s8317_s30 + $0x4] sm:$0xf] %v8179_v0 }
  0x72   : > { %348 = vst [vmem:[%s8317_s30 + $0x10] sm:$0xf] %v8179_v0 }
  0x73   : > { %349 = vst [vmem:[%s8317_s30 + $0x14] sm:$0xf] %v8179_v0 }
  0x74   : > { %350 = vst [vmem:[%s8317_s30 + $0x18] sm:$0xf] %v8179_v0 }
  0x75   : > { %351 = vst [vmem:[%s8317_s30 + $0x1c] sm:$0xf] %v8179_v0 }
  0x76   : > { %354 = vst [vmem:[%s8317_s30 + $0x28] sm:$0xf] %v8179_v0 }
  0x77   : > { %355 = vst [vmem:[%s8317_s30 + $0x2c] sm:$0xf] %v8179_v0 }
  0x78   : > { %356 = vst [vmem:[%s8317_s30 + $0x30] sm:$0xf] %v8179_v0 }
  0x79   : > { %357 = vst [vmem:[%s8317_s30 + $0x34] sm:$0xf] %v8179_v0 }
  0x7a   : > { %360 = vst [vmem:[%s8317_s30 + $0x40] sm:$0xf] %v8179_v0 }
  0x7b   : > { %361 = vst [vmem:[%s8317_s30 + $0x44] sm:$0xf] %v8179_v0  ;;  %371 = sbr.rel (%p6032_p2) target bundleno = 153 (0x99), region = 52 }
  0x7c   : > { %362 = vst [vmem:[%s8317_s30 + $0x48] sm:$0xf] %v8179_v0 }
  0x7d   : > { %363 = vst [vmem:[%s8317_s30 + $0x4c] sm:$0xf] %v8179_v0 }
  0x7e   : > { %366 = vst [vmem:[%s8317_s30 + $0x58] sm:$0xf] %v8179_v0 }
  0x7f   : > { %367 = vst [vmem:[%s8317_s30 + $0x5c] sm:$0xf] %v8179_v0 }
  0x80   : > { %v8180_v1 = vmov 0  }
  0x81   : > { %6034 = vst [vmem:[%s8317_s30 + $0x120] sm:$0xf] %v8180_v1 }
  0x82   : > { %6035 = vst [vmem:[%s8317_s30 + $0x124] sm:$0xf] %v8180_v1 }
  0x83   : > { %6036 = vst [vmem:[%s8317_s30 + $0x128] sm:$0xf] %v8180_v1 }
  0x84   : > { %6037 = vst [vmem:[%s8317_s30 + $0x12c] sm:$0xf] %v8180_v1 }
  0x85   : > { %6038 = vst [vmem:[%s8317_s30 + $0x130] sm:$0xf] %v8180_v1 }
  0x86   : > { %6039 = vst [vmem:[%s8317_s30 + $0x134] sm:$0xf] %v8180_v1 }
  0x87   : > { %6040 = vst [vmem:[%s8317_s30 + $0x138] sm:$0xf] %v8180_v1 }
  0x88   : > { %6041 = vst [vmem:[%s8317_s30 + $0x13c] sm:$0xf] %v8180_v1 }
  0x89   : > { %6042 = vst [vmem:[%s8317_s30 + $0x140] sm:$0xf] %v8180_v1 }
  0x8a   : > { %6043 = vst [vmem:[%s8317_s30 + $0x144] sm:$0xf] %v8180_v1 }
  0x8b   : > { %6044 = vst [vmem:[%s8317_s30 + $0x148] sm:$0xf] %v8180_v1 }
  0x8c   : > { %6045 = vst [vmem:[%s8317_s30 + $0x14c] sm:$0xf] %v8180_v1 }
  0x8d   : > { %6046 = vst [vmem:[%s8317_s30 + $0x150] sm:$0xf] %v8180_v1 }
  0x8e   : > { %6047 = vst [vmem:[%s8317_s30 + $0x154] sm:$0xf] %v8180_v1 }
  0x8f   : > { %6048 = vst [vmem:[%s8317_s30 + $0x158] sm:$0xf] %v8180_v1 }
  0x90   : > { %6049 = vst [vmem:[%s8317_s30 + $0x15c] sm:$0xf] %v8180_v1 }
  0x91   : > { %6050 = vst [vmem:[%s8317_s30 + $0x160] sm:$0xf] %v8180_v1 }
  0x92   : > { %6051 = vst [vmem:[%s8317_s30 + $0x164] sm:$0xf] %v8180_v1 }
  0x93   : > { %6052 = vst [vmem:[%s8317_s30 + $0x168] sm:$0xf] %v8180_v1 }
  0x94   : > { %6053 = vst [vmem:[%s8317_s30 + $0x16c] sm:$0xf] %v8180_v1 }
  0x95   : > { %6054 = vst [vmem:[%s8317_s30 + $0x170] sm:$0xf] %v8180_v1 }
  0x96   : > { %6055 = vst [vmem:[%s8317_s30 + $0x174] sm:$0xf] %v8180_v1 }
  0x97   : > { %6056 = vst [vmem:[%s8317_s30 + $0x178] sm:$0xf] %v8180_v1 }
  0x98   : > { %6057 = vst [vmem:[%s8317_s30 + $0x17c] sm:$0xf] %v8180_v1 }
  0x99 PF: > { %s6058_s20 = sshll.u32 %s8161_s27, 3  ;;  %s7675_s21 = sshll.u32 %s8161_s27, 4 }
  0x9a   : > { %s6060_s22 = sshll.u32 %s8165_s28, 5  ;;  %s408_s9 = smul.u32 3, %s10735_s12 }
  0x9b   : > { %s402_s10 = sadd.s32 %s7675_s21, %s6060_s22 }
  0x9c   : > { %s6061_s13 = sshll.u32 %s402_s10, 2  ;;  %s8545_s21 = scalar_lea.sflag [#allocation3], %s408_s9 }
  0x9d   : > { %s8527_s16 = scalar_lea.vmem %s10679_s0, %s6061_s13 }
  0x9e   : > { %v450_v2 = vld [vmem:[%s8527_s16] sm:$0xff]  ;;  %v452_v3 = vld [vmem:[%s8527_s16 + $0x8] sm:$0xff]  ;;  %v454_v4 = vld [vmem:[%s8527_s16 + $0x10] sm:$0xff] }
  0x9f   : > { %6063 = vst [vmem:[%s8317_s30 + $0x68] sm:$0xff] %v450_v2  ;;  %v456_v5 = vld [vmem:[%s8527_s16 + $0x18] sm:$0xff]  ;;  %v458_v6 = vld [vmem:[%s8527_s16 + $0x20] sm:$0xff]  ;;  %v460_v7 = vld [vmem:[%s8527_s16 + $0x28] sm:$0xff] }
  0xa0   : > { %6064 = vst [vmem:[%s8317_s30 + $0x80] sm:$0xff] %v452_v3  ;;  %v462_v8 = vld [vmem:[%s8527_s16 + $0x30] sm:$0xff]  ;;  %v464_v9 = vld [vmem:[%s8527_s16 + $0x38] sm:$0xff] }
  0xa1   : > { %6065 = vst [vmem:[%s8317_s30 + $0x98] sm:$0xff] %v454_v4 }
  0xa2   : > { %6066 = vst [vmem:[%s8317_s30 + $0xb0] sm:$0xff] %v456_v5 }
  0xa3   : > { %6067 = vst [vmem:[%s8317_s30 + $0xc8] sm:$0xff] %v458_v6 }
  0xa4   : > { %6068 = vst [vmem:[%s8317_s30 + $0xe0] sm:$0xff] %v460_v7 }
  0xa5   : > { %6069 = vst [vmem:[%s8317_s30 + $0xf8] sm:$0xff] %v462_v8 }
  0xa6   : > { %6070 = vst [vmem:[%s8317_s30 + $0x110] sm:$0xff] %v464_v9 }
  0xa7   : > { %471 = vsyncadd %s8545_s21, 1024  ;;  %p6071_p4 = scmp.le.s32.totalorder %s8161_s27, 0 }
  0xa8   : > { %s6072_s10 = sadd.s32 (!%p6071_p4), 4294967292, %s6058_s20  ;;  %s5871_s13 = scalar_lea.sflag (!%p6071_p4), %s8545_s21, 1 [#allocation3] }
  0xa9   : > { %475 = sbr.rel (%p6071_p4) target bundleno = 180 (0xb4), region = 90  ;;  %s6073_s17 = sshll.u32 (!%p6071_p4), %s6072_s10, 1 }
  0xaa   : > { %s478_s18 = sadd.s32 (!%p6071_p4), %s6073_s17, %s6060_s22 }
  0xab   : > { %s6074_s29 = sshll.u32 (!%p6071_p4), %s478_s18, 2 }
  0xac   : > { %s480_s9 = scalar_lea.vmem (!%p6071_p4), %s10679_s0, %s6074_s29 }
  0xae   : > { %v518_v10 = vld [vmem:[%s480_s9] sm:$0xff]  ;;  %v520_v11 = vld [vmem:[%s480_s9 + $0x8] sm:$0xff]  ;;  %v522_v12 = vld [vmem:[%s480_s9 + $0x10] sm:$0xff] }
  0xaf   : > { %6076 = vst [vmem:[%s8317_s30 + $0x8] sm:$0xff] %v518_v10  ;;  %v524_v13 = vld [vmem:[%s480_s9 + $0x18] sm:$0xff] }
  0xb0   : > { %6077 = vst [vmem:[%s8317_s30 + $0x20] sm:$0xff] %v520_v11 }
  0xb1   : > { %6078 = vst [vmem:[%s8317_s30 + $0x38] sm:$0xff] %v522_v12 }
  0xb2   : > { %6079 = vst [vmem:[%s8317_s30 + $0x50] sm:$0xff] %v524_v13 }
  0xb3   : > { %531 = vsyncadd %s5871_s13, 512 }
  0xb4 PF: > { %p6080_p5 = scmp.ge.s32.totalorder %s8161_s27, 1 }
  0xb5   : > { %s5884_s26 = scalar_lea.sflag (!%p6080_p5), %s8545_s21, 2 [#allocation3] }
  0xb6   : > { %535 = sbr.rel (%p6080_p5) target bundleno = 193 (0xc1), region = 128 }
  0xbb   : > { %v6085_v14 = vld [vmem:[%s8527_s16 + $0x40] sm:$0xff]  ;;  %v6087_v15 = vld [vmem:[%s8527_s16 + $0x48] sm:$0xff]  ;;  %v6089_v16 = vld [vmem:[%s8527_s16 + $0x50] sm:$0xff] }
  0xbc   : > { %6086 = vst [vmem:[%s8317_s30 + $0x128] sm:$0xff] %v6085_v14  ;;  %v6091_v17 = vld [vmem:[%s8527_s16 + $0x58] sm:$0xff] }
  0xbd   : > { %6088 = vst [vmem:[%s8317_s30 + $0x140] sm:$0xff] %v6087_v15 }
  0xbe   : > { %6090 = vst [vmem:[%s8317_s30 + $0x158] sm:$0xff] %v6089_v16 }
  0xbf   : > { %6092 = vst [vmem:[%s8317_s30 + $0x170] sm:$0xff] %v6091_v17 }
  0xc0   : > { %592 = vsyncadd %s5884_s26, 512 }
  0xc1 PF: > { %s593_s29 = smul.u32 3, %s10735_s12 }
  0xc3   : > { %s594_s19 = scalar_lea.sflag [#allocation3], %s593_s29 }
  0xc4   : > { %8133 = dma.done.wait %s594_s19, 1024 }
  0xc5   : > { %8134 = vsyncadd %s594_s19, 4294966272  ;;  %p7970_p6 = scmp.gt.s32.totalorder %s8161_s27, 0  ;;  %s5889_s20 = scalar_lea.sflag %s594_s19, 1 [#allocation3] }
  0xc7   : > { %8136 = dma.done.wait (%p7970_p6), %s5889_s20, 512 }
  0xc8   : > { %8138 = vsyncadd (%p7970_p6), %s5889_s20, 4294966784  ;;  %p7971_p7 = scmp.lt.s32.totalorder %s8161_s27, 1  ;;  %s5892_s22 = scalar_lea.sflag %s594_s19, 2 [#allocation3] }
  0xca   : > { %8140 = dma.done.wait (%p7971_p7), %s5892_s22, 512 }
  0xcb   : > { %8142 = vsyncadd (%p7971_p7), %s5892_s22, 4294966784  ;;  %s8571_s30 = sadd.s32 1, %s8161_s27 }
  0xcc   : > { %p6095_p9 = scmp.ge.s32.totalorder %s8571_s30, 2 }
  0xcd   : > { %s627_s16 = ssub.s32 (!%p6095_p9), 1, %s10735_s12  ;;  %p6097_p10 = scmp.ne.s32.totalorder (!%p6095_p9), %s8571_s30, 0 }
  0xce   : > { %626 = sbr.rel (%p6095_p9) target bundleno = 373 (0x175), region = 174 }
  0xcf   : > { %s7676_s21 = smul.u32 (!%p6095_p9), 384, %s627_s16 }
  0xd1   : > { %s8577_s10 = scalar_lea.vmem (!%p6095_p9), [#allocation2], %s7676_s21 }
  0xd3   : > { %v8181_v18 = vmov 0  }
  0xd4   : > { %631 = vst [vmem:[%s8577_s10] sm:$0xf] %v8181_v18 }
  0xd5   : > { %632 = vst [vmem:[%s8577_s10 + $0x4] sm:$0xf] %v8181_v18 }
  0xd6   : > { %633 = vst [vmem:[%s8577_s10 + $0x18] sm:$0xf] %v8181_v18 }
  0xd7   : > { %634 = vst [vmem:[%s8577_s10 + $0x1c] sm:$0xf] %v8181_v18 }
  0xd8   : > { %635 = vst [vmem:[%s8577_s10 + $0x30] sm:$0xf] %v8181_v18 }
  0xd9   : > { %636 = vst [vmem:[%s8577_s10 + $0x34] sm:$0xf] %v8181_v18 }
  0xda   : > { %637 = vst [vmem:[%s8577_s10 + $0x48] sm:$0xf] %v8181_v18 }
  0xdb   : > { %638 = vst [vmem:[%s8577_s10 + $0x4c] sm:$0xf] %v8181_v18 }
  0xdc   : > { %639 = vst [vmem:[%s8577_s10 + $0x60] sm:$0xf] %v8181_v18 }
  0xdd   : > { %640 = vst [vmem:[%s8577_s10 + $0x64] sm:$0xf] %v8181_v18 }
  0xde   : > { %641 = vst [vmem:[%s8577_s10 + $0x78] sm:$0xf] %v8181_v18 }
  0xdf   : > { %642 = vst [vmem:[%s8577_s10 + $0x7c] sm:$0xf] %v8181_v18 }
  0xe0   : > { %643 = vst [vmem:[%s8577_s10 + $0x90] sm:$0xf] %v8181_v18 }
  0xe1   : > { %644 = vst [vmem:[%s8577_s10 + $0x94] sm:$0xf] %v8181_v18 }
  0xe2   : > { %645 = vst [vmem:[%s8577_s10 + $0xa8] sm:$0xf] %v8181_v18 }
  0xe3   : > { %646 = vst [vmem:[%s8577_s10 + $0xac] sm:$0xf] %v8181_v18 }
  0xe4   : > { %647 = vst [vmem:[%s8577_s10 + $0xc0] sm:$0xf] %v8181_v18 }
  0xe5   : > { %648 = vst [vmem:[%s8577_s10 + $0xc4] sm:$0xf] %v8181_v18 }
  0xe6   : > { %649 = vst [vmem:[%s8577_s10 + $0xd8] sm:$0xf] %v8181_v18 }
  0xe7   : > { %650 = vst [vmem:[%s8577_s10 + $0xdc] sm:$0xf] %v8181_v18 }
  0xe8   : > { %651 = vst [vmem:[%s8577_s10 + $0xf0] sm:$0xf] %v8181_v18 }
  0xe9   : > { %652 = vst [vmem:[%s8577_s10 + $0xf4] sm:$0xf] %v8181_v18 }
  0xea   : > { %653 = vst [vmem:[%s8577_s10 + $0x108] sm:$0xf] %v8181_v18 }
  0xeb   : > { %654 = vst [vmem:[%s8577_s10 + $0x10c] sm:$0xf] %v8181_v18 }
  0xec   : > { %655 = vst [vmem:[%s8577_s10 + $0x120] sm:$0xf] %v8181_v18 }
  0xed   : > { %656 = vst [vmem:[%s8577_s10 + $0x124] sm:$0xf] %v8181_v18 }
  0xee   : > { %657 = vst [vmem:[%s8577_s10 + $0x138] sm:$0xf] %v8181_v18 }
  0xef   : > { %658 = vst [vmem:[%s8577_s10 + $0x13c] sm:$0xf] %v8181_v18 }
  0xf0   : > { %659 = vst [vmem:[%s8577_s10 + $0x150] sm:$0xf] %v8181_v18 }
  0xf1   : > { %660 = vst [vmem:[%s8577_s10 + $0x154] sm:$0xf] %v8181_v18 }
  0xf2   : > { %661 = vst [vmem:[%s8577_s10 + $0x168] sm:$0xf] %v8181_v18 }
  0xf3   : > { %662 = vst [vmem:[%s8577_s10 + $0x16c] sm:$0xf] %v8181_v18 }
  0xf4   : > { %663 = vst [vmem:[%s8577_s10 + $0x10] sm:$0xf] %v8181_v18 }
  0xf5   : > { %664 = vst [vmem:[%s8577_s10 + $0x14] sm:$0xf] %v8181_v18 }
  0xf6   : > { %665 = vst [vmem:[%s8577_s10 + $0x28] sm:$0xf] %v8181_v18 }
  0xf7   : > { %666 = vst [vmem:[%s8577_s10 + $0x2c] sm:$0xf] %v8181_v18 }
  0xf8   : > { %667 = vst [vmem:[%s8577_s10 + $0x40] sm:$0xf] %v8181_v18 }
  0xf9   : > { %668 = vst [vmem:[%s8577_s10 + $0x44] sm:$0xf] %v8181_v18 }
  0xfa   : > { %669 = vst [vmem:[%s8577_s10 + $0x58] sm:$0xf] %v8181_v18 }
  0xfb   : > { %670 = vst [vmem:[%s8577_s10 + $0x5c] sm:$0xf] %v8181_v18 }
  0xfc   : > { %671 = vst [vmem:[%s8577_s10 + $0x70] sm:$0xf] %v8181_v18 }
  0xfd   : > { %672 = vst [vmem:[%s8577_s10 + $0x74] sm:$0xf] %v8181_v18 }
  0xfe   : > { %673 = vst [vmem:[%s8577_s10 + $0x88] sm:$0xf] %v8181_v18 }
  0xff   : > { %674 = vst [vmem:[%s8577_s10 + $0x8c] sm:$0xf] %v8181_v18 }
 0x100   : > { %675 = vst [vmem:[%s8577_s10 + $0xa0] sm:$0xf] %v8181_v18 }
 0x101   : > { %676 = vst [vmem:[%s8577_s10 + $0xa4] sm:$0xf] %v8181_v18 }
 0x102   : > { %677 = vst [vmem:[%s8577_s10 + $0xb8] sm:$0xf] %v8181_v18 }
 0x103   : > { %678 = vst [vmem:[%s8577_s10 + $0xbc] sm:$0xf] %v8181_v18 }
 0x104   : > { %679 = vst [vmem:[%s8577_s10 + $0xd0] sm:$0xf] %v8181_v18 }
 0x105   : > { %680 = vst [vmem:[%s8577_s10 + $0xd4] sm:$0xf] %v8181_v18 }
 0x106   : > { %681 = vst [vmem:[%s8577_s10 + $0xe8] sm:$0xf] %v8181_v18 }
 0x107   : > { %682 = vst [vmem:[%s8577_s10 + $0xec] sm:$0xf] %v8181_v18 }
 0x108   : > { %683 = vst [vmem:[%s8577_s10 + $0x100] sm:$0xf] %v8181_v18 }
 0x109   : > { %684 = vst [vmem:[%s8577_s10 + $0x104] sm:$0xf] %v8181_v18 }
 0x10a   : > { %685 = vst [vmem:[%s8577_s10 + $0x118] sm:$0xf] %v8181_v18 }
 0x10b   : > { %686 = vst [vmem:[%s8577_s10 + $0x11c] sm:$0xf] %v8181_v18 }
 0x10c   : > { %687 = vst [vmem:[%s8577_s10 + $0x130] sm:$0xf] %v8181_v18 }
 0x10d   : > { %688 = vst [vmem:[%s8577_s10 + $0x134] sm:$0xf] %v8181_v18 }
 0x10e   : > { %689 = vst [vmem:[%s8577_s10 + $0x148] sm:$0xf] %v8181_v18 }
 0x10f   : > { %690 = vst [vmem:[%s8577_s10 + $0x14c] sm:$0xf] %v8181_v18  ;;  %698 = sbr.rel (%p6097_p10) target bundleno = 301 (0x12d), region = 178 }
 0x110   : > { %691 = vst [vmem:[%s8577_s10 + $0x160] sm:$0xf] %v8181_v18 }
 0x111   : > { %692 = vst [vmem:[%s8577_s10 + $0x164] sm:$0xf] %v8181_v18 }
 0x112   : > { %693 = vst [vmem:[%s8577_s10 + $0x178] sm:$0xf] %v8181_v18 }
 0x113   : > { %694 = vst [vmem:[%s8577_s10 + $0x17c] sm:$0xf] %v8181_v18 }
 0x114   : > { %v8182_v19 = vmov 0  }
 0x115   : > { %699 = vst [vmem:[%s8577_s10] sm:$0xf] %v8182_v19 }
 0x116   : > { %700 = vst [vmem:[%s8577_s10 + $0x4] sm:$0xf] %v8182_v19 }
 0x117   : > { %701 = vst [vmem:[%s8577_s10 + $0x8] sm:$0xf] %v8182_v19 }
 0x118   : > { %702 = vst [vmem:[%s8577_s10 + $0xc] sm:$0xf] %v8182_v19 }
 0x119   : > { %703 = vst [vmem:[%s8577_s10 + $0x10] sm:$0xf] %v8182_v19 }
 0x11a   : > { %704 = vst [vmem:[%s8577_s10 + $0x14] sm:$0xf] %v8182_v19 }
 0x11b   : > { %705 = vst [vmem:[%s8577_s10 + $0x18] sm:$0xf] %v8182_v19 }
 0x11c   : > { %706 = vst [vmem:[%s8577_s10 + $0x1c] sm:$0xf] %v8182_v19 }
 0x11d   : > { %707 = vst [vmem:[%s8577_s10 + $0x20] sm:$0xf] %v8182_v19 }
 0x11e   : > { %708 = vst [vmem:[%s8577_s10 + $0x24] sm:$0xf] %v8182_v19 }
 0x11f   : > { %709 = vst [vmem:[%s8577_s10 + $0x28] sm:$0xf] %v8182_v19 }
 0x120   : > { %710 = vst [vmem:[%s8577_s10 + $0x2c] sm:$0xf] %v8182_v19 }
 0x121   : > { %711 = vst [vmem:[%s8577_s10 + $0x30] sm:$0xf] %v8182_v19 }
 0x122   : > { %712 = vst [vmem:[%s8577_s10 + $0x34] sm:$0xf] %v8182_v19 }
 0x123   : > { %713 = vst [vmem:[%s8577_s10 + $0x38] sm:$0xf] %v8182_v19 }
 0x124   : > { %714 = vst [vmem:[%s8577_s10 + $0x3c] sm:$0xf] %v8182_v19 }
 0x125   : > { %715 = vst [vmem:[%s8577_s10 + $0x40] sm:$0xf] %v8182_v19 }
 0x126   : > { %716 = vst [vmem:[%s8577_s10 + $0x44] sm:$0xf] %v8182_v19 }
 0x127   : > { %717 = vst [vmem:[%s8577_s10 + $0x48] sm:$0xf] %v8182_v19 }
 0x128   : > { %718 = vst [vmem:[%s8577_s10 + $0x4c] sm:$0xf] %v8182_v19 }
 0x129   : > { %719 = vst [vmem:[%s8577_s10 + $0x50] sm:$0xf] %v8182_v19 }
 0x12a   : > { %720 = vst [vmem:[%s8577_s10 + $0x54] sm:$0xf] %v8182_v19 }
 0x12b   : > { %721 = vst [vmem:[%s8577_s10 + $0x58] sm:$0xf] %v8182_v19 }
 0x12c   : > { %722 = vst [vmem:[%s8577_s10 + $0x5c] sm:$0xf] %v8182_v19 }
 0x12d PF: > { %p6098_p11 = scmp.ne.s32.totalorder %s8571_s30, 1 }
 0x12f   : > { %726 = sbr.rel (%p6098_p11) target bundleno = 333 (0x14d), region = 182 }
 0x134   : > { %v8183_v20 = vmov 0  }
 0x135   : > { %6100 = vst [vmem:[%s8577_s10 + $0x120] sm:$0xf] %v8183_v20 }
 0x136   : > { %6101 = vst [vmem:[%s8577_s10 + $0x124] sm:$0xf] %v8183_v20 }
 0x137   : > { %6102 = vst [vmem:[%s8577_s10 + $0x128] sm:$0xf] %v8183_v20 }
 0x138   : > { %6103 = vst [vmem:[%s8577_s10 + $0x12c] sm:$0xf] %v8183_v20 }
 0x139   : > { %6104 = vst [vmem:[%s8577_s10 + $0x130] sm:$0xf] %v8183_v20 }
 0x13a   : > { %6105 = vst [vmem:[%s8577_s10 + $0x134] sm:$0xf] %v8183_v20 }
 0x13b   : > { %6106 = vst [vmem:[%s8577_s10 + $0x138] sm:$0xf] %v8183_v20 }
 0x13c   : > { %6107 = vst [vmem:[%s8577_s10 + $0x13c] sm:$0xf] %v8183_v20 }
 0x13d   : > { %6108 = vst [vmem:[%s8577_s10 + $0x140] sm:$0xf] %v8183_v20 }
 0x13e   : > { %6109 = vst [vmem:[%s8577_s10 + $0x144] sm:$0xf] %v8183_v20 }
 0x13f   : > { %6110 = vst [vmem:[%s8577_s10 + $0x148] sm:$0xf] %v8183_v20 }
 0x140   : > { %6111 = vst [vmem:[%s8577_s10 + $0x14c] sm:$0xf] %v8183_v20 }
 0x141   : > { %6112 = vst [vmem:[%s8577_s10 + $0x150] sm:$0xf] %v8183_v20 }
 0x142   : > { %6113 = vst [vmem:[%s8577_s10 + $0x154] sm:$0xf] %v8183_v20 }
 0x143   : > { %6114 = vst [vmem:[%s8577_s10 + $0x158] sm:$0xf] %v8183_v20 }
 0x144   : > { %6115 = vst [vmem:[%s8577_s10 + $0x15c] sm:$0xf] %v8183_v20 }
 0x145   : > { %6116 = vst [vmem:[%s8577_s10 + $0x160] sm:$0xf] %v8183_v20 }
 0x146   : > { %6117 = vst [vmem:[%s8577_s10 + $0x164] sm:$0xf] %v8183_v20 }
 0x147   : > { %6118 = vst [vmem:[%s8577_s10 + $0x168] sm:$0xf] %v8183_v20 }
 0x148   : > { %6119 = vst [vmem:[%s8577_s10 + $0x16c] sm:$0xf] %v8183_v20 }
 0x149   : > { %6120 = vst [vmem:[%s8577_s10 + $0x170] sm:$0xf] %v8183_v20 }
 0x14a   : > { %6121 = vst [vmem:[%s8577_s10 + $0x174] sm:$0xf] %v8183_v20 }
 0x14b   : > { %6122 = vst [vmem:[%s8577_s10 + $0x178] sm:$0xf] %v8183_v20 }
 0x14c   : > { %6123 = vst [vmem:[%s8577_s10 + $0x17c] sm:$0xf] %v8183_v20 }
 0x14d PF: > { %s7677_s13 = sshll.u32 %s8161_s27, 3  ;;  %s6125_s17 = sshll.u32 %s8165_s28, 5 }
 0x14e   : > { %s7678_s18 = sadd.s32 8, %s7677_s13  ;;  %s6126_s9 = sshll.u32 %s8161_s27, 4 }
 0x14f   : > { %s5901_s26 = sadd.s32 %s6126_s9, %s6125_s17  ;;  %s763_s29 = smul.u32 3, %s627_s16 }
 0x150   : > { %s6128_s19 = sshll.u32 %s5901_s26, 2 }
 0x151   : > { %s8767_s21 = scalar_lea.vmem %s10679_s0, %s6128_s19  ;;  %s8785_s16 = scalar_lea.sflag [#allocation3], %s763_s29 }
 0x152   : > { %v6130_v21 = vld [vmem:[%s8767_s21 + $0x40] sm:$0xff]  ;;  %v6132_v22 = vld [vmem:[%s8767_s21 + $0x48] sm:$0xff]  ;;  %v6134_v23 = vld [vmem:[%s8767_s21 + $0x50] sm:$0xff] }
 0x153   : > { %6131 = vst [vmem:[%s8577_s10 + $0x68] sm:$0xff] %v6130_v21  ;;  %v6136_v24 = vld [vmem:[%s8767_s21 + $0x58] sm:$0xff]  ;;  %v6138_v25 = vld [vmem:[%s8767_s21 + $0x60] sm:$0xff]  ;;  %v6140_v26 = vld [vmem:[%s8767_s21 + $0x68] sm:$0xff] }
 0x154   : > { %6133 = vst [vmem:[%s8577_s10 + $0x80] sm:$0xff] %v6132_v22  ;;  %v6142_v27 = vld [vmem:[%s8767_s21 + $0x70] sm:$0xff]  ;;  %v6144_v28 = vld [vmem:[%s8767_s21 + $0x78] sm:$0xff] }
 0x155   : > { %6135 = vst [vmem:[%s8577_s10 + $0x98] sm:$0xff] %v6134_v23 }
 0x156   : > { %6137 = vst [vmem:[%s8577_s10 + $0xb0] sm:$0xff] %v6136_v24 }
 0x157   : > { %6139 = vst [vmem:[%s8577_s10 + $0xc8] sm:$0xff] %v6138_v25 }
 0x158   : > { %6141 = vst [vmem:[%s8577_s10 + $0xe0] sm:$0xff] %v6140_v26 }
 0x159   : > { %6143 = vst [vmem:[%s8577_s10 + $0xf8] sm:$0xff] %v6142_v27 }
 0x15a   : > { %6145 = vst [vmem:[%s8577_s10 + $0x110] sm:$0xff] %v6144_v28 }
 0x15b   : > { %826 = vsyncadd %s8785_s16, 1024  ;;  %p6146_p12 = scmp.le.s32.totalorder %s8571_s30, 0 }
 0x15c   : > { %s6147_s13 = sadd.s32 (!%p6146_p12), 4294967292, %s7678_s18  ;;  %s5922_s9 = scalar_lea.sflag (!%p6146_p12), %s8785_s16, 1 [#allocation3] }
 0x15d   : > { %830 = sbr.rel (%p6146_p12) target bundleno = 360 (0x168), region = 220  ;;  %s6148_s26 = sshll.u32 (!%p6146_p12), %s6147_s13, 1 }
 0x15e   : > { %s833_s19 = sadd.s32 (!%p6146_p12), %s6148_s26, %s6125_s17 }
 0x15f   : > { %s6149_s20 = sshll.u32 (!%p6146_p12), %s833_s19, 2 }
 0x160   : > { %s835_s15 = scalar_lea.vmem (!%p6146_p12), %s10679_s0, %s6149_s20 }
 0x162   : > { %v873_v29 = vld [vmem:[%s835_s15] sm:$0xff]  ;;  %v875_v30 = vld [vmem:[%s835_s15 + $0x8] sm:$0xff]  ;;  %v877_v31 = vld [vmem:[%s835_s15 + $0x10] sm:$0xff] }
 0x163   : > { %6151 = vst [vmem:[%s8577_s10 + $0x8] sm:$0xff] %v873_v29  ;;  %v879_v32 = vld [vmem:[%s835_s15 + $0x18] sm:$0xff] }
 0x164   : > { %6152 = vst [vmem:[%s8577_s10 + $0x20] sm:$0xff] %v875_v30 }
 0x165   : > { %6153 = vst [vmem:[%s8577_s10 + $0x38] sm:$0xff] %v877_v31 }
 0x166   : > { %6154 = vst [vmem:[%s8577_s10 + $0x50] sm:$0xff] %v879_v32 }
 0x167   : > { %886 = vsyncadd %s5922_s9, 512 }
 0x168 PF: > { %p6155_p13 = scmp.ge.s32.totalorder %s8571_s30, 1 }
 0x169   : > { %s5935_s17 = scalar_lea.sflag (!%p6155_p13), %s8785_s16, 2 [#allocation3] }
 0x16a   : > { %890 = sbr.rel (%p6155_p13) target bundleno = 373 (0x175), region = 258 }
 0x16f   : > { %v6160_v33 = vld [vmem:[%s8767_s21 + $0x80] sm:$0xff]  ;;  %v6162_v34 = vld [vmem:[%s8767_s21 + $0x88] sm:$0xff]  ;;  %v6164_v35 = vld [vmem:[%s8767_s21 + $0x90] sm:$0xff] }
 0x170   : > { %6161 = vst [vmem:[%s8577_s10 + $0x128] sm:$0xff] %v6160_v33  ;;  %v6166_v36 = vld [vmem:[%s8767_s21 + $0x98] sm:$0xff] }
 0x171   : > { %6163 = vst [vmem:[%s8577_s10 + $0x140] sm:$0xff] %v6162_v34 }
 0x172   : > { %6165 = vst [vmem:[%s8577_s10 + $0x158] sm:$0xff] %v6164_v35 }
 0x173   : > { %6167 = vst [vmem:[%s8577_s10 + $0x170] sm:$0xff] %v6166_v36 }
 0x174   : > { %947 = vsyncadd %s5935_s17, 512 }
 0x175 PF: > { %v7694_v37 = vld [vmem:[%s10680_s1 + $0x38] sm:$0xff]  ;;  %v7693_v39 = vld [vmem:[%s10680_s1 + $0x30] sm:$0xff]  ;;  %v7692_v41 = vld [vmem:[%s10680_s1 + $0x28] sm:$0xff]  ;;  %s6168_s15 = smul.u32 384, %s10735_s12  ;;  %vm1222_vm0 = vcmask 1040384   ;;  %vm1223_vm1 = vcmask 1044484   ;;  %s10712_s20 = scalar_lea.vmem %s10684_s5, %s8304_s23 }
 0x176   : > { %v7726_v38 = vld [vmem:[%s10681_s2 + $0x78] sm:$0xff]  ;;  %7944 = vmatpush.bf16.msra.mxu2 %v7694_v37  ;;  %v7725_v40 = vld [vmem:[%s10681_s2 + $0x70] sm:$0xff]  ;;  %1082 = vmatpush.bf16.msra.mxu0 %v7694_v37  ;;  %v7724_v42 = vld [vmem:[%s10681_s2 + $0x68] sm:$0xff]  ;;  %vm1636_vm2 = vcmask 1042432   ;;  %vm1637_vm3 = vcmask 1046532   ;;  %vm3518_vm6 = vcmask 1041408  }
 0x177   : > { %7952 = vmatpush.bf16.msra.mxu3 %v7726_v38  ;;  %1410 = vmatpush.bf16.msra.mxu1 %v7726_v38  ;;  %v7691_v43 = vld [vmem:[%s10680_s1 + $0x20] sm:$0xff]  ;;  %v7690_v45 = vld [vmem:[%s10680_s1 + $0x18] sm:$0xff]  ;;  %v7689_v47 = vld [vmem:[%s10680_s1 + $0x10] sm:$0xff]  ;;  %s8864_s10 = scalar_lea.vmem [#allocation2], %s6168_s15  ;;  %vm3519_vm7 = vcmask 1045508   ;;  %s7896_s23 = sshll.u32 %s8161_s27, 4 }
 0x178   : > { %v7723_v44 = vld [vmem:[%s10681_s2 + $0x60] sm:$0xff]  ;;  %v7722_v46 = vld [vmem:[%s10681_s2 + $0x58] sm:$0xff]  ;;  %v7721_v48 = vld [vmem:[%s10681_s2 + $0x50] sm:$0xff]  ;;  %s7664_s17 = sshll.u32 %s8165_s28, 5  ;;  %s5769_s27 = sshll.u32 %s8313_s11, 4  ;;  %s5770_s27 = int_to_ptr.vmem [resolvable:$true] %s5769_s27 }
 0x179   : > { %v7688_v49 = vld [vmem:[%s10680_s1 + $0x8] sm:$0xff]  ;;  %v7687_v51 = vld [vmem:[%s10680_s1] sm:$0xff]  ;;  %v7710_v53 = vld [vmem:[%s10681_s2 + $0x38] sm:$0xff]  ;;  %s5766_s15 = sadd.s32 %s7896_s23, %s7664_s17 }
 0x17a   : > { %7945 = vmatpush.bf16.msra.mxu2 %v7693_v39  ;;  %1083 = vmatpush.bf16.msra.mxu0 %v7693_v39  ;;  %v7720_v50 = vld [vmem:[%s10681_s2 + $0x48] sm:$0xff]  ;;  %v7719_v52 = vld [vmem:[%s10681_s2 + $0x40] sm:$0xff]  ;;  %v7734_v54 = vld [vmem:[%s10681_s2 + $0xb8] sm:$0xff]  ;;  %s7665_s30 = sshll.u32 %s5766_s15, 2 }
 0x17b   : > { %7953 = vmatpush.bf16.msra.mxu3 %v7725_v40  ;;  %1411 = vmatpush.bf16.msra.mxu1 %v7725_v40  ;;  %v8867_v55 = vld [vmem:[%s8864_s10 + $0xc8] sm:$0xff]  ;;  %v7715_v56 = vld [vmem:[%s8864_s10 + $0x98] sm:$0xff]  ;;  %v7709_v60 = vld [vmem:[%s10681_s2 + $0x30] sm:$0xff]  ;;  %s5768_s16 = scalar_lea.hbm %s10686_s7, %s7665_s30 }
 0x17c   : > { %v8871_v57 = vld [vmem:[%s8864_s10 + $0x68] sm:$0xff]  ;;  %v7750_v58 = vld [vmem:[%s10681_s2 + $0x138] sm:$0xff]  ;;  %v7733_v61 = vld [vmem:[%s10681_s2 + $0xb0] sm:$0xff]  ;;  %s5771_s28 = sshll.u32 %s5768_s16, 4  ;;  %s5772_s28 = int_to_ptr.hbm [resolvable:$true] %s5771_s28 }
 0x17d   : > { %v7711_v59 = vld [vmem:[%s8864_s10 + $0x38] sm:$0xff]  ;;  %v7749_v63 = vld [vmem:[%s10681_s2 + $0x130] sm:$0xff]  ;;  %v7708_v0 = vld [vmem:[%s10681_s2 + $0x28] sm:$0xff]  ;;  %s8087_s21 = sshra.s32 %s5772_s28, 4  ;;  %s8088_s21 = int_to_ptr.hbm [resolvable:$true] %s8087_s21 }
 0x17e   : > { %7946 = vmatpush.bf16.msra.mxu2 %v7692_v41  ;;  %1084 = vmatpush.bf16.msra.mxu0 %v7692_v41  ;;  %v7742_v62 = vld [vmem:[%s10681_s2 + $0xf8] sm:$0xff]  ;;  %v7732_v1 = vld [vmem:[%s10681_s2 + $0xa8] sm:$0xff]  ;;  %v7741_v2 = vld [vmem:[%s10681_s2 + $0xf0] sm:$0xff]  ;;  %s8089_s26 = scalar_lea.hbm %s8088_s21, 64  ;;  %p8094_p4 = scmp.lt.s32.totalorder %s8088_s21, %s10686_s7 }
 0x17f   : > { %7954 = vmatpush.bf16.msra.mxu3 %v7724_v42  ;;  %1412 = vmatpush.bf16.msra.mxu1 %v7724_v42  ;;  %v7748_v3 = vld [vmem:[%s10681_s2 + $0x128] sm:$0xff]  ;;  %v7707_v4 = vld [vmem:[%s10681_s2 + $0x20] sm:$0xff]  ;;  %v7706_v8 = vld [vmem:[%s10681_s2 + $0x18] sm:$0xff]  ;;  %p8090_p0 = scmp.ne.s32.totalorder %s8088_s21, %s8089_s26 }
 0x180   : > { %v7731_v5 = vld [vmem:[%s10681_s2 + $0xa0] sm:$0xff]  ;;  %v7740_v6 = vld [vmem:[%s10681_s2 + $0xe8] sm:$0xff]  ;;  %v7730_v9 = vld [vmem:[%s10681_s2 + $0x98] sm:$0xff] }
 0x181   : > { %v7747_v7 = vld [vmem:[%s10681_s2 + $0x120] sm:$0xff]  ;;  %v7716_v12 = vld [vmem:[%s8864_s10 + $0xb0] sm:$0xff]  ;;  %v7746_v14 = vld [vmem:[%s10681_s2 + $0x118] sm:$0xff]  ;;  %p8091_p1 = pnand %p8090_p0, %p8277_p3 }
 0x182   : > { %7947 = vmatpush.bf16.msra.mxu2 %v7691_v43  ;;  %1085 = vmatpush.bf16.msra.mxu0 %v7691_v43  ;;  %v7739_v10 = vld [vmem:[%s10681_s2 + $0xe0] sm:$0xff]  ;;  %v7712_v15 = vld [vmem:[%s8864_s10 + $0x50] sm:$0xff]  ;;  %v7738_v18 = vld [vmem:[%s10681_s2 + $0xd8] sm:$0xff] }
 0x183   : > { %7955 = vmatpush.bf16.msra.mxu3 %v7723_v44  ;;  %1413 = vmatpush.bf16.msra.mxu1 %v7723_v44  ;;  %v8925_v11 = vld [vmem:[%s8864_s10 + $0xe0] sm:$0xff]  ;;  %v7705_v16 = vld [vmem:[%s10681_s2 + $0x10] sm:$0xff]  ;;  %v7704_v19 = vld [vmem:[%s10681_s2 + $0x8] sm:$0xff]  ;;  %p8092_p2 = pneg %p8091_p1 }
 0x184   : > { %v8929_v13 = vld [vmem:[%s8864_s10 + $0x80] sm:$0xff]  ;;  %v7729_v17 = vld [vmem:[%s10681_s2 + $0x90] sm:$0xff]  ;;  %v7728_v21 = vld [vmem:[%s10681_s2 + $0x88] sm:$0xff] }
 0x185   : > { %v7745_v20 = vld [vmem:[%s10681_s2 + $0x110] sm:$0xff]  ;;  %v7744_v23 = vld [vmem:[%s10681_s2 + $0x108] sm:$0xff]  ;;  %v7703_v24 = vld [vmem:[%s10681_s2] sm:$0xff] }
 0x186   : > { %7948 = vmatpush.bf16.msra.mxu2 %v7690_v45  ;;  %1086 = vmatpush.bf16.msra.mxu0 %v7690_v45  ;;  %v7737_v22 = vld [vmem:[%s10681_s2 + $0xd0] sm:$0xff]  ;;  %v7727_v25 = vld [vmem:[%s10681_s2 + $0x80] sm:$0xff]  ;;  %v7736_v26 = vld [vmem:[%s10681_s2 + $0xc8] sm:$0xff] }
 0x187   : > { %7956 = vmatpush.bf16.msra.mxu3 %v7722_v46  ;;  %1414 = vmatpush.bf16.msra.mxu1 %v7722_v46  ;;  %v7735_v27 = vld [vmem:[%s10681_s2 + $0xc0] sm:$0xff]  ;;  %v8974_v28 = vld [vmem:[%s8864_s10 + $0xf8] sm:$0xff]  ;;  %v7717_v29 = vld [vmem:[%s8864_s10 + $0xc8] sm:$0xff] }
 0x188   : > { %v8978_v30 = vld [vmem:[%s8864_s10 + $0x98] sm:$0xff]  ;;  %v7713_v31 = vld [vmem:[%s8864_s10 + $0x68] sm:$0xff]  ;;  %v7743_v32 = vld [vmem:[%s10681_s2 + $0x100] sm:$0xff] }
 0x189   : > { %v7758_v33 = vld [vmem:[%s10681_s2 + $0x178] sm:$0xff]  ;;  %v9001_v39 = vld [vmem:[%s8864_s10 + $0x110] sm:$0xff]  ;;  %v6169_v40 = vld [vmem:[%s8864_s10 + $0x68] sm:$0xf] }
 0x18a   : > { %7949 = vmatpush.bf16.msra.mxu2 %v7689_v47  ;;  %1087 = vmatpush.bf16.msra.mxu0 %v7689_v47  ;;  %v7766_v34 = vld [vmem:[%s10681_s2 + $0x1b8] sm:$0xff]  ;;  %v7718_v41 = vld [vmem:[%s8864_s10 + $0xe0] sm:$0xff]  ;;  %v9006_v42 = vld [vmem:[%s8864_s10 + $0xb0] sm:$0xff] }
 0x18b   : > { %7957 = vmatpush.bf16.msra.mxu3 %v7721_v48  ;;  %1415 = vmatpush.bf16.msra.mxu1 %v7721_v48  ;;  %v7782_v35 = vld [vmem:[%s10681_s2 + $0x1f8] sm:$0xff]  ;;  %v7714_v43 = vld [vmem:[%s8864_s10 + $0x80] sm:$0xff]  ;;  %v6250_v44 = vld [vmem:[%s8864_s10 + $0x34] sm:$0x8] }
 0x18c   : > { %v7790_v36 = vld [vmem:[%s10681_s2 + $0x238] sm:$0xff]  ;;  %vm9021_vm4 = vmor %vm1222_vm0, %vm1223_vm1 }
 0x18d   : > { %v6251_v37 = vld [vmem:[%s8864_s10 + $0x38] sm:$0xf]  ;;  %v6403_v38 = vld [vmem:[%s8864_s10 + $0x3c] sm:$0xf]  ;;  %vm9030_vm5 = vmor %vm1636_vm2, %vm1637_vm3 }
 0x18e   : > { %7950 = vmatpush.bf16.msra.mxu2 %v7688_v49  ;;  %1088 = vmatpush.bf16.msra.mxu0 %v7688_v49  ;;  %v6252_v45 = vld [vmem:[%s8864_s10 + $0x3c] sm:$0x7]  ;;  %v1227_v46 = vrot.slane %v6251_v37, 7  ;;  %v1641_v47 = vrot.slane %v6403_v38, 5  ;;  %v6402_v48 = vld [vmem:[%s8864_s10 + $0x38] sm:$0xe]  ;;  %vm9660_vm8 = vmor %vm3518_vm6, %vm3519_vm7 }
 0x18f   : > { %7958 = vmatpush.bf16.msra.mxu3 %v7720_v50  ;;  %1416 = vmatpush.bf16.msra.mxu1 %v7720_v50  ;;  %v6404_v49 = vld [vmem:[%s8864_s10 + $0x40] sm:$0x1]  ;;  %v1891_v50 = vrot.slane %v6169_v40, 7  ;;  %v7756_v40 = vld [vmem:[%s10681_s2 + $0x168] sm:$0xff] }
 0x192   : > { %7951 = vmatpush.bf16.msra.mxu2 %v7687_v51  ;;  %1089 = vmatpush.bf16.msra.mxu0 %v7687_v51  ;;  %v6482_v51 = vld [vmem:[%s8864_s10 + $0x64] sm:$0x8] }
 0x193   : > { %7959 = vmatpush.bf16.msra.mxu3 %v7719_v52  ;;  %1417 = vmatpush.bf16.msra.mxu1 %v7719_v52  ;;  %v6483_v52 = vld [vmem:[%s8864_s10 + $0x6c] sm:$0x7] }
 0x195   : > { %1110 = vmatmul.bf16.vlgmr.msra.gmra.mxu2 %v8867_v55  ;;  %1090 = vmatmul.bf16.vlgmr.msra.gmra.mxu0 %v8871_v57 }
 0x196   : > { %1539 = vmatpush.bf16.msrb.mxu2 %v7710_v53  ;;  %1438 = vmatmul.bf16.vlgmr.msra.gmra.mxu3 %v7715_v56  ;;  %v6274_v53 = vrot.slane %v6250_v44, 11  ;;  %v7757_v56 = vld [vmem:[%s10681_s2 + $0x170] sm:$0xff] }
 0x197   : > { %1792 = vmatpush.bf16.msrb.mxu3 %v7734_v54  ;;  %2172 = vmatpush.bf16.msrb.mxu1 %v7750_v58  ;;  %v1230_v54 = vrot.slane %v6252_v45, 7 }
 0x198   : > { %1418 = vmatmul.bf16.vlgmr.msra.gmra.mxu1 %v7711_v59  ;;  %2042 = vmatpush.bf16.msrb.mxu0 %v7742_v62  ;;  %v1229_v59 = vrot.slane %v1227_v46, 4  ;;  %v1644_v62 = vrot.slane %v6404_v49, 5 }
 0x19a   : > { %1540 = vmatpush.bf16.msrb.mxu2 %v7709_v60  ;;  %v6426_v60 = vrot.slane %v6402_v48, 9 }
 0x19b   : > { %1793 = vmatpush.bf16.msrb.mxu3 %v7733_v61  ;;  %2173 = vmatpush.bf16.msrb.mxu1 %v7749_v63  ;;  %v1643_v61 = vrot.slane %v1641_v47, 4  ;;  %v7765_v63 = vld [vmem:[%s10681_s2 + $0x1b0] sm:$0xff] }
 0x19c   : > { %2043 = vmatpush.bf16.msrb.mxu0 %v7741_v2  ;;  %v1893_v2 = vrot.slane %v1891_v50, 4 }
 0x19e   : > { %1541 = vmatpush.bf16.msrb.mxu2 %v7708_v0  ;;  %v7803_v0 = vld [vmem:[%s10681_s2 + $0x258] sm:$0xff] }
 0x19f   : > { %1794 = vmatpush.bf16.msrb.mxu3 %v7732_v1  ;;  %2174 = vmatpush.bf16.msrb.mxu1 %v7748_v3  ;;  %v6498_v1 = vrot.slane %v6482_v51, 11  ;;  %v1894_v3 = vrot.slane %v6483_v52, 7  ;;  %v7788_v51 = vld [vmem:[%s10681_s2 + $0x228] sm:$0xff] }
 0x1a0   : > { %2044 = vmatpush.bf16.msrb.mxu0 %v7740_v6  ;;  %v1228_v6 = vsel %vm9021_vm4, %v6274_v53, %v1227_v46  ;;  %v7764_v46 = vld [vmem:[%s10681_s2 + $0x1a8] sm:$0xff] }
 0x1a2   : > { %1542 = vmatpush.bf16.msrb.mxu2 %v7707_v4  ;;  %v7781_v4 = vld [vmem:[%s10681_s2 + $0x1f0] sm:$0xff] }
 0x1a3   : > { %1795 = vmatpush.bf16.msrb.mxu3 %v7731_v5  ;;  %2175 = vmatpush.bf16.msrb.mxu1 %v7747_v7  ;;  %v7789_v5 = vld [vmem:[%s10681_s2 + $0x230] sm:$0xff]  ;;  %v1231_v7 = vsel %vm9021_vm4, %v1229_v59, %v1230_v54 }
 0x1a4   : > { %2045 = vmatpush.bf16.msrb.mxu0 %v7739_v10  ;;  %v1892_v10 = vsel %vm9021_vm4, %v6498_v1, %v1891_v50  ;;  %v7780_v50 = vld [vmem:[%s10681_s2 + $0x1e8] sm:$0xff] }
 0x1a5   : > { %1115 = vmatmul.bf16.gmra.mxu2 %v8925_v11  ;;  %1095 = vmatmul.bf16.gmra.mxu0 %v8929_v13 }
 0x1a6   : > { %1543 = vmatpush.bf16.msrb.mxu2 %v7706_v8  ;;  %1443 = vmatmul.bf16.gmra.mxu3 %v7716_v12  ;;  %v1642_v8 = vsel %vm9030_vm5, %v6426_v60, %v1641_v47  ;;  %v1895_v12 = vsel %vm9021_vm4, %v1893_v2, %v1894_v3  ;;  %v6257_v3 = vld [vmem:[%s8864_s10 + $0x68] sm:$0xf] }
 0x1a7   : > { %1796 = vmatpush.bf16.msrb.mxu3 %v7730_v9  ;;  %2176 = vmatpush.bf16.msrb.mxu1 %v7746_v14  ;;  %v1645_v9 = vsel %vm9030_vm5, %v1643_v61, %v1644_v62  ;;  %v1459_v14 = vunpack.c.l.b16 %v1228_v6 }
 0x1a8   : > { %1423 = vmatmul.bf16.gmra.mxu1 %v7712_v15  ;;  %2046 = vmatpush.bf16.msrb.mxu0 %v7738_v18  ;;  %v1460_v15 = vunpack.c.l.b16 %v1231_v7  ;;  %v1962_v18 = vunpack.c.l.b16 %v1892_v10  ;;  %v6258_v10 = vld [vmem:[%s8864_s10 + $0x6c] sm:$0x7] }
 0x1aa   : > { %1544 = vmatpush.bf16.msrb.mxu2 %v7705_v16  ;;  %v1712_v16 = vunpack.c.l.b16 %v1642_v8 }
 0x1ab   : > { %1797 = vmatpush.bf16.msrb.mxu3 %v7729_v17  ;;  %2177 = vmatpush.bf16.msrb.mxu1 %v7745_v20  ;;  %v1713_v17 = vunpack.c.l.b16 %v1645_v9  ;;  %v6254_v20 = vld [vmem:[%s8864_s10 + $0x50] sm:$0xf]  ;;  %v6256_v9 = vld [vmem:[%s8864_s10 + $0x64] sm:$0x8] }
 0x1ac   : > { %2047 = vmatpush.bf16.msrb.mxu0 %v7737_v22  ;;  %v6171_v22 = vld [vmem:[%s8864_s10 + $0x80] sm:$0xf] }
 0x1ae   : > { %1545 = vmatpush.bf16.msrb.mxu2 %v7704_v19  ;;  %v1963_v19 = vunpack.c.l.b16 %v1895_v12  ;;  %v1241_v12 = vrot.slane %v6257_v3, 7 }
 0x1af   : > { %1798 = vmatpush.bf16.msrb.mxu3 %v7728_v21  ;;  %2178 = vmatpush.bf16.msrb.mxu1 %v7744_v23  ;;  %v6406_v21 = vld [vmem:[%s8864_s10 + $0x54] sm:$0xf]  ;;  %v1475_v23 = vpack.c.b16 %v1460_v15, %v1459_v14  ;;  %v6408_v15 = vld [vmem:[%s8864_s10 + $0x68] sm:$0xe] }
 0x1b0   : > { %2048 = vmatpush.bf16.msrb.mxu0 %v7736_v26  ;;  %v6253_v26 = vld [vmem:[%s8864_s10 + $0x4c] sm:$0x8] }
 0x1b1   : > { %v6275_v37 = vrot.slane %v6253_v26, 11 }
 0x1b2   : > { %1546 = vmatpush.bf16.msrb.mxu2 %v7703_v24  ;;  %v1728_v24 = vpack.c.b16 %v1713_v17, %v1712_v16  ;;  %v6410_v16 = vld [vmem:[%s8864_s10 + $0x70] sm:$0x1] }
 0x1b3   : > { %1799 = vmatpush.bf16.msrb.mxu3 %v7727_v25  ;;  %2179 = vmatpush.bf16.msrb.mxu1 %v7743_v32  ;;  %v1978_v25 = vpack.c.b16 %v1963_v19, %v1962_v18  ;;  %v6405_v32 = vld [vmem:[%s8864_s10 + $0x50] sm:$0xe]  ;;  %v6486_v18 = vld [vmem:[%s8864_s10 + $0x94] sm:$0x8]  ;;  %v6487_v19 = vld [vmem:[%s8864_s10 + $0x9c] sm:$0x7] }
 0x1b4   : > { %2049 = vmatpush.bf16.msrb.mxu0 %v7735_v27  ;;  %v6255_v27 = vld [vmem:[%s8864_s10 + $0x54] sm:$0x7]  ;;  %v1658_v26 = vrot.slane %v6410_v16, 5 }
 0x1b5   : > { %1120 = vmatmul.bf16.gmra.mxu2 %v8974_v28  ;;  %1100 = vmatmul.bf16.gmra.mxu0 %v8978_v30  ;;  %v1237_v38 = vrot.slane %v6255_v27, 7  ;;  %v7763_v27 = vld [vmem:[%s10681_s2 + $0x1a0] sm:$0xff] }
 0x1b6   : > { %1448 = vmatmul.bf16.gmra.mxu3 %v7717_v29  ;;  %2438 = vmatpush.bf16.msra.mxu2 %v7758_v33  ;;  %v1234_v29 = vrot.slane %v6254_v20, 7  ;;  %v6407_v33 = vld [vmem:[%s8864_s10 + $0x58] sm:$0x1]  ;;  %v6276_v20 = vrot.slane %v6256_v9, 11 }
 0x1b7   : > { %2707 = vmatpush.bf16.msra.mxu3 %v7766_v34  ;;  %3151 = vmatpush.bf16.msra.mxu1 %v7790_v36  ;;  %v1898_v34 = vrot.slane %v6171_v22, 7  ;;  %v6485_v36 = vld [vmem:[%s8864_s10 + $0x84] sm:$0x7]  ;;  %v1651_v45 = vrot.slane %v6407_v33, 5  ;;  %v7762_v9 = vld [vmem:[%s10681_s2 + $0x198] sm:$0xff] }
 0x1b8   : > { %1428 = vmatmul.bf16.gmra.mxu1 %v7713_v31  ;;  %2885 = vmatpush.bf16.msra.mxu0 %v7782_v35  ;;  %v1648_v31 = vrot.slane %v6406_v21, 5  ;;  %v6484_v35 = vld [vmem:[%s8864_s10 + $0x7c] sm:$0x8]  ;;  %v1901_v49 = vrot.slane %v6485_v36, 7  ;;  %v1244_v21 = vrot.slane %v6258_v10, 7  ;;  %v7755_v22 = vld [vmem:[%s10681_s2 + $0x160] sm:$0xff] }
 0x1b9   : > { %v6499_v47 = vrot.slane %v6484_v35, 11  ;;  %v1900_v48 = vrot.slane %v1898_v34, 4  ;;  %v7779_v33 = vld [vmem:[%s10681_s2 + $0x1e0] sm:$0xff] }
 0x1ba   : > { %2439 = vmatpush.bf16.msra.mxu2 %v7757_v56  ;;  %v1650_v44 = vrot.slane %v1648_v31, 4 }
 0x1bb   : > { %2708 = vmatpush.bf16.msra.mxu3 %v7765_v63  ;;  %3152 = vmatpush.bf16.msra.mxu1 %v7789_v5  ;;  %v1899_v56 = vsel %vm9021_vm4, %v6499_v47, %v1898_v34  ;;  %v1902_v59 = vsel %vm9021_vm4, %v1900_v48, %v1901_v49  ;;  %v6173_v5 = vld [vmem:[%s8864_s10 + $0x98] sm:$0xf]  ;;  %v7787_v34 = vld [vmem:[%s10681_s2 + $0x220] sm:$0xff] }
 0x1bc   : > { %2886 = vmatpush.bf16.msra.mxu0 %v7781_v4  ;;  %v1652_v54 = vsel %vm9030_vm5, %v1650_v44, %v1651_v45  ;;  %v1964_v1 = vunpack.c.l.b16 %v1899_v56  ;;  %v1965_v2 = vunpack.c.l.b16 %v1902_v59  ;;  %v6409_v4 = vld [vmem:[%s8864_s10 + $0x6c] sm:$0xf]  ;;  %v1905_v17 = vrot.slane %v6173_v5, 7  ;;  %v6260_v48 = vld [vmem:[%s8864_s10 + $0x80] sm:$0xf] }
 0x1bd   : > { %v1715_v63 = vunpack.c.l.b16 %v1652_v54  ;;  %v1655_v14 = vrot.slane %v6409_v4, 5  ;;  %v6412_v49 = vld [vmem:[%s8864_s10 + $0x84] sm:$0xf]  ;;  %v1248_v56 = vrot.slane %v6260_v48, 7 }
 0x1be   : > { %2440 = vmatpush.bf16.msra.mxu2 %v7756_v40  ;;  %v1979_v8 = vpack.c.b16 %v1965_v2, %v1964_v1  ;;  %v6261_v54 = vld [vmem:[%s8864_s10 + $0x84] sm:$0x7]  ;;  %v1662_v59 = vrot.slane %v6412_v49, 5  ;;  %v6489_v1 = vld [vmem:[%s8864_s10 + $0xb4] sm:$0x7] }
 0x1bf   : > { %2709 = vmatpush.bf16.msra.mxu3 %v7764_v46  ;;  %3153 = vmatpush.bf16.msra.mxu1 %v7788_v51  ;;  %v1251_v3 = vrot.slane %v6261_v54, 7  ;;  %v1250_v4 = vrot.slane %v1248_v56, 4 }
 0x1c0   : > { %2887 = vmatpush.bf16.msra.mxu0 %v7780_v50  ;;  %v6175_v50 = vld [vmem:[%s8864_s10 + $0xb0] sm:$0xf] }
 0x1c1   : > { %v1252_v16 = vsel %vm9021_vm4, %v1250_v4, %v1251_v3 }
 0x1c2   : > { %2441 = vmatpush.bf16.msra.mxu2 %v7755_v22 }
 0x1c3   : > { %2710 = vmatpush.bf16.msra.mxu3 %v7763_v27  ;;  %3154 = vmatpush.bf16.msra.mxu1 %v7787_v34  ;;  %v6415_v27 = vld [vmem:[%s8864_s10 + $0x9c] sm:$0xf] }
 0x1c4   : > { %2888 = vmatpush.bf16.msra.mxu0 %v7779_v33 }
 0x1c5   : > { %1125 = vmatmul.bf16.gmra.mxu2 %v9001_v39  ;;  %1105 = vmatmul.bf16.gmra.mxu0 %v9006_v42 }
 0x1c6   : > { %1453 = vmatmul.bf16.gmra.mxu3 %v7718_v41  ;;  %v1236_v41 = vrot.slane %v1234_v29, 4 }
 0x1c7   : > { %2711 = vmatpush.bf16.msra.mxu3 %v7762_v9  ;;  %v6418_v9 = vld [vmem:[%s8864_s10 + $0xb4] sm:$0xf] }
 0x1c8   : > { %1433 = vmatmul.bf16.gmra.mxu1 %v7714_v43  ;;  %v6427_v43 = vrot.slane %v6405_v32, 9  ;;  %v1238_v52 = vsel %vm9021_vm4, %v1236_v41, %v1237_v38  ;;  %v1908_v32 = vrot.slane %v6487_v19, 7 }
 0x1c9   : > { %v1462_v61 = vunpack.c.l.b16 %v1238_v52 }
 0x1ca   : > { %v1649_v53 = vsel %vm9030_vm5, %v6427_v43, %v1648_v31  ;;  %v1907_v31 = vrot.slane %v1905_v17, 4 }
 0x1cb   : > { %v1714_v62 = vunpack.c.l.b16 %v1649_v53  ;;  %v6259_v53 = vld [vmem:[%s8864_s10 + $0x7c] sm:$0x8] }
 0x1cc   : > { %v1909_v40 = vsel %vm9021_vm4, %v1907_v31, %v1908_v32  ;;  %v6277_v2 = vrot.slane %v6259_v53, 11  ;;  %v7778_v31 = vld [vmem:[%s10681_s2 + $0x1d8] sm:$0xff] }
 0x1cd   : > { %v1729_v7 = vpack.c.b16 %v1715_v63, %v1714_v62  ;;  %v1967_v47 = vunpack.c.l.b16 %v1909_v40  ;;  %v1912_v62 = vrot.slane %v6175_v50, 7  ;;  %v6488_v63 = vld [vmem:[%s8864_s10 + $0xac] sm:$0x8]  ;;  %2889 = vmatpush.bf16.msra.mxu0 %v7778_v31  ;;  %v6416_v40 = vld [vmem:[%s8864_s10 + $0xa0] sm:$0x1] }
 0x1ce   : > { %v6501_v10 = vrot.slane %v6488_v63, 11 }
 0x1d5   : > { %1547 = vmatmul.bf16.vlgmr.msrb.gmra.mxu2 %v1475_v23  ;;  %2050 = vmatmul.bf16.vlgmr.msrb.gmra.mxu0 %v1978_v25  ;;  %v1243_v23 = vrot.slane %v1241_v12, 4  ;;  %v1657_v25 = vrot.slane %v1655_v14, 4 }
 0x1d6   : > { %1800 = vmatmul.bf16.vlgmr.msrb.gmra.mxu3 %v1728_v24  ;;  %v6428_v24 = vrot.slane %v6408_v15, 9  ;;  %v1249_v15 = vsel %vm9021_vm4, %v6277_v2, %v1248_v56 }
 0x1d7   : > { %v1245_v35 = vsel %vm9021_vm4, %v1243_v23, %v1244_v21  ;;  %v1466_v21 = vunpack.c.l.b16 %v1252_v16 }
 0x1d8   : > { %2180 = vmatmul.bf16.vlgmr.msrb.gmra.mxu1 %v8871_v57  ;;  %v1235_v57 = vsel %vm9021_vm4, %v6275_v37, %v1234_v29  ;;  %v6500_v29 = vrot.slane %v6486_v18, 11  ;;  %v1656_v36 = vsel %vm9030_vm5, %v6428_v24, %v1655_v14  ;;  %v1659_v37 = vsel %vm9030_vm5, %v1657_v25, %v1658_v26  ;;  %v6263_v26 = vld [vmem:[%s8864_s10 + $0x98] sm:$0xf] }
 0x1d9   : > { %v1461_v60 = vunpack.c.l.b16 %v1235_v57  ;;  %v1464_v43 = vunpack.c.l.b16 %v1245_v35  ;;  %v1716_v44 = vunpack.c.l.b16 %v1656_v36  ;;  %v1717_v45 = vunpack.c.l.b16 %v1659_v37  ;;  %v6262_v35 = vld [vmem:[%s8864_s10 + $0x94] sm:$0x8]  ;;  %v6264_v36 = vld [vmem:[%s8864_s10 + $0x9c] sm:$0x7] }
 0x1da   : > { %v1906_v38 = vsel %vm9021_vm4, %v6500_v29, %v1905_v17  ;;  %v1915_v14 = vrot.slane %v6489_v1, 7  ;;  %v1913_v18 = vsel %vm9021_vm4, %v6501_v10, %v1912_v62  ;;  %v6177_v29 = vld [vmem:[%s8864_s10 + $0xc8] sm:$0xf]  ;;  %v1255_v34 = vrot.slane %v6263_v26, 7  ;;  %v6179_v10 = vld [vmem:[%s8864_s10 + $0xe0] sm:$0xf] }
 0x1db   : > { %v1476_v6 = vpack.c.b16 %v1462_v61, %v1461_v60  ;;  %v1966_v46 = vunpack.c.l.b16 %v1906_v38  ;;  %v1730_v57 = vpack.c.b16 %v1717_v45, %v1716_v44  ;;  %v6411_v60 = vld [vmem:[%s8864_s10 + $0x80] sm:$0xe]  ;;  %v6413_v61 = vld [vmem:[%s8864_s10 + $0x88] sm:$0x1]  ;;  %v1968_v24 = vunpack.c.l.b16 %v1913_v18  ;;  %v6414_v38 = vld [vmem:[%s8864_s10 + $0x98] sm:$0xe] }
 0x1dc   : > { %v6429_v5 = vrot.slane %v6411_v60, 9  ;;  %v1669_v37 = vrot.slane %v6415_v27, 5  ;;  %v6490_v44 = vld [vmem:[%s8864_s10 + $0xc4] sm:$0x8]  ;;  %v6491_v45 = vld [vmem:[%s8864_s10 + $0xcc] sm:$0x7] }
 0x1dd   : > { %v1980_v52 = vpack.c.b16 %v1967_v47, %v1966_v46  ;;  %v6278_v46 = vrot.slane %v6262_v35, 11  ;;  %v1257_v47 = vrot.slane %v1255_v34, 4  ;;  %v1258_v48 = vrot.slane %v6264_v36, 7  ;;  %v6493_v26 = vld [vmem:[%s8864_s10 + $0xe4] sm:$0x7]  ;;  %v7752_v35 = vld [vmem:[%s10681_s2 + $0x148] sm:$0xff] }
 0x1de   : > { %v1663_v17 = vsel %vm9030_vm5, %v6429_v5, %v1662_v59  ;;  %v6430_v49 = vrot.slane %v6414_v38, 9  ;;  %v1671_v50 = vrot.slane %v1669_v37, 4  ;;  %v6502_v53 = vrot.slane %v6490_v44, 11  ;;  %v9202_v27 = vld [vmem:[%s10683_s4] ss:$0 sm:$0xff]  ;;  %v7760_v36 = vld [vmem:[%s10681_s2 + $0x188] sm:$0xff] }
 0x1df   : > { %v1718_v22 = vunpack.c.l.b16 %v1663_v17  ;;  %v1922_v56 = vrot.slane %v6491_v45, 7  ;;  %v1259_v60 = vsel %vm9021_vm4, %v1257_v47, %v1258_v48  ;;  %v6265_v17 = vld [vmem:[%s8864_s10 + $0xac] sm:$0x8]  ;;  %v1676_v18 = vrot.slane %v6418_v9, 5 }
 0x1e0   : > { %v1468_v2 = vunpack.c.l.b16 %v1259_v60 }
 0x1e5   : > { %1552 = vmatmul.bf16.gmra.mxu2 %v1476_v6  ;;  %2055 = vmatmul.bf16.gmra.mxu0 %v1979_v8  ;;  %v1664_v6 = vrot.slane %v1662_v59, 4  ;;  %v7754_v8 = vld [vmem:[%s10681_s2 + $0x158] sm:$0xff]  ;;  %v1256_v59 = vsel %vm9021_vm4, %v6278_v46, %v1255_v34  ;;  %v1678_v34 = vrot.slane %v1676_v18, 4 }
 0x1e6   : > { %1805 = vmatmul.bf16.gmra.mxu3 %v1729_v7  ;;  %v1665_v7 = vrot.slane %v6413_v61, 5  ;;  %2442 = vmatpush.bf16.msra.mxu2 %v7754_v8  ;;  %v1670_v61 = vsel %vm9030_vm5, %v6430_v49, %v1669_v37  ;;  %v1467_v1 = vunpack.c.l.b16 %v1256_v59  ;;  %v7777_v8 = vld [vmem:[%s10681_s2 + $0x1d0] sm:$0xff] }
 0x1e7   : > { %v1720_v3 = vunpack.c.l.b16 %v1670_v61  ;;  %2890 = vmatpush.bf16.msra.mxu0 %v7777_v8 }
 0x1e8   : > { %2185 = vmatmul.bf16.gmra.mxu1 %v8929_v13  ;;  %v1242_v13 = vsel %vm9021_vm4, %v6276_v20, %v1241_v12  ;;  %v1914_v12 = vrot.slane %v1912_v62, 4  ;;  %v1465_v20 = vunpack.c.l.b16 %v1249_v15 }
 0x1e9   : > { %v1463_v41 = vunpack.c.l.b16 %v1242_v13 }
 0x1ea   : > { %v1916_v19 = vsel %vm9021_vm4, %v1914_v12, %v1915_v14  ;;  %v1478_v32 = vpack.c.b16 %v1466_v21, %v1465_v20  ;;  %v1479_v12 = vpack.c.b16 %v1468_v2, %v1467_v1  ;;  %v6417_v20 = vld [vmem:[%s8864_s10 + $0xb0] sm:$0xe]  ;;  %v6419_v21 = vld [vmem:[%s8864_s10 + $0xb8] sm:$0x1]  ;;  %v6421_v1 = vld [vmem:[%s8864_s10 + $0xcc] sm:$0xf] }
 0x1eb   : > { %v1477_v51 = vpack.c.b16 %v1464_v43, %v1463_v41  ;;  %v1969_v25 = vunpack.c.l.b16 %v1916_v19  ;;  %v1919_v41 = vrot.slane %v6177_v29, 7  ;;  %v7786_v43 = vld [vmem:[%s10681_s2 + $0x218] sm:$0xff]  ;;  %v6279_v29 = vrot.slane %v6265_v17, 11  ;;  %v7776_v2 = vld [vmem:[%s10681_s2 + $0x1c8] sm:$0xff] }
 0x1ec   : > { %3155 = vmatpush.bf16.msra.mxu1 %v7786_v43  ;;  %2891 = vmatpush.bf16.msra.mxu0 %v7776_v2  ;;  %v6420_v17 = vld [vmem:[%s8864_s10 + $0xc8] sm:$0xe]  ;;  %v7775_v2 = vld [vmem:[%s10681_s2 + $0x1c0] sm:$0xff] }
 0x1ed   : > { %v1981_v13 = vpack.c.b16 %v1969_v25, %v1968_v24  ;;  %v1921_v54 = vrot.slane %v1919_v41, 4  ;;  %v1920_v62 = vsel %vm9021_vm4, %v6502_v53, %v1919_v41  ;;  %v6492_v25 = vld [vmem:[%s8864_s10 + $0xdc] sm:$0x8] }
 0x1ee   : > { %v1970_v5 = vunpack.c.l.b16 %v1920_v62  ;;  %v6503_v37 = vrot.slane %v6492_v25, 11  ;;  %v6494_v25 = vld [vmem:[%s8864_s10 + $0xf4] sm:$0x8] }
 0x1ef   : > { %v1923_v63 = vsel %vm9021_vm4, %v1921_v54, %v1922_v56 }
 0x1f0   : > { %2892 = vmatpush.bf16.msra.mxu0 %v7775_v2 }
 0x1f5   : > { %1557 = vmatmul.bf16.gmra.mxu2 %v1477_v51  ;;  %2060 = vmatmul.bf16.gmra.mxu0 %v1980_v52  ;;  %v1672_v51 = vrot.slane %v6416_v40, 5  ;;  %v7761_v52 = vld [vmem:[%s10681_s2 + $0x190] sm:$0xff]  ;;  %v1929_v40 = vrot.slane %v6493_v26, 7  ;;  %v6495_v26 = vld [vmem:[%s8864_s10 + $0xfc] sm:$0x7] }
 0x1f6   : > { %1810 = vmatmul.bf16.gmra.mxu3 %v1730_v57  ;;  %v7753_v57 = vld [vmem:[%s10681_s2 + $0x150] sm:$0xff] }
 0x1f7   : > { %2443 = vmatpush.bf16.msra.mxu2 %v7753_v57  ;;  %2712 = vmatpush.bf16.msra.mxu3 %v7761_v52 }
 0x1f8   : > { %2190 = vmatmul.bf16.gmra.mxu1 %v8978_v30  ;;  %v1666_v30 = vsel %vm9030_vm5, %v1664_v6, %v1665_v7  ;;  %v1971_v6 = vunpack.c.l.b16 %v1923_v63  ;;  %v6266_v7 = vld [vmem:[%s8864_s10 + $0xb0] sm:$0xf]  ;;  %v6269_v63 = vld [vmem:[%s8864_s10 + $0xc8] sm:$0xf] }
 0x1f9   : > { %v1719_v23 = vunpack.c.l.b16 %v1666_v30  ;;  %v1262_v15 = vrot.slane %v6266_v7, 7  ;;  %v6267_v30 = vld [vmem:[%s8864_s10 + $0xb4] sm:$0x7]  ;;  %v6181_v7 = vld [vmem:[%s8864_s10 + $0xf8] sm:$0xf] }
 0x1fa   : > { %v1982_v16 = vpack.c.b16 %v1971_v6, %v1970_v5 }
 0x1fb   : > { %v1731_v33 = vpack.c.b16 %v1719_v23, %v1718_v22  ;;  %v1926_v22 = vrot.slane %v6179_v10, 7  ;;  %v7785_v23 = vld [vmem:[%s10681_s2 + $0x210] sm:$0xff]  ;;  %v1264_v31 = vrot.slane %v1262_v15, 4  ;;  %2444 = vmatpush.bf16.msra.mxu2 %v7752_v35  ;;  %2713 = vmatpush.bf16.msra.mxu3 %v7760_v36  ;;  %v1263_v46 = vsel %vm9021_vm4, %v6279_v29, %v1262_v15  ;;  %v6268_v15 = vld [vmem:[%s8864_s10 + $0xc4] sm:$0x8] }
 0x1fc   : > { %3156 = vmatpush.bf16.msra.mxu1 %v7785_v23  ;;  %v1469_v54 = vunpack.c.l.b16 %v1263_v46  ;;  %v1269_v10 = vrot.slane %v6269_v63, 7  ;;  %v6280_v29 = vrot.slane %v6268_v15, 11  ;;  %v7751_v36 = vld [vmem:[%s10681_s2 + $0x140] sm:$0xff] }
 0x1fd   : > { %v1928_v38 = vrot.slane %v1926_v22, 4  ;;  %v6272_v63 = vld [vmem:[%s8864_s10 + $0xe0] sm:$0xf] }
 0x1fe   : > { %v1276_v15 = vrot.slane %v6272_v63, 7 }
 0x1ff   : > { %2445 = vmatpush.bf16.msra.mxu2 %v7751_v36 }
 0x200   : > { %v1278_v36 = vrot.slane %v1276_v15, 4 }
 0x205   : > { %1562 = vmatmul.bf16.gmra.mxu2 %v1478_v32  ;;  %2065 = vmatmul.bf16.gmra.mxu0 %v1981_v13  ;;  %v1265_v32 = vrot.slane %v6267_v30, 7  ;;  %v1679_v13 = vrot.slane %v6419_v21, 5  ;;  %v1933_v21 = vrot.slane %v6181_v7, 7 }
 0x206   : > { %1815 = vmatmul.bf16.gmra.mxu3 %v1731_v33  ;;  %v6431_v33 = vrot.slane %v6417_v20, 9  ;;  %v6422_v20 = vld [vmem:[%s8864_s10 + $0xd0] sm:$0x1] }
 0x207   : > { %v1266_v47 = vsel %vm9021_vm4, %v1264_v31, %v1265_v32  ;;  %v1680_v48 = vsel %vm9030_vm5, %v1678_v34, %v1679_v13  ;;  %v1271_v31 = vrot.slane %v1269_v10, 4  ;;  %v6432_v34 = vrot.slane %v6420_v17, 9 }
 0x208   : > { %2195 = vmatmul.bf16.gmra.mxu1 %v9006_v42  ;;  %v1673_v42 = vsel %vm9030_vm5, %v1671_v50, %v1672_v51  ;;  %v1927_v50 = vsel %vm9021_vm4, %v6503_v37, %v1926_v22  ;;  %v1930_v51 = vsel %vm9021_vm4, %v1928_v38, %v1929_v40  ;;  %v1470_v56 = vunpack.c.l.b16 %v1266_v47  ;;  %v7784_v22 = vld [vmem:[%s10681_s2 + $0x208] sm:$0xff]  ;;  %v7759_v37 = vld [vmem:[%s10681_s2 + $0x180] sm:$0xff] }
 0x209   : > { %v1721_v4 = vunpack.c.l.b16 %v1673_v42  ;;  %v1723_v60 = vunpack.c.l.b16 %v1680_v48  ;;  %v1972_v42 = vunpack.c.l.b16 %v1927_v50  ;;  %v1973_v62 = vunpack.c.l.b16 %v1930_v51  ;;  %3157 = vmatpush.bf16.msra.mxu1 %v7784_v22  ;;  %2714 = vmatpush.bf16.msra.mxu3 %v7759_v37 }
 0x20a   : > { %v1480_v6 = vpack.c.b16 %v1470_v56, %v1469_v54  ;;  %v1686_v35 = vrot.slane %v6422_v20, 5  ;;  %v6504_v38 = vrot.slane %v6494_v25, 11  ;;  %v1935_v40 = vrot.slane %v1933_v21, 4  ;;  %v6425_v25 = vld [vmem:[%s8864_s10 + $0xe8] sm:$0x1] }
 0x20b   : > { %v1732_v14 = vpack.c.b16 %v1721_v4, %v1720_v3  ;;  %v1270_v47 = vsel %vm9021_vm4, %v6280_v29, %v1269_v10  ;;  %v6183_v10 = vld [vmem:[%s8864_s10 + $0x110] sm:$0xf]  ;;  %v7783_v29 = vld [vmem:[%s10681_s2 + $0x200] sm:$0xff] }
 0x20c   : > { %v1934_v50 = vsel %vm9021_vm4, %v6504_v38, %v1933_v21  ;;  %v1471_v56 = vunpack.c.l.b16 %v1270_v47 }
 0x20d   : > { %3158 = vmatpush.bf16.msra.mxu1 %v7783_v29 }
 0x212   : > { %v1091_v19 = vpop.f32.mrf.mxu0 }
 0x213   : > { %v1092_v41 = vadd.f32 %v9202_v27, %v1091_v19 }
 0x215   : > { %v9195_v24 = vpop.f32.mrf.mxu1  ;;  %1567 = vmatmul.bf16.gmra.mxu2 %v1479_v12  ;;  %2070 = vmatmul.bf16.gmra.mxu0 %v1982_v16  ;;  %v1131_v57 = vmax.f32 %v1092_v41, 0.0  ;;  %v1683_v12 = vrot.slane %v6421_v1, 5  ;;  %v6270_v16 = vld [vmem:[%s8864_s10 + $0xcc] sm:$0x7]  ;;  %v1936_v41 = vrot.slane %v6495_v26, 7  ;;  %v1940_v26 = vrot.slane %v6183_v10, 7 }
 0x216   : > { %1820 = vmatmul.bf16.gmra.mxu3 %v1732_v14  ;;  %v1983_v14 = vpack.c.b16 %v1973_v62, %v1972_v42  ;;  %v1272_v32 = vrot.slane %v6270_v16, 7  ;;  %v1974_v42 = vunpack.c.l.b16 %v1934_v50  ;;  %v6424_v1 = vld [vmem:[%s8864_s10 + $0xe4] sm:$0xf]  ;;  %v6603_v10 = vld [vmem:[%s8864_s10 + $0x6c] sm:$0xf] }
 0x217   : > { %v1685_v13 = vrot.slane %v1683_v12, 4  ;;  %v1937_v51 = vsel %vm9021_vm4, %v1935_v40, %v1936_v41  ;;  %v1690_v16 = vrot.slane %v6424_v1, 5  ;;  %v1942_v47 = vrot.slane %v1940_v26, 4 }
 0x218   : > { %2200 = vmatmul.bf16.gmra.mxu1 %v8867_v55  ;;  %v1111_v43 = vpop.f32.mrf.mxu2  ;;  %v1677_v55 = vsel %vm9030_vm5, %v6431_v33, %v1676_v18  ;;  %v1975_v62 = vunpack.c.l.b16 %v1937_v51 }
 0x219   : > { %v9212_v44 = vpop.f32.mrf.mxu3  ;;  %v1112_v45 = vadd.f32 %v9202_v27, %v1111_v43  ;;  %v1722_v59 = vunpack.c.l.b16 %v1677_v55  ;;  %v1273_v55 = vsel %vm9021_vm4, %v1271_v31, %v1272_v32  ;;  %v1687_v48 = vsel %vm9030_vm5, %v1685_v13, %v1686_v35  ;;  %v6496_v32 = vld [vmem:[%s8864_s10 + $0x10c] sm:$0x8] }
 0x21a   : > { %v1093_v49 = vpop.f32.mrf.mxu0  ;;  %v1984_v17 = vpack.c.b16 %v1975_v62, %v1974_v42  ;;  %v1692_v41 = vrot.slane %v1690_v16, 4 }
 0x21b   : > { %v1094_v52 = vadd.f32 %v9202_v27, %v1093_v49  ;;  %v1733_v9 = vpack.c.b16 %v1723_v60, %v1722_v59  ;;  %v1139_v30 = vmax.f32 %v1112_v45, 0.0  ;;  %v1472_v59 = vunpack.c.l.b16 %v1273_v55 }
 0x21d   : > { %v9228_v53 = vpop.f32.mrf.mxu1  ;;  %v1132_v61 = vmax.f32 %v1094_v52, 0.0 }
 0x21f   : > { %v9235_v3 = vpack.c.bf16 %v1132_v61, %v1131_v57  ;;  %v1725_v61 = vunpack.c.l.b16 %v1687_v48 }
 0x220   : > { %v1113_v4 = vpop.f32.mrf.mxu2 }
 0x221   : > { %v9237_v5 = vpop.f32.mrf.mxu3  ;;  %v1114_v8 = vadd.f32 %v9202_v27, %v1113_v4 }
 0x222   : > { %v1096_v19 = vpop.f32.mrf.mxu0 }
 0x223   : > { %v1140_v18 = vmax.f32 %v1114_v8, 0.0  ;;  %v1097_v57 = vadd.f32 %v9202_v27, %v1096_v19  ;;  %v6423_v19 = vld [vmem:[%s8864_s10 + $0xe0] sm:$0xe] }
 0x224   : > { %v6433_v40 = vrot.slane %v6423_v19, 9  ;;  %v2287_v19 = vrot.slane %v6603_v10, 5 }
 0x225   : > { %v9248_v23 = vpop.f32.mrf.mxu1  ;;  %1572 = vmatmul.bf16.gmra.mxu2 %v1480_v6  ;;  %v9252_v33 = vpack.c.bf16 %v1140_v18, %v1139_v30  ;;  %2075 = vmatmul.bf16.gmra.mxu0 %v1983_v14  ;;  %v1133_v4 = vmax.f32 %v1097_v57, 0.0  ;;  %v6271_v30 = vld [vmem:[%s8864_s10 + $0xdc] sm:$0x8]  ;;  %v6273_v18 = vld [vmem:[%s8864_s10 + $0xe4] sm:$0x7] }
 0x226   : > { %1825 = vmatmul.bf16.gmra.mxu3 %v1733_v9  ;;  %v1481_v9 = vpack.c.b16 %v1472_v59, %v1471_v56  ;;  %v6281_v35 = vrot.slane %v6271_v30, 11  ;;  %v1279_v38 = vrot.slane %v6273_v18, 7 }
 0x228   : > { %2205 = vmatmul.bf16.gmra.mxu1 %v8925_v11  ;;  %v1116_v43 = vpop.f32.mrf.mxu2  ;;  %v1684_v11 = vsel %vm9030_vm5, %v6432_v34, %v1683_v12  ;;  %v6497_v34 = vld [vmem:[%s8864_s10 + $0x114] sm:$0x7]  ;;  %v1277_v51 = vsel %vm9021_vm4, %v6281_v35, %v1276_v15  ;;  %v1280_v57 = vsel %vm9021_vm4, %v1278_v36, %v1279_v38  ;;  %v6683_v35 = vld [vmem:[%s8864_s10 + $0x94] sm:$0x8]  ;;  %v6685_v36 = vld [vmem:[%s8864_s10 + $0x9c] sm:$0x7] }
 0x229   : > { %v9261_v45 = vpop.f32.mrf.mxu3  ;;  %v1117_v46 = vadd.f32 %v9202_v27, %v1116_v43  ;;  %v1724_v60 = vunpack.c.l.b16 %v1684_v11  ;;  %v1693_v43 = vrot.slane %v6425_v25, 5  ;;  %v1943_v55 = vrot.slane %v6497_v34, 7  ;;  %v6604_v25 = vld [vmem:[%s8864_s10 + $0x70] sm:$0x1] }
 0x22a   : > { %v1098_v49 = vpop.f32.mrf.mxu0  ;;  %v1473_v63 = vunpack.c.l.b16 %v1277_v51  ;;  %v1474_v1 = vunpack.c.l.b16 %v1280_v57 }
 0x22b   : > { %v1099_v52 = vadd.f32 %v9202_v27, %v1098_v49  ;;  %v1734_v14 = vpack.c.b16 %v1725_v61, %v1724_v60  ;;  %v1141_v20 = vmax.f32 %v1117_v46, 0.0  ;;  %v6505_v46 = vrot.slane %v6496_v32, 11 }
 0x22c   : > { %v1944_v60 = vsel %vm9021_vm4, %v1942_v47, %v1943_v55  ;;  %v1482_v30 = vpack.c.b16 %v1474_v1, %v1473_v63  ;;  %v6853_v47 = vld [vmem:[%s8864_s10 + $0xa0] sm:$0x1] }
 0x22d   : > { %v9278_v54 = vpop.f32.mrf.mxu1  ;;  %v1134_v6 = vmax.f32 %v1099_v52, 0.0  ;;  %v1694_v52 = vsel %vm9030_vm5, %v1692_v41, %v1693_v43  ;;  %v1941_v59 = vsel %vm9021_vm4, %v6505_v46, %v1940_v26  ;;  %v2289_v43 = vrot.slane %v2287_v19, 4  ;;  %v6851_v46 = vld [vmem:[%s8864_s10 + $0x98] sm:$0xe] }
 0x22f   : > { %v9300_v13 = vpack.c.bf16 %v1134_v6, %v1133_v4  ;;  %v1727_v4 = vunpack.c.l.b16 %v1694_v52  ;;  %v6875_v52 = vrot.slane %v6851_v46, 9  ;;  %v6607_v46 = vld [vmem:[%s8864_s10 + $0x88] sm:$0x1] }
 0x230   : > { %v1118_v7 = vpop.f32.mrf.mxu2 }
 0x231   : > { %v9285_v8 = vpop.f32.mrf.mxu3  ;;  %v1119_v12 = vadd.f32 %v9202_v27, %v1118_v7  ;;  %v1976_v7 = vunpack.c.l.b16 %v1941_v59  ;;  %v3003_v59 = vrot.slane %v6853_v47, 5 }
 0x232   : > { %v1101_v22 = vpop.f32.mrf.mxu0 }
 0x233   : > { %v1142_v21 = vmax.f32 %v1119_v12, 0.0  ;;  %v1102_v11 = vadd.f32 %v9202_v27, %v1101_v22  ;;  %v6684_v12 = vld [vmem:[%s8864_s10 + $0x98] sm:$0xf]  ;;  %v6602_v22 = vld [vmem:[%s8864_s10 + $0x68] sm:$0xe] }
 0x234   : > { %v2556_v26 = vrot.slane %v6684_v12, 7  ;;  %v6626_v41 = vrot.slane %v6602_v22, 9 }
 0x235   : > { %v9296_v31 = vpop.f32.mrf.mxu1  ;;  %1577 = vmatmul.bf16.gmra.mxu2 %v1481_v9  ;;  %v9302_v37 = vpack.c.bf16 %v1142_v21, %v1141_v20  ;;  %2080 = vmatmul.bf16.gmra.mxu0 %v1984_v17  ;;  %v1135_v61 = vmax.f32 %v1102_v11, 0.0  ;;  %v1977_v9 = vunpack.c.l.b16 %v1944_v60  ;;  %v6852_v20 = vld [vmem:[%s8864_s10 + $0x9c] sm:$0xf]  ;;  %v2290_v11 = vrot.slane %v6604_v25, 5 }
 0x236   : > { %1830 = vmatmul.bf16.gmra.mxu3 %v1734_v14  ;;  %v2558_v51 = vrot.slane %v2556_v26, 4 }
 0x237   : > { %v1985_v21 = vpack.c.b16 %v1977_v9, %v1976_v7 }
 0x238   : > { %2210 = vmatmul.bf16.gmra.mxu1 %v8974_v28  ;;  %v1121_v48 = vpop.f32.mrf.mxu2  ;;  %v1691_v28 = vsel %vm9030_vm5, %v6433_v40, %v1690_v16  ;;  %v3000_v40 = vrot.slane %v6852_v20, 5 }
 0x239   : > { %v9306_v49 = vpop.f32.mrf.mxu3  ;;  %v1122_v50 = vadd.f32 %v9202_v27, %v1121_v48  ;;  %v1726_v2 = vunpack.c.l.b16 %v1691_v28  ;;  %v6707_v48 = vrot.slane %v6683_v35, 11 }
 0x23a   : > { %v1103_v56 = vpop.f32.mrf.mxu0  ;;  %v3001_v7 = vsel %vm9030_vm5, %v6875_v52, %v3000_v40  ;;  %v6688_v52 = vld [vmem:[%s8864_s10 + $0xb4] sm:$0x7] }
 0x23b   : > { %v1104_v42 = vadd.f32 %v9202_v27, %v1103_v56  ;;  %v1735_v18 = vpack.c.b16 %v1727_v4, %v1726_v2  ;;  %v1143_v29 = vmax.f32 %v1122_v50, 0.0  ;;  %v2559_v50 = vrot.slane %v6685_v36, 7  ;;  %v6605_v36 = vld [vmem:[%s8864_s10 + $0x80] sm:$0xe] }
 0x23c   : > { %v3002_v56 = vrot.slane %v3000_v40, 4  ;;  %v2557_v63 = vsel %vm9021_vm4, %v6707_v48, %v2556_v26 }
 0x23d   : > { %v9322_v62 = vpop.f32.mrf.mxu1  ;;  %v1136_v6 = vmax.f32 %v1104_v42, 0.0  ;;  %v2291_v42 = vsel %vm9030_vm5, %v2289_v43, %v2290_v11  ;;  %v7767_v43 = vld [vmem:[%s8864_s10 + $0x98] sm:$0xff] }
 0x23e   : > { %v3004_v9 = vsel %vm9030_vm5, %v3002_v56, %v3003_v59  ;;  %v2359_v12 = vunpack.c.l.b16 %v2291_v42  ;;  %v6627_v59 = vrot.slane %v6605_v36, 9 }
 0x23f   : > { %v9328_v16 = vpack.c.bf16 %v1136_v6, %v1135_v61  ;;  %v2288_v61 = vsel %vm9030_vm5, %v6626_v41, %v2287_v19  ;;  %v3071_v19 = vunpack.c.l.b16 %v3001_v7  ;;  %v3072_v20 = vunpack.c.l.b16 %v3004_v9  ;;  %v6855_v41 = vld [vmem:[%s8864_s10 + $0xb4] sm:$0xf] }
 0x240   : > { %v1123_v14 = vpop.f32.mrf.mxu2  ;;  %v2358_v10 = vunpack.c.l.b16 %v2288_v61  ;;  %v3007_v61 = vrot.slane %v6855_v41, 5  ;;  %v2566_v9 = vrot.slane %v6688_v52, 7 }
 0x241   : > { %v9326_v15 = vpop.f32.mrf.mxu3  ;;  %v1124_v17 = vadd.f32 %v9202_v27, %v1123_v14  ;;  %v2627_v14 = vunpack.c.l.b16 %v2557_v63  ;;  %v6854_v63 = vld [vmem:[%s8864_s10 + $0xb0] sm:$0xe] }
 0x242   : > { %v1106_v34 = vpop.f32.mrf.mxu0 }
 0x243   : > { %v1144_v32 = vmax.f32 %v1124_v17, 0.0  ;;  %v1107_v2 = vadd.f32 %v9202_v27, %v1106_v34  ;;  %v2374_v34 = vpack.c.b16 %v2359_v12, %v2358_v10 }
 0x245   : > { %v9336_v38 = vpop.f32.mrf.mxu1  ;;  %1582 = vmatmul.bf16.gmra.mxu2 %v1482_v30  ;;  %v9340_v55 = vpack.c.bf16 %v1144_v32, %v1143_v29  ;;  %2085 = vmatmul.bf16.gmra.mxu0 %v1985_v21  ;;  %v7798_v30 = vld [vmem:[%s10682_s3 + $0x78] sm:$0xff]  ;;  %v6687_v21 = vld [vmem:[%s8864_s10 + $0xb0] sm:$0xf]  ;;  %v1137_v22 = vmax.f32 %v1107_v2, 0.0  ;;  %v2297_v2 = vrot.slane %v6607_v46, 5 }
 0x246   : > { %1835 = vmatmul.bf16.gmra.mxu3 %v1735_v18  ;;  %v6606_v18 = vld [vmem:[%s8864_s10 + $0x84] sm:$0xf]  ;;  %3322 = vmatpush.bf16.msrb.mxu2 %v7798_v30  ;;  %v2563_v47 = vrot.slane %v6687_v21, 7  ;;  %v7823_v46 = vld [vmem:[%s10681_s2 + $0x2b8] sm:$0xff] }
 0x247   : > { %v2294_v40 = vrot.slane %v6606_v18, 5  ;;  %3707 = vmatpush.bf16.msrb.mxu0 %v7823_v46 }
 0x248   : > { %2215 = vmatmul.bf16.gmra.mxu1 %v9001_v39  ;;  %v1126_v57 = vpop.f32.mrf.mxu2  ;;  %v2560_v39 = vsel %vm9021_vm4, %v2558_v51, %v2559_v50  ;;  %v3087_v50 = vpack.c.b16 %v3072_v20, %v3071_v19  ;;  %v2565_v7 = vrot.slane %v2563_v47, 4 }
 0x249   : > { %v9343_v28 = vpop.f32.mrf.mxu3  ;;  %v1127_v60 = vadd.f32 %v9202_v27, %v1126_v57  ;;  %v2628_v17 = vunpack.c.l.b16 %v2560_v39  ;;  %v6686_v57 = vld [vmem:[%s8864_s10 + $0xac] sm:$0x8]  ;;  %v2296_v42 = vrot.slane %v2294_v40, 4  ;;  %v6856_v39 = vld [vmem:[%s8864_s10 + $0xb8] sm:$0x1]  ;;  %v2295_v19 = vsel %vm9030_vm5, %v6627_v59, %v2294_v40 }
 0x24a   : > { %v1108_v1 = vpop.f32.mrf.mxu0  ;;  %v3010_v30 = vrot.slane %v6856_v39, 5  ;;  %v6608_v39 = vld [vmem:[%s8864_s10 + $0x98] sm:$0xe] }
 0x24b   : > { %v1109_v4 = vadd.f32 %v9202_v27, %v1108_v1  ;;  %v2643_v35 = vpack.c.b16 %v2628_v17, %v2627_v14  ;;  %v1145_v11 = vmax.f32 %v1127_v60, 0.0  ;;  %v7702_v1 = vld [vmem:[%s10682_s3 + $0x38] sm:$0xff]  ;;  %v6876_v14 = vrot.slane %v6854_v63, 9 }
 0x24c   : > { %3419 = vmatpush.bf16.msrb.mxu3 %v7702_v1  ;;  %v3009_v17 = vrot.slane %v3007_v61, 4  ;;  %v2298_v20 = vsel %vm9030_vm5, %v2296_v42, %v2297_v2  ;;  %v6858_v2 = vld [vmem:[%s8864_s10 + $0xcc] sm:$0xf] }
 0x24d   : > { %v9356_v6 = vpop.f32.mrf.mxu1  ;;  %v1138_v25 = vmax.f32 %v1109_v4, 0.0  ;;  %v6708_v4 = vrot.slane %v6686_v57, 11  ;;  %v2361_v40 = vunpack.c.l.b16 %v2298_v20  ;;  %v6690_v57 = vld [vmem:[%s8864_s10 + $0xc8] sm:$0xf] }
 0x24f   : > { %v2564_v21 = vsel %vm9021_vm4, %v6708_v4, %v2563_v47  ;;  %v7797_v47 = vld [vmem:[%s10682_s3 + $0x70] sm:$0xff] }
 0x250   : > { %v1128_v26 = vpop.f32.mrf.mxu2  ;;  %v2629_v41 = vunpack.c.l.b16 %v2564_v21  ;;  %3323 = vmatpush.bf16.msrb.mxu2 %v7797_v47  ;;  %v7768_v4 = vld [vmem:[%s8864_s10 + $0xb0] sm:$0xff]  ;;  %v6857_v21 = vld [vmem:[%s8864_s10 + $0xc8] sm:$0xe] }
 0x251   : > { %v9367_v29 = vpop.f32.mrf.mxu3  ;;  %v1129_v32 = vadd.f32 %v9202_v27, %v1128_v26  ;;  %v9376_v27 = vpack.c.bf16 %v1138_v25, %v1137_v22  ;;  %v2567_v22 = vsel %vm9021_vm4, %v2565_v7, %v2566_v9  ;;  %v2570_v7 = vrot.slane %v6690_v57, 7 }
 0x252   : > { %v2051_v51 = vpop.f32.mrf.mxu0 }
 0x253   : > { %v1146_v48 = vmax.f32 %v1129_v32, 0.0 }
 0x255   : > { %v2181_v56 = vpop.f32.mrf.mxu1  ;;  %2446 = vmatmul.bf16.vlgmr.msra.gmra.mxu2 %v2374_v34  ;;  %v9383_v60 = vpack.c.bf16 %v1146_v48, %v1145_v11  ;;  %2893 = vmatmul.bf16.vlgmr.msra.gmra.mxu0 %v7767_v43  ;;  %v2360_v34 = vunpack.c.l.b16 %v2295_v19  ;;  %v2630_v43 = vunpack.c.l.b16 %v2567_v22  ;;  %v6609_v11 = vld [vmem:[%s8864_s10 + $0x9c] sm:$0xf]  ;;  %v3014_v19 = vrot.slane %v6858_v2, 5  ;;  %v6859_v22 = vld [vmem:[%s8864_s10 + $0xd0] sm:$0x1] }
 0x256   : > { %2715 = vmatmul.bf16.vlgmr.msra.gmra.mxu3 %v2643_v35  ;;  %v3011_v35 = vsel %vm9030_vm5, %v3009_v17, %v3010_v30  ;;  %v2301_v1 = vrot.slane %v6609_v11, 5  ;;  %v6691_v17 = vld [vmem:[%s8864_s10 + $0xcc] sm:$0x7]  ;;  %v3017_v47 = vrot.slane %v6859_v22, 5  ;;  %v6611_v22 = vld [vmem:[%s8864_s10 + $0xb0] sm:$0xe] }
 0x257   : > { %v2375_v42 = vpack.c.b16 %v2361_v40, %v2360_v34  ;;  %v2644_v63 = vpack.c.b16 %v2630_v43, %v2629_v41  ;;  %v6877_v43 = vrot.slane %v6857_v21, 9  ;;  %v3016_v46 = vrot.slane %v3014_v19, 4 }
 0x258   : > { %3159 = vmatmul.bf16.vlgmr.msra.gmra.mxu1 %v3087_v50  ;;  %v1548_v10 = vpop.f32.mrf.mxu2  ;;  %v3074_v50 = vunpack.c.l.b16 %v3011_v35  ;;  %v2572_v35 = vrot.slane %v2570_v7, 4 }
 0x259   : > { %v1801_v12 = vpop.f32.mrf.mxu3  ;;  %v1549_v18 = vadd.f32 %v1548_v10, %v9195_v24  ;;  %v3008_v24 = vsel %vm9030_vm5, %v6876_v14, %v3007_v61  ;;  %v6610_v14 = vld [vmem:[%s8864_s10 + $0xa0] sm:$0x1] }
 0x25a   : > { %v2053_v26 = vpop.f32.mrf.mxu0  ;;  %v3073_v48 = vunpack.c.l.b16 %v3008_v24  ;;  %v2304_v34 = vrot.slane %v6610_v14, 5 }
 0x25b   : > { %v1841_v25 = vadd.f32 %v1801_v12, %v1549_v18  ;;  %v6628_v18 = vrot.slane %v6608_v39, 9 }
 0x25c   : > { %v3088_v12 = vpack.c.b16 %v3074_v50, %v3073_v48 }
 0x25d   : > { %v2183_v32 = vpop.f32.mrf.mxu1  ;;  %v2091_v36 = vadd.f32 %v2051_v51, %v1841_v25  ;;  %v7701_v25 = vld [vmem:[%s10682_s3 + $0x30] sm:$0xff]  ;;  %v2302_v48 = vsel %vm9030_vm5, %v6628_v18, %v2301_v1 }
 0x25e   : > { %3420 = vmatpush.bf16.msrb.mxu3 %v7701_v25 }
 0x25f   : > { %v9406_v51 = vadd.f32 %v2181_v56, %v2091_v36  ;;  %v6689_v56 = vld [vmem:[%s8864_s10 + $0xc4] sm:$0x8]  ;;  %v2573_v36 = vrot.slane %v6691_v17, 7  ;;  %v6693_v17 = vld [vmem:[%s8864_s10 + $0xe0] sm:$0xf] }
 0x260   : > { %v1550_v52 = vpop.f32.mrf.mxu2  ;;  %v6709_v24 = vrot.slane %v6689_v56, 11 }
 0x261   : > { %v1803_v59 = vpop.f32.mrf.mxu3  ;;  %v1551_v61 = vadd.f32 %v1550_v52, %v9228_v53  ;;  %v2303_v53 = vrot.slane %v2301_v1, 4 }
 0x262   : > { %v2056_v10 = vpop.f32.mrf.mxu0  ;;  %v2571_v57 = vsel %vm9021_vm4, %v6709_v24, %v2570_v7  ;;  %v7822_v7 = vld [vmem:[%s10681_s2 + $0x2b0] sm:$0xff]  ;;  %v7769_v24 = vld [vmem:[%s8864_s10 + $0xc8] sm:$0xff] }
 0x263   : > { %v1842_v9 = vadd.f32 %v1803_v59, %v1551_v61  ;;  %v2305_v50 = vsel %vm9030_vm5, %v2303_v53, %v2304_v34  ;;  %v2631_v2 = vunpack.c.l.b16 %v2571_v57  ;;  %3708 = vmatpush.bf16.msrb.mxu0 %v7822_v7  ;;  %v6861_v34 = vld [vmem:[%s8864_s10 + $0xe4] sm:$0xf]  ;;  %v6860_v57 = vld [vmem:[%s8864_s10 + $0xe0] sm:$0xe] }
 0x264   : > { %v2363_v1 = vunpack.c.l.b16 %v2305_v50 }
 0x265   : > { %v2186_v30 = vpop.f32.mrf.mxu1  ;;  %v2092_v20 = vadd.f32 %v2053_v26, %v1842_v9  ;;  %2451 = vmatmul.bf16.gmra.mxu2 %v2375_v42  ;;  %2898 = vmatmul.bf16.gmra.mxu0 %v7768_v4  ;;  %v2362_v42 = vunpack.c.l.b16 %v2302_v48  ;;  %v7796_v9 = vld [vmem:[%s10682_s3 + $0x68] sm:$0xff]  ;;  %v3021_v48 = vrot.slane %v6861_v34, 5 }
 0x266   : > { %2720 = vmatmul.bf16.gmra.mxu3 %v2644_v63  ;;  %v3018_v63 = vsel %vm9030_vm5, %v3016_v46, %v3017_v47  ;;  %3324 = vmatpush.bf16.msrb.mxu2 %v7796_v9  ;;  %v6694_v46 = vld [vmem:[%s8864_s10 + $0xe4] sm:$0x7] }
 0x267   : > { %v9420_v40 = vadd.f32 %v2183_v32, %v2092_v20  ;;  %v2574_v32 = vsel %vm9021_vm4, %v2572_v35, %v2573_v36  ;;  %v3076_v56 = vunpack.c.l.b16 %v3018_v63  ;;  %v2376_v53 = vpack.c.b16 %v2363_v1, %v2362_v42 }
 0x268   : > { %3164 = vmatmul.bf16.gmra.mxu1 %v3088_v12  ;;  %v1553_v41 = vpop.f32.mrf.mxu2  ;;  %v2632_v4 = vunpack.c.l.b16 %v2574_v32  ;;  %v6612_v12 = vld [vmem:[%s8864_s10 + $0xb4] sm:$0xf]  ;;  %v2577_v35 = vrot.slane %v6693_v17, 7  ;;  %v6862_v32 = vld [vmem:[%s8864_s10 + $0xe8] sm:$0x1]  ;;  %v3023_v7 = vrot.slane %v3021_v48, 4 }
 0x269   : > { %v1806_v26 = vpop.f32.mrf.mxu3  ;;  %v1554_v11 = vadd.f32 %v1553_v41, %v9248_v23  ;;  %v3015_v23 = vsel %vm9030_vm5, %v6877_v43, %v3014_v19  ;;  %v2308_v25 = vrot.slane %v6612_v12, 5  ;;  %v6613_v43 = vld [vmem:[%s8864_s10 + $0xb8] sm:$0x1]  ;;  %v3024_v9 = vrot.slane %v6862_v32, 5  ;;  %v6614_v32 = vld [vmem:[%s8864_s10 + $0xc8] sm:$0xe] }
 0x26a   : > { %v2058_v59 = vpop.f32.mrf.mxu0  ;;  %v3075_v14 = vunpack.c.l.b16 %v3015_v23  ;;  %v2645_v21 = vpack.c.b16 %v2632_v4, %v2631_v2  ;;  %v2311_v42 = vrot.slane %v6613_v43, 5  ;;  %v2579_v63 = vrot.slane %v2577_v35, 4 }
 0x26b   : > { %v1843_v52 = vadd.f32 %v1806_v26, %v1554_v11  ;;  %v6629_v11 = vrot.slane %v6611_v22, 9  ;;  %v6878_v4 = vrot.slane %v6860_v57, 9 }
 0x26c   : > { %v3089_v26 = vpack.c.b16 %v3076_v56, %v3075_v14 }
 0x26d   : > { %v2188_v61 = vpop.f32.mrf.mxu1  ;;  %v2093_v39 = vadd.f32 %v2056_v10, %v1843_v52  ;;  %v7700_v52 = vld [vmem:[%s10682_s3 + $0x28] sm:$0xff]  ;;  %v2309_v14 = vsel %vm9030_vm5, %v6629_v11, %v2308_v25 }
 0x26e   : > { %3421 = vmatpush.bf16.msrb.mxu3 %v7700_v52 }
 0x26f   : > { %v9443_v10 = vadd.f32 %v2186_v30, %v2093_v39  ;;  %v6692_v30 = vld [vmem:[%s8864_s10 + $0xdc] sm:$0x8]  ;;  %v2580_v39 = vrot.slane %v6694_v46, 7  ;;  %v6696_v46 = vld [vmem:[%s8864_s10 + $0xf8] sm:$0xf] }
 0x270   : > { %v1555_v18 = vpop.f32.mrf.mxu2  ;;  %v6710_v23 = vrot.slane %v6692_v30, 11 }
 0x271   : > { %v1808_v19 = vpop.f32.mrf.mxu3  ;;  %v1556_v20 = vadd.f32 %v1555_v18, %v9278_v54  ;;  %v2310_v54 = vrot.slane %v2308_v25, 4 }
 0x272   : > { %v2061_v41 = vpop.f32.mrf.mxu0  ;;  %v2578_v17 = vsel %vm9021_vm4, %v6710_v23, %v2577_v35  ;;  %v7821_v35 = vld [vmem:[%s10681_s2 + $0x2a8] sm:$0xff]  ;;  %v7770_v23 = vld [vmem:[%s8864_s10 + $0xe0] sm:$0xff] }
 0x273   : > { %v1844_v36 = vadd.f32 %v1808_v19, %v1556_v20  ;;  %v2312_v56 = vsel %vm9030_vm5, %v2310_v54, %v2311_v42  ;;  %v2633_v34 = vunpack.c.l.b16 %v2578_v17  ;;  %3709 = vmatpush.bf16.msrb.mxu0 %v7821_v35  ;;  %v6864_v42 = vld [vmem:[%s8864_s10 + $0xfc] sm:$0xf]  ;;  %v6863_v17 = vld [vmem:[%s8864_s10 + $0xf8] sm:$0xe] }
 0x274   : > { %v2365_v25 = vunpack.c.l.b16 %v2312_v56 }
 0x275   : > { %v2191_v47 = vpop.f32.mrf.mxu1  ;;  %v2094_v50 = vadd.f32 %v2058_v59, %v1844_v36  ;;  %2456 = vmatmul.bf16.gmra.mxu2 %v2376_v53  ;;  %2903 = vmatmul.bf16.gmra.mxu0 %v7769_v24  ;;  %v2364_v53 = vunpack.c.l.b16 %v2309_v14  ;;  %v7795_v36 = vld [vmem:[%s10682_s3 + $0x60] sm:$0xff]  ;;  %v3028_v14 = vrot.slane %v6864_v42, 5 }
 0x276   : > { %2725 = vmatmul.bf16.gmra.mxu3 %v2645_v21  ;;  %v3025_v21 = vsel %vm9030_vm5, %v3023_v7, %v3024_v9  ;;  %3325 = vmatpush.bf16.msrb.mxu2 %v7795_v36  ;;  %v6697_v7 = vld [vmem:[%s8864_s10 + $0xfc] sm:$0x7] }
 0x277   : > { %v9457_v1 = vadd.f32 %v2188_v61, %v2094_v50  ;;  %v2581_v61 = vsel %vm9021_vm4, %v2579_v63, %v2580_v39  ;;  %v3078_v30 = vunpack.c.l.b16 %v3025_v21  ;;  %v2377_v54 = vpack.c.b16 %v2365_v25, %v2364_v53 }
 0x278   : > { %3169 = vmatmul.bf16.gmra.mxu1 %v3089_v26  ;;  %v1558_v2 = vpop.f32.mrf.mxu2  ;;  %v2634_v24 = vunpack.c.l.b16 %v2581_v61  ;;  %v6615_v26 = vld [vmem:[%s8864_s10 + $0xcc] sm:$0xf]  ;;  %v2584_v63 = vrot.slane %v6696_v46, 7  ;;  %v6865_v61 = vld [vmem:[%s8864_s10 + $0x100] sm:$0x1]  ;;  %v3030_v35 = vrot.slane %v3028_v14, 4 }
 0x279   : > { %v1811_v59 = vpop.f32.mrf.mxu3  ;;  %v1559_v12 = vadd.f32 %v1558_v2, %v9296_v31  ;;  %v3022_v31 = vsel %vm9030_vm5, %v6878_v4, %v3021_v48  ;;  %v2315_v52 = vrot.slane %v6615_v26, 5  ;;  %v6616_v4 = vld [vmem:[%s8864_s10 + $0xd0] sm:$0x1]  ;;  %v3031_v36 = vrot.slane %v6865_v61, 5  ;;  %v6617_v61 = vld [vmem:[%s8864_s10 + $0xe0] sm:$0xe] }
 0x27a   : > { %v2063_v19 = vpop.f32.mrf.mxu0  ;;  %v3077_v43 = vunpack.c.l.b16 %v3022_v31  ;;  %v2646_v57 = vpack.c.b16 %v2634_v24, %v2633_v34  ;;  %v2318_v53 = vrot.slane %v6616_v4, 5  ;;  %v2586_v21 = vrot.slane %v2584_v63, 4 }
 0x27b   : > { %v1845_v18 = vadd.f32 %v1811_v59, %v1559_v12  ;;  %v6630_v12 = vrot.slane %v6614_v32, 9  ;;  %v6879_v24 = vrot.slane %v6863_v17, 9 }
 0x27c   : > { %v3090_v59 = vpack.c.b16 %v3078_v30, %v3077_v43 }
 0x27d   : > { %v2193_v20 = vpop.f32.mrf.mxu1  ;;  %v2095_v22 = vadd.f32 %v2061_v41, %v1845_v18  ;;  %v7699_v18 = vld [vmem:[%s10682_s3 + $0x20] sm:$0xff]  ;;  %v2316_v43 = vsel %vm9030_vm5, %v6630_v12, %v2315_v52 }
 0x27e   : > { %3422 = vmatpush.bf16.msrb.mxu3 %v7699_v18 }
 0x27f   : > { %v9480_v41 = vadd.f32 %v2191_v47, %v2095_v22  ;;  %v6695_v47 = vld [vmem:[%s8864_s10 + $0xf4] sm:$0x8]  ;;  %v2587_v22 = vrot.slane %v6697_v7, 7  ;;  %v6699_v7 = vld [vmem:[%s8864_s10 + $0x110] sm:$0xf] }
 0x280   : > { %v1560_v11 = vpop.f32.mrf.mxu2  ;;  %v6711_v31 = vrot.slane %v6695_v47, 11 }
 0x281   : > { %v1813_v48 = vpop.f32.mrf.mxu3  ;;  %v1561_v50 = vadd.f32 %v1560_v11, %v9322_v62  ;;  %v2317_v62 = vrot.slane %v2315_v52, 4 }
 0x282   : > { %v2066_v2 = vpop.f32.mrf.mxu0  ;;  %v2585_v46 = vsel %vm9021_vm4, %v6711_v31, %v2584_v63  ;;  %v7820_v63 = vld [vmem:[%s10681_s2 + $0x2a0] sm:$0xff]  ;;  %v7771_v31 = vld [vmem:[%s8864_s10 + $0xf8] sm:$0xff] }
 0x283   : > { %v1846_v39 = vadd.f32 %v1813_v48, %v1561_v50  ;;  %v2319_v30 = vsel %vm9030_vm5, %v2317_v62, %v2318_v53  ;;  %v2635_v42 = vunpack.c.l.b16 %v2585_v46  ;;  %3710 = vmatpush.bf16.msrb.mxu0 %v7820_v63  ;;  %v6867_v53 = vld [vmem:[%s8864_s10 + $0x114] sm:$0xf]  ;;  %v6866_v46 = vld [vmem:[%s8864_s10 + $0x110] sm:$0xe] }
 0x284   : > { %v2367_v52 = vunpack.c.l.b16 %v2319_v30 }
 0x285   : > { %v2196_v9 = vpop.f32.mrf.mxu1  ;;  %v2096_v56 = vadd.f32 %v2063_v19, %v1846_v39  ;;  %2461 = vmatmul.bf16.gmra.mxu2 %v2377_v54  ;;  %2908 = vmatmul.bf16.gmra.mxu0 %v7770_v23  ;;  %v2366_v54 = vunpack.c.l.b16 %v2316_v43  ;;  %v7794_v39 = vld [vmem:[%s10682_s3 + $0x58] sm:$0xff]  ;;  %v3035_v43 = vrot.slane %v6867_v53, 5 }
 0x286   : > { %2730 = vmatmul.bf16.gmra.mxu3 %v2646_v57  ;;  %v3032_v57 = vsel %vm9030_vm5, %v3030_v35, %v3031_v36  ;;  %3326 = vmatpush.bf16.msrb.mxu2 %v7794_v39  ;;  %v6700_v35 = vld [vmem:[%s8864_s10 + $0x114] sm:$0x7] }
 0x287   : > { %v9494_v25 = vadd.f32 %v2193_v20, %v2096_v56  ;;  %v2588_v20 = vsel %vm9021_vm4, %v2586_v21, %v2587_v22  ;;  %v3080_v47 = vunpack.c.l.b16 %v3032_v57  ;;  %v2378_v62 = vpack.c.b16 %v2367_v52, %v2366_v54 }
 0x288   : > { %3174 = vmatmul.bf16.gmra.mxu1 %v3090_v59  ;;  %v1563_v34 = vpop.f32.mrf.mxu2  ;;  %v2636_v23 = vunpack.c.l.b16 %v2588_v20  ;;  %v6618_v59 = vld [vmem:[%s8864_s10 + $0xe4] sm:$0xf]  ;;  %v2591_v21 = vrot.slane %v6699_v7, 7  ;;  %v6868_v20 = vld [vmem:[%s8864_s10 + $0x118] sm:$0x1]  ;;  %v3037_v63 = vrot.slane %v3035_v43, 4 }
 0x289   : > { %v1816_v19 = vpop.f32.mrf.mxu3  ;;  %v1564_v26 = vadd.f32 %v1563_v34, %v9336_v38  ;;  %v3029_v38 = vsel %vm9030_vm5, %v6879_v24, %v3028_v14  ;;  %v2322_v18 = vrot.slane %v6618_v59, 5  ;;  %v6619_v24 = vld [vmem:[%s8864_s10 + $0xe8] sm:$0x1]  ;;  %v3038_v39 = vrot.slane %v6868_v20, 5  ;;  %v6620_v20 = vld [vmem:[%s8864_s10 + $0xf8] sm:$0xe] }
 0x28a   : > { %v2068_v48 = vpop.f32.mrf.mxu0  ;;  %v3079_v4 = vunpack.c.l.b16 %v3029_v38  ;;  %v2647_v17 = vpack.c.b16 %v2636_v23, %v2635_v42  ;;  %v2325_v54 = vrot.slane %v6619_v24, 5  ;;  %v2593_v57 = vrot.slane %v2591_v21, 4 }
 0x28b   : > { %v1847_v11 = vadd.f32 %v1816_v19, %v1564_v26  ;;  %v6631_v26 = vrot.slane %v6617_v61, 9  ;;  %v6880_v23 = vrot.slane %v6866_v46, 9 }
 0x28c   : > { %v3091_v19 = vpack.c.b16 %v3080_v47, %v3079_v4 }
 0x28d   : > { %v2198_v50 = vpop.f32.mrf.mxu1  ;;  %v2097_v32 = vadd.f32 %v2066_v2, %v1847_v11  ;;  %v7698_v11 = vld [vmem:[%s10682_s3 + $0x18] sm:$0xff]  ;;  %v2323_v4 = vsel %vm9030_vm5, %v6631_v26, %v2322_v18 }
 0x28e   : > { %3423 = vmatpush.bf16.msrb.mxu3 %v7698_v11 }
 0x28f   : > { %v9517_v2 = vadd.f32 %v2196_v9, %v2097_v32  ;;  %v6698_v9 = vld [vmem:[%s8864_s10 + $0x10c] sm:$0x8]  ;;  %v2594_v32 = vrot.slane %v6700_v35, 7  ;;  %v6702_v35 = vld [vmem:[%s8864_s10 + $0x128] sm:$0xf] }
 0x290   : > { %v1565_v12 = vpop.f32.mrf.mxu2  ;;  %v6712_v38 = vrot.slane %v6698_v9, 11 }
 0x291   : > { %v1818_v14 = vpop.f32.mrf.mxu3  ;;  %v1566_v56 = vadd.f32 %v1565_v12, %v9356_v6  ;;  %v2324_v6 = vrot.slane %v2322_v18, 4 }
 0x292   : > { %v2071_v34 = vpop.f32.mrf.mxu0  ;;  %v2592_v7 = vsel %vm9021_vm4, %v6712_v38, %v2591_v21  ;;  %v7819_v21 = vld [vmem:[%s10681_s2 + $0x298] sm:$0xff]  ;;  %v7772_v38 = vld [vmem:[%s8864_s10 + $0x110] sm:$0xff] }
 0x293   : > { %v1848_v22 = vadd.f32 %v1818_v14, %v1566_v56  ;;  %v2326_v47 = vsel %vm9030_vm5, %v2324_v6, %v2325_v54  ;;  %v2637_v53 = vunpack.c.l.b16 %v2592_v7  ;;  %3711 = vmatpush.bf16.msrb.mxu0 %v7819_v21  ;;  %v6870_v54 = vld [vmem:[%s8864_s10 + $0x12c] sm:$0xf]  ;;  %v6869_v7 = vld [vmem:[%s8864_s10 + $0x128] sm:$0xe] }
 0x294   : > { %v2369_v18 = vunpack.c.l.b16 %v2326_v47 }
 0x295   : > { %v2201_v36 = vpop.f32.mrf.mxu1  ;;  %v2098_v30 = vadd.f32 %v2068_v48, %v1848_v22  ;;  %2466 = vmatmul.bf16.gmra.mxu2 %v2378_v62  ;;  %2913 = vmatmul.bf16.gmra.mxu0 %v7771_v31  ;;  %v2368_v62 = vunpack.c.l.b16 %v2323_v4  ;;  %v7793_v22 = vld [vmem:[%s10682_s3 + $0x50] sm:$0xff]  ;;  %v3042_v4 = vrot.slane %v6870_v54, 5 }
 0x296   : > { %2735 = vmatmul.bf16.gmra.mxu3 %v2647_v17  ;;  %v3039_v17 = vsel %vm9030_vm5, %v3037_v63, %v3038_v39  ;;  %3327 = vmatpush.bf16.msrb.mxu2 %v7793_v22  ;;  %v6703_v63 = vld [vmem:[%s8864_s10 + $0x12c] sm:$0x7] }
 0x297   : > { %v9531_v52 = vadd.f32 %v2198_v50, %v2098_v30  ;;  %v2595_v50 = vsel %vm9021_vm4, %v2593_v57, %v2594_v32  ;;  %v3082_v9 = vunpack.c.l.b16 %v3039_v17  ;;  %v2379_v6 = vpack.c.b16 %v2369_v18, %v2368_v62 }
 0x298   : > { %3179 = vmatmul.bf16.gmra.mxu1 %v3091_v19  ;;  %v1568_v42 = vpop.f32.mrf.mxu2  ;;  %v2638_v31 = vunpack.c.l.b16 %v2595_v50  ;;  %v6621_v19 = vld [vmem:[%s8864_s10 + $0xfc] sm:$0xf]  ;;  %v2598_v57 = vrot.slane %v6702_v35, 7  ;;  %v6871_v50 = vld [vmem:[%s8864_s10 + $0x130] sm:$0x1]  ;;  %v3044_v21 = vrot.slane %v3042_v4, 4 }
 0x299   : > { %v1821_v48 = vpop.f32.mrf.mxu3  ;;  %v1569_v59 = vadd.f32 %v1568_v42, %v9212_v44  ;;  %v3036_v44 = vsel %vm9030_vm5, %v6880_v23, %v3035_v43  ;;  %v2329_v11 = vrot.slane %v6621_v19, 5  ;;  %v6622_v23 = vld [vmem:[%s8864_s10 + $0x100] sm:$0x1]  ;;  %v3045_v22 = vrot.slane %v6871_v50, 5 }
 0x29a   : > { %v2073_v14 = vpop.f32.mrf.mxu0  ;;  %v3081_v24 = vunpack.c.l.b16 %v3036_v44  ;;  %v2648_v46 = vpack.c.b16 %v2638_v31, %v2637_v53  ;;  %v2332_v62 = vrot.slane %v6622_v23, 5  ;;  %v2600_v17 = vrot.slane %v2598_v57, 4  ;;  %v6624_v23 = vld [vmem:[%s8864_s10 + $0x114] sm:$0xf] }
 0x29b   : > { %v1849_v12 = vadd.f32 %v1821_v48, %v1569_v59  ;;  %v6632_v59 = vrot.slane %v6620_v20, 9  ;;  %v6881_v31 = vrot.slane %v6869_v7, 9  ;;  %v7696_v20 = vld [vmem:[%s10682_s3 + $0x8] sm:$0xff]  ;;  %v7807_v7 = vld [vmem:[%s10681_s2 + $0x278] sm:$0xff] }
 0x29c   : > { %v3092_v48 = vpack.c.b16 %v3082_v9, %v3081_v24  ;;  %3836 = vmatpush.bf16.msrb.mxu1 %v7807_v7 }
 0x29d   : > { %v2203_v56 = vpop.f32.mrf.mxu1  ;;  %v2099_v61 = vadd.f32 %v2071_v34, %v1849_v12  ;;  %v7697_v12 = vld [vmem:[%s10682_s3 + $0x10] sm:$0xff]  ;;  %v2330_v24 = vsel %vm9030_vm5, %v6632_v59, %v2329_v11  ;;  %v6705_v59 = vld [vmem:[%s8864_s10 + $0x140] sm:$0xf] }
 0x29e   : > { %3424 = vmatpush.bf16.msrb.mxu3 %v7697_v12 }
 0x29f   : > { %v9554_v34 = vadd.f32 %v2201_v36, %v2099_v61  ;;  %v6701_v36 = vld [vmem:[%s8864_s10 + $0x124] sm:$0x8]  ;;  %v2601_v61 = vrot.slane %v6703_v63, 7 }
 0x2a0   : > { %v1570_v26 = vpop.f32.mrf.mxu2  ;;  %v6713_v44 = vrot.slane %v6701_v36, 11 }
 0x2a1   : > { %v1823_v43 = vpop.f32.mrf.mxu3  ;;  %v1571_v30 = vadd.f32 %v1570_v26, %v9237_v5  ;;  %v2331_v5 = vrot.slane %v2329_v11, 4 }
 0x2a2   : > { %v2076_v42 = vpop.f32.mrf.mxu0  ;;  %v2599_v35 = vsel %vm9021_vm4, %v6713_v44, %v2598_v57  ;;  %3425 = vmatpush.bf16.msrb.mxu3 %v7696_v20  ;;  %v2336_v44 = vrot.slane %v6624_v23, 5 }
 0x2a3   : > { %v1850_v32 = vadd.f32 %v1823_v43, %v1571_v30  ;;  %v2333_v9 = vsel %vm9030_vm5, %v2331_v5, %v2332_v62  ;;  %v7695_v5 = vld [vmem:[%s10682_s3] sm:$0xff] }
 0x2a4   : > { %v2371_v54 = vunpack.c.l.b16 %v2333_v9 }
 0x2a5   : > { %v2206_v39 = vpop.f32.mrf.mxu1  ;;  %v2100_v47 = vadd.f32 %v2073_v14, %v1850_v32  ;;  %2471 = vmatmul.bf16.gmra.mxu2 %v2379_v6  ;;  %2918 = vmatmul.bf16.gmra.mxu0 %v7772_v38  ;;  %v2370_v6 = vunpack.c.l.b16 %v2330_v24  ;;  %v2639_v38 = vunpack.c.l.b16 %v2599_v35  ;;  %v7818_v32 = vld [vmem:[%s10681_s2 + $0x290] sm:$0xff]  ;;  %v6706_v24 = vld [vmem:[%s8864_s10 + $0x144] sm:$0x7] }
 0x2a6   : > { %2740 = vmatmul.bf16.gmra.mxu3 %v2648_v46  ;;  %v3046_v46 = vsel %vm9030_vm5, %v3044_v21, %v3045_v22  ;;  %3712 = vmatpush.bf16.msrb.mxu0 %v7818_v32  ;;  %v6625_v22 = vld [vmem:[%s8864_s10 + $0x118] sm:$0x1] }
 0x2a7   : > { %v9568_v18 = vadd.f32 %v2203_v56, %v2100_v47  ;;  %v2602_v56 = vsel %vm9021_vm4, %v2600_v17, %v2601_v61  ;;  %v3084_v63 = vunpack.c.l.b16 %v3046_v46  ;;  %v2380_v12 = vpack.c.b16 %v2371_v54, %v2370_v6  ;;  %v7773_v17 = vld [vmem:[%s8864_s10 + $0x128] sm:$0xff]  ;;  %v6623_v61 = vld [vmem:[%s8864_s10 + $0x110] sm:$0xe]  ;;  %3426 = vmatpush.bf16.msrb.mxu3 %v7695_v5 }
 0x2a8   : > { %3184 = vmatmul.bf16.gmra.mxu1 %v3092_v48  ;;  %v1573_v53 = vpop.f32.mrf.mxu2  ;;  %v2640_v57 = vunpack.c.l.b16 %v2602_v56  ;;  %v7792_v48 = vld [vmem:[%s10682_s3 + $0x48] sm:$0xff]  ;;  %v2338_v6 = vrot.slane %v2336_v44, 4  ;;  %v2339_v20 = vrot.slane %v6625_v22, 5 }
 0x2a9   : > { %v1826_v14 = vpop.f32.mrf.mxu3  ;;  %v1574_v19 = vadd.f32 %v1573_v53, %v9261_v45  ;;  %v3043_v45 = vsel %vm9030_vm5, %v6881_v31, %v3042_v4  ;;  %3328 = vmatpush.bf16.msrb.mxu2 %v7792_v48  ;;  %v2605_v53 = vrot.slane %v6705_v59, 7  ;;  %v6874_v46 = vld [vmem:[%s8864_s10 + $0x148] sm:$0x1] }
 0x2aa   : > { %v2078_v43 = vpop.f32.mrf.mxu0  ;;  %v3083_v36 = vunpack.c.l.b16 %v3043_v45  ;;  %v2649_v62 = vpack.c.b16 %v2640_v57, %v2639_v38  ;;  %v6872_v45 = vld [vmem:[%s8864_s10 + $0x140] sm:$0xe]  ;;  %v2608_v38 = vrot.slane %v6706_v24, 7 }
 0x2ab   : > { %v1851_v26 = vadd.f32 %v1826_v14, %v1574_v19  ;;  %v6704_v19 = vld [vmem:[%s8864_s10 + $0x13c] sm:$0x8]  ;;  %v2607_v54 = vrot.slane %v2605_v53, 4  ;;  %v6882_v23 = vrot.slane %v6872_v45, 9 }
 0x2ac   : > { %v3093_v21 = vpack.c.b16 %v3084_v63, %v3083_v36  ;;  %v7805_v63 = vld [vmem:[%s10681_s2 + $0x268] sm:$0xff] }
 0x2ad   : > { %v2208_v30 = vpop.f32.mrf.mxu1  ;;  %v2101_v11 = vadd.f32 %v2076_v42, %v1851_v26  ;;  %v6633_v26 = vrot.slane %v6623_v61, 9  ;;  %v2609_v5 = vsel %vm9021_vm4, %v2607_v54, %v2608_v38 }
 0x2af   : > { %v9594_v42 = vadd.f32 %v2206_v39, %v2101_v11  ;;  %v6873_v39 = vld [vmem:[%s8864_s10 + $0x144] sm:$0xf]  ;;  %v6714_v11 = vrot.slane %v6704_v19, 11 }
 0x2b0   : > { %v1575_v4 = vpop.f32.mrf.mxu2  ;;  %v3049_v35 = vrot.slane %v6873_v39, 5  ;;  %v7804_v39 = vld [vmem:[%s10681_s2 + $0x260] sm:$0xff] }
 0x2b1   : > { %v1828_v47 = vpop.f32.mrf.mxu3  ;;  %v1576_v50 = vadd.f32 %v1575_v4, %v9285_v8  ;;  %v7806_v8 = vld [vmem:[%s10681_s2 + $0x270] sm:$0xff]  ;;  %v2337_v4 = vsel %vm9030_vm5, %v6633_v26, %v2336_v44  ;;  %v7774_v26 = vld [vmem:[%s8864_s10 + $0x140] sm:$0xff] }
 0x2b2   : > { %v2081_v31 = vpop.f32.mrf.mxu0  ;;  %3837 = vmatpush.bf16.msrb.mxu1 %v7806_v8  ;;  %v3051_v36 = vrot.slane %v3049_v35, 4 }
 0x2b3   : > { %v1852_v14 = vadd.f32 %v1828_v47, %v1576_v50  ;;  %v2340_v47 = vsel %vm9030_vm5, %v2338_v6, %v2339_v20 }
 0x2b4   : > { %v2373_v61 = vunpack.c.l.b16 %v2340_v47  ;;  %v3470_v47 = vld [vmem:[%s8864_s10 + $0x4] sm:$0xc] }
 0x2b5   : > { %v2211_v9 = vpop.f32.mrf.mxu1  ;;  %v2102_v56 = vadd.f32 %v2078_v43, %v1852_v14  ;;  %2476 = vmatmul.bf16.gmra.mxu2 %v2380_v12  ;;  %2923 = vmatmul.bf16.gmra.mxu0 %v7773_v17  ;;  %v3052_v43 = vrot.slane %v6874_v46, 5  ;;  %v7791_v46 = vld [vmem:[%s10682_s3 + $0x40] sm:$0xff] }
 0x2b6   : > { %2745 = vmatmul.bf16.gmra.mxu3 %v2649_v62  ;;  %3838 = vmatpush.bf16.msrb.mxu1 %v7805_v63  ;;  %v2372_v62 = vunpack.c.l.b16 %v2337_v4  ;;  %v7801_v63 = vld [vmem:[%s10681_s2 + $0x248] sm:$0xff] }
 0x2b7   : > { %v9614_v57 = vadd.f32 %v2208_v30, %v2102_v56  ;;  %v2606_v30 = vsel %vm9021_vm4, %v6714_v11, %v2605_v53  ;;  %v3053_v44 = vsel %vm9030_vm5, %v3051_v36, %v3052_v43  ;;  %v2642_v53 = vunpack.c.l.b16 %v2609_v5  ;;  %3329 = vmatpush.bf16.msrb.mxu2 %v7791_v46  ;;  %v3474_v46 = vld [vmem:[%s8864_s10 + $0x20] sm:$0xf] }
 0x2b8   : > { %3189 = vmatmul.bf16.gmra.mxu1 %v3093_v21  ;;  %v1578_v32 = vpop.f32.mrf.mxu2  ;;  %v2641_v58 = vunpack.c.l.b16 %v2606_v30  ;;  %v3086_v21 = vunpack.c.l.b16 %v3053_v44  ;;  %v2381_v8 = vpack.c.b16 %v2373_v61, %v2372_v62  ;;  %v3472_v30 = vld [vmem:[%s8864_s10 + $0xc] sm:$0x3]  ;;  %v7816_v62 = vld [vmem:[%s10681_s2 + $0x280] sm:$0xff]  ;;  %v7831_v44 = vld [vmem:[%s10681_s2 + $0x2f8] sm:$0xff] }
 0x2b9   : > { %v1831_v48 = vpop.f32.mrf.mxu3  ;;  %v1579_v59 = vadd.f32 %v1578_v32, %v9306_v49  ;;  %v3050_v49 = vsel %vm9030_vm5, %v6882_v23, %v3049_v35  ;;  %v3471_v23 = vld [vmem:[%s8864_s10 + $0x8] sm:$0xf] }
 0x2ba   : > { %v2083_v50 = vpop.f32.mrf.mxu0  ;;  %3839 = vmatpush.bf16.msrb.mxu1 %v7804_v39  ;;  %v3085_v14 = vunpack.c.l.b16 %v3050_v49  ;;  %v2650_v56 = vpack.c.b16 %v2642_v53, %v2641_v58  ;;  %v7800_v49 = vld [vmem:[%s10681_s2 + $0x240] sm:$0xff] }
 0x2bb   : > { %v1853_v7 = vadd.f32 %v1831_v48, %v1579_v59  ;;  %v3523_v59 = vrot.slane %v3471_v23, 6  ;;  %4086 = vmatpush.bf16.msra.mxu2 %v7831_v44 }
 0x2bc   : > { %v3094_v45 = vpack.c.b16 %v3086_v21, %v3085_v14 }
 0x2bd   : > { %v2213_v12 = vpop.f32.mrf.mxu1  ;;  %v2103_v17 = vadd.f32 %v2081_v31, %v1853_v7  ;;  %v6996_v7 = vrot.slane %v3470_v47, 10 }
 0x2be   : > { %3840 = vmatpush.bf16.msrb.mxu1 %v7803_v0 }
 0x2bf   : > { %v9635_v22 = vadd.f32 %v2211_v9, %v2103_v17  ;;  %v7817_v9 = vld [vmem:[%s10681_s2 + $0x288] sm:$0xff]  ;;  %v3524_v39 = vsel %vm9660_vm8, %v6996_v7, %v3523_v59 }
 0x2c0   : > { %v1580_v19 = vpop.f32.mrf.mxu2  ;;  %3713 = vmatpush.bf16.msrb.mxu0 %v7817_v9  ;;  %v3756_v14 = vunpack.c.l.b16 %v3524_v39 }
 0x2c1   : > { %v1833_v24 = vpop.f32.mrf.mxu3  ;;  %v1581_v35 = vadd.f32 %v1580_v19, %v9326_v15  ;;  %v7802_v15 = vld [vmem:[%s10681_s2 + $0x250] sm:$0xff] }
 0x2c2   : > { %v2086_v6 = vpop.f32.mrf.mxu0  ;;  %3841 = vmatpush.bf16.msrb.mxu1 %v7802_v15  ;;  %v3530_v15 = vrot.slane %v3474_v46, 6  ;;  %v3478_v46 = vld [vmem:[%s8864_s10 + $0x3c] sm:$0x3] }
 0x2c3   : > { %v1854_v31 = vadd.f32 %v1833_v24, %v1581_v35  ;;  %v7808_v24 = vld [vmem:[%s8864_s10 + $0x8] sm:$0xff] }
 0x2c4   : > { %3714 = vmatpush.bf16.msrb.mxu0 %v7816_v62  ;;  %v3532_v23 = vrot.slane %v3530_v15, 4 }
 0x2c5   : > { %v2216_v20 = vpop.f32.mrf.mxu1  ;;  %v2104_v11 = vadd.f32 %v2083_v50, %v1854_v31  ;;  %2481 = vmatmul.bf16.gmra.mxu2 %v2381_v8  ;;  %2928 = vmatmul.bf16.gmra.mxu0 %v7774_v26  ;;  %v7888_v50 = vld [vmem:[%s10682_s3 + $0x80] sm:$0xff] }
 0x2c6   : > { %2750 = vmatmul.bf16.gmra.mxu3 %v2650_v56  ;;  %3842 = vmatpush.bf16.msrb.mxu1 %v7801_v63  ;;  %v7847_v63 = vld [vmem:[%s10681_s2 + $0x378] sm:$0xff] }
 0x2c7   : > { %v9651_v54 = vadd.f32 %v2213_v12, %v2104_v11  ;;  %v3526_v12 = vrot.slane %v3472_v30, 6 }
 0x2c8   : > { %3194 = vmatmul.bf16.gmra.mxu1 %v3094_v45  ;;  %v1583_v38 = vpop.f32.mrf.mxu2  ;;  %4466 = vmatpush.bf16.msra.mxu0 %v7847_v63 }
 0x2c9   : > { %v1836_v32 = vpop.f32.mrf.mxu3  ;;  %v1584_v48 = vadd.f32 %v1583_v38, %v9343_v28  ;;  %v3525_v28 = vrot.slane %v3523_v59, 4 }
 0x2ca   : > { %v2088_v43 = vpop.f32.mrf.mxu0  ;;  %3843 = vmatpush.bf16.msrb.mxu1 %v7800_v49  ;;  %v9706_v49 = vld [vmem:[%s10683_s4 + $0x1] ss:$0 sm:$0xff] }
 0x2cb   : > { %v1855_v36 = vadd.f32 %v1836_v32, %v1584_v48  ;;  %v3527_v53 = vsel %vm9660_vm8, %v3525_v28, %v3526_v12  ;;  %v3473_v32 = vld [vmem:[%s8864_s10 + $0x1c] sm:$0xc]  ;;  %v7809_v12 = vld [vmem:[%s8864_s10 + $0x20] sm:$0xff] }
 0x2cc   : > { %v3757_v19 = vunpack.c.l.b16 %v3527_v53  ;;  %v6997_v48 = vrot.slane %v3473_v32, 10 }
 0x2cd   : > { %v2218_v4 = vpop.f32.mrf.mxu1  ;;  %v2105_v5 = vadd.f32 %v2086_v6, %v1855_v36 }
 0x2ce   : > { %v3772_v8 = vpack.c.b16 %v3757_v19, %v3756_v14  ;;  %v3531_v59 = vsel %vm9660_vm8, %v6997_v48, %v3530_v15 }
 0x2cf   : > { %v9675_v17 = vadd.f32 %v2216_v20, %v2105_v5  ;;  %v3758_v5 = vunpack.c.l.b16 %v3531_v59 }
 0x2d0   : > { %v1585_v61 = vpop.f32.mrf.mxu2 }
 0x2d1   : > { %v1838_v58 = vpop.f32.mrf.mxu3  ;;  %v1586_v21 = vadd.f32 %v1585_v61, %v9367_v29  ;;  %v7839_v29 = vld [vmem:[%s10681_s2 + $0x338] sm:$0xff] }
 0x2d2   : > { %v2894_v35 = vpop.f32.mrf.mxu0  ;;  %4336 = vmatpush.bf16.msra.mxu3 %v7839_v29 }
 0x2d3   : > { %v1856_v0 = vadd.f32 %v1838_v58, %v1586_v21  ;;  %v7838_v21 = vld [vmem:[%s10681_s2 + $0x330] sm:$0xff] }
 0x2d5   : > { %v3160_v56 = vpop.f32.mrf.mxu1  ;;  %v2106_v26 = vadd.f32 %v2088_v43, %v1856_v0  ;;  %3715 = vmatmul.bf16.vlgmr.msrb.gmra.mxu0 %v7808_v24 }
 0x2d6   : > { %3427 = vmatmul.bf16.vlgmr.msrb.gmra.mxu3 %v9235_v3  ;;  %v3475_v3 = vld [vmem:[%s8864_s10 + $0x24] sm:$0x3] }
 0x2d7   : > { %v9685_v31 = vadd.f32 %v2218_v4, %v2106_v26  ;;  %v3533_v36 = vrot.slane %v3475_v3, 6  ;;  %4337 = vmatpush.bf16.msra.mxu3 %v7838_v21  ;;  %v7829_v3 = vld [vmem:[%s10681_s2 + $0x2e8] sm:$0xff] }
 0x2d8   : > { %3844 = vmatmul.bf16.vlgmr.msrb.gmra.mxu1 %v3772_v8  ;;  %v2447_v6 = vpop.f32.mrf.mxu2  ;;  %v3477_v8 = vld [vmem:[%s8864_s10 + $0x38] sm:$0xf] }
 0x2d9   : > { %v2716_v45 = vpop.f32.mrf.mxu3  ;;  %v2487_v9 = vadd.f32 %v2447_v6, %v9406_v51  ;;  %v7830_v51 = vld [vmem:[%s10681_s2 + $0x2f0] sm:$0xff]  ;;  %v3534_v4 = vsel %vm9660_vm8, %v3532_v23, %v3533_v36  ;;  %v3537_v6 = vrot.slane %v3477_v8, 6 }
 0x2da   : > { %v2896_v11 = vpop.f32.mrf.mxu0  ;;  %v3759_v7 = vunpack.c.l.b16 %v3534_v4  ;;  %4087 = vmatpush.bf16.msra.mxu2 %v7830_v51  ;;  %v7810_v4 = vld [vmem:[%s8864_s10 + $0x38] sm:$0xff]  ;;  %v3481_v8 = vld [vmem:[%s8864_s10 + $0x54] sm:$0x3] }
 0x2db   : > { %v2756_v20 = vadd.f32 %v2716_v45, %v2487_v9  ;;  %v3476_v9 = vld [vmem:[%s8864_s10 + $0x34] sm:$0xc]  ;;  %v3539_v15 = vrot.slane %v3537_v6, 4 }
 0x2dc   : > { %v3773_v61 = vpack.c.b16 %v3759_v7, %v3758_v5 }
 0x2dd   : > { %v3162_v38 = vpop.f32.mrf.mxu1  ;;  %v2934_v43 = vadd.f32 %v2894_v35, %v2756_v20 }
 0x2de   : > { %4088 = vmatpush.bf16.msra.mxu2 %v7829_v3 }
 0x2df   : > { %v3200_v62 = vadd.f32 %v3160_v56, %v2934_v43 }
 0x2e0   : > { %v2449_v47 = vpop.f32.mrf.mxu2 }
 0x2e1   : > { %v2718_v30 = vpop.f32.mrf.mxu3  ;;  %v2488_v28 = vadd.f32 %v2449_v47, %v9420_v40  ;;  %v3218_v40 = vadd.f32 %v9706_v49, %v3200_v62 }
 0x2e2   : > { %v2899_v39 = vpop.f32.mrf.mxu0 }
 0x2e3   : > { %v2757_v44 = vadd.f32 %v2718_v30, %v2488_v28 }
 0x2e5   : > { %v3165_v58 = vpop.f32.mrf.mxu1  ;;  %v2935_v53 = vadd.f32 %v2896_v11, %v2757_v44  ;;  %3720 = vmatmul.bf16.gmra.mxu0 %v7809_v12  ;;  %v6998_v11 = vrot.slane %v3476_v9, 10 }
 0x2e6   : > { %3432 = vmatmul.bf16.gmra.mxu3 %v9300_v13  ;;  %v3234_v13 = vmax.f32 %v3218_v40, 0.0  ;;  %v3480_v40 = vld [vmem:[%s8864_s10 + $0x50] sm:$0xf] }
 0x2e7   : > { %v3201_v14 = vadd.f32 %v3162_v38, %v2935_v53  ;;  %v3540_v38 = vrot.slane %v3478_v46, 6  ;;  %v3538_v48 = vsel %vm9660_vm8, %v6998_v11, %v3537_v6 }
 0x2e8   : > { %3849 = vmatmul.bf16.gmra.mxu1 %v3773_v61  ;;  %v2452_v19 = vpop.f32.mrf.mxu2  ;;  %v3760_v63 = vunpack.c.l.b16 %v3538_v48 }
 0x2e9   : > { %v2721_v24 = vpop.f32.mrf.mxu3  ;;  %v3219_v0 = vadd.f32 %v9706_v49, %v3201_v14  ;;  %v2489_v35 = vadd.f32 %v2452_v19, %v9443_v10  ;;  %v7846_v10 = vld [vmem:[%s10681_s2 + $0x370] sm:$0xff]  ;;  %v3541_v43 = vsel %vm9660_vm8, %v3539_v15, %v3540_v38 }
 0x2ea   : > { %v2901_v29 = vpop.f32.mrf.mxu0  ;;  %4467 = vmatpush.bf16.msra.mxu0 %v7846_v10  ;;  %v3761_v59 = vunpack.c.l.b16 %v3541_v43  ;;  %v7811_v10 = vld [vmem:[%s8864_s10 + $0x50] sm:$0xff] }
 0x2eb   : > { %v3235_v56 = vmax.f32 %v3219_v0, 0.0  ;;  %v2758_v26 = vadd.f32 %v2721_v24, %v2489_v35  ;;  %v3544_v24 = vrot.slane %v3480_v40, 6  ;;  %v3479_v35 = vld [vmem:[%s8864_s10 + $0x4c] sm:$0xc] }
 0x2ec   : > { %v3774_v7 = vpack.c.b16 %v3761_v59, %v3760_v63 }
 0x2ed   : > { %v3167_v45 = vpop.f32.mrf.mxu1  ;;  %v3250_v20 = vpack.c.bf16 %v3235_v56, %v3234_v13  ;;  %v2936_v32 = vadd.f32 %v2899_v39, %v2758_v26  ;;  %v6999_v56 = vrot.slane %v3479_v35, 10  ;;  %v3546_v26 = vrot.slane %v3544_v24, 4 }
 0x2ef   : > { %3330 = vmatmul.bf16.vlgmr.msrb.gmra.mxu2 %v3250_v20  ;;  %v3202_v47 = vadd.f32 %v3165_v58, %v2936_v32  ;;  %v3545_v9 = vsel %vm9660_vm8, %v6999_v56, %v3544_v24 }
 0x2f0   : > { %v2454_v23 = vpop.f32.mrf.mxu2  ;;  %v3762_v15 = vunpack.c.l.b16 %v3545_v9 }
 0x2f1   : > { %v2723_v36 = vpop.f32.mrf.mxu3  ;;  %v2490_v51 = vadd.f32 %v2454_v23, %v9457_v1  ;;  %v3220_v44 = vadd.f32 %v9706_v49, %v3202_v47  ;;  %v7837_v1 = vld [vmem:[%s10681_s2 + $0x328] sm:$0xff] }
 0x2f2   : > { %v2904_v5 = vpop.f32.mrf.mxu0  ;;  %4338 = vmatpush.bf16.msra.mxu3 %v7837_v1 }
 0x2f3   : > { %v2759_v30 = vadd.f32 %v2723_v36, %v2490_v51  ;;  %v3236_v21 = vmax.f32 %v3220_v44, 0.0 }
 0x2f5   : > { %v3170_v28 = vpop.f32.mrf.mxu1  ;;  %v2937_v12 = vadd.f32 %v2901_v29, %v2759_v30  ;;  %3725 = vmatmul.bf16.gmra.mxu0 %v7810_v4  ;;  %v3547_v29 = vrot.slane %v3481_v8, 6 }
 0x2f6   : > { %3437 = vmatmul.bf16.gmra.mxu3 %v9328_v16 }
 0x2f7   : > { %v3203_v62 = vadd.f32 %v3167_v45, %v2937_v12  ;;  %v7828_v45 = vld [vmem:[%s10681_s2 + $0x2e0] sm:$0xff]  ;;  %v3548_v11 = vsel %vm9660_vm8, %v3546_v26, %v3547_v29  ;;  %v7812_v26 = vld [vmem:[%s8864_s10 + $0x68] sm:$0xff] }
 0x2f8   : > { %3854 = vmatmul.bf16.gmra.mxu1 %v3774_v7  ;;  %v2457_v39 = vpop.f32.mrf.mxu2  ;;  %4089 = vmatpush.bf16.msra.mxu2 %v7828_v45  ;;  %v3763_v32 = vunpack.c.l.b16 %v3548_v11  ;;  %v3483_v7 = vld [vmem:[%s8864_s10 + $0x68] sm:$0xf] }
 0x2f9   : > { %v2726_v61 = vpop.f32.mrf.mxu3  ;;  %v2491_v58 = vadd.f32 %v2457_v39, %v9480_v41  ;;  %v3221_v53 = vadd.f32 %v9706_v49, %v3203_v62  ;;  %v7845_v41 = vld [vmem:[%s10681_s2 + $0x368] sm:$0xff]  ;;  %v3551_v44 = vrot.slane %v3483_v7, 6  ;;  %v3482_v39 = vld [vmem:[%s8864_s10 + $0x64] sm:$0xc]  ;;  %v7826_v7 = vld [vmem:[%s10681_s2 + $0x2d0] sm:$0xff] }
 0x2fa   : > { %v2906_v14 = vpop.f32.mrf.mxu0  ;;  %4468 = vmatpush.bf16.msra.mxu0 %v7845_v41  ;;  %v3775_v36 = vpack.c.b16 %v3763_v32, %v3762_v15 }
 0x2fb   : > { %v2760_v16 = vadd.f32 %v2726_v61, %v2491_v58  ;;  %v3237_v19 = vmax.f32 %v3221_v53, 0.0  ;;  %v3484_v61 = vld [vmem:[%s8864_s10 + $0x6c] sm:$0x3]  ;;  %v7000_v53 = vrot.slane %v3482_v39, 10  ;;  %v3553_v40 = vrot.slane %v3551_v44, 4 }
 0x2fd   : > { %v3172_v0 = vpop.f32.mrf.mxu1  ;;  %v3251_v13 = vpack.c.bf16 %v3237_v19, %v3236_v21  ;;  %v2938_v6 = vadd.f32 %v2904_v5, %v2760_v16  ;;  %v3554_v16 = vrot.slane %v3484_v61, 6  ;;  %v7827_v21 = vld [vmem:[%s10681_s2 + $0x2d8] sm:$0xff]  ;;  %v3552_v19 = vsel %vm9660_vm8, %v7000_v53, %v3551_v44  ;;  %v7813_v61 = vld [vmem:[%s8864_s10 + $0x80] sm:$0xff] }
 0x2fe   : > { %v3764_v8 = vunpack.c.l.b16 %v3552_v19  ;;  %4090 = vmatpush.bf16.msra.mxu2 %v7827_v21 }
 0x2ff   : > { %3335 = vmatmul.bf16.gmra.mxu2 %v3251_v13  ;;  %v3204_v3 = vadd.f32 %v3170_v28, %v2938_v6  ;;  %v3555_v35 = vsel %vm9660_vm8, %v3553_v40, %v3554_v16 }
 0x300   : > { %v2459_v46 = vpop.f32.mrf.mxu2  ;;  %v3765_v56 = vunpack.c.l.b16 %v3555_v35 }
 0x301   : > { %v2728_v20 = vpop.f32.mrf.mxu3  ;;  %v2492_v38 = vadd.f32 %v2459_v46, %v9494_v25  ;;  %v3222_v59 = vadd.f32 %v9706_v49, %v3204_v3  ;;  %v7836_v25 = vld [vmem:[%s10681_s2 + $0x320] sm:$0xff] }
 0x302   : > { %v2909_v23 = vpop.f32.mrf.mxu0  ;;  %4339 = vmatpush.bf16.msra.mxu3 %v7836_v25  ;;  %v3776_v45 = vpack.c.b16 %v3765_v56, %v3764_v8  ;;  %v3486_v3 = vld [vmem:[%s8864_s10 + $0x80] sm:$0xf]  ;;  %4091 = vmatpush.bf16.msra.mxu2 %v7826_v7 }
 0x303   : > { %v2761_v48 = vadd.f32 %v2728_v20, %v2492_v38  ;;  %v3238_v12 = vmax.f32 %v3222_v59, 0.0  ;;  %v3487_v59 = vld [vmem:[%s8864_s10 + $0x84] sm:$0x3] }
 0x305   : > { %v3175_v43 = vpop.f32.mrf.mxu1  ;;  %v2939_v63 = vadd.f32 %v2906_v14, %v2761_v48  ;;  %3730 = vmatmul.bf16.gmra.mxu0 %v7811_v10 }
 0x306   : > { %3442 = vmatmul.bf16.gmra.mxu3 %v9376_v27 }
 0x307   : > { %v3205_v51 = vadd.f32 %v3172_v0, %v2939_v63 }
 0x308   : > { %3859 = vmatmul.bf16.gmra.mxu1 %v3775_v36  ;;  %v2462_v4 = vpop.f32.mrf.mxu2 }
 0x309   : > { %v2731_v47 = vpop.f32.mrf.mxu3  ;;  %v2493_v30 = vadd.f32 %v2462_v4, %v9517_v2  ;;  %v3223_v5 = vadd.f32 %v9706_v49, %v3205_v51  ;;  %v7844_v2 = vld [vmem:[%s10681_s2 + $0x360] sm:$0xff]  ;;  %v3485_v51 = vld [vmem:[%s8864_s10 + $0x7c] sm:$0xc] }
 0x30a   : > { %v2911_v28 = vpop.f32.mrf.mxu0  ;;  %4469 = vmatpush.bf16.msra.mxu0 %v7844_v2  ;;  %v7001_v4 = vrot.slane %v3485_v51, 10 }
 0x30b   : > { %v2762_v27 = vadd.f32 %v2731_v47, %v2493_v30  ;;  %v3239_v62 = vmax.f32 %v3223_v5, 0.0  ;;  %v3561_v30 = vrot.slane %v3487_v59, 6 }
 0x30d   : > { %v3177_v1 = vpop.f32.mrf.mxu1  ;;  %v3252_v58 = vpack.c.bf16 %v3239_v62, %v3238_v12  ;;  %v2940_v14 = vadd.f32 %v2909_v23, %v2762_v27 }
 0x30f   : > { %3340 = vmatmul.bf16.gmra.mxu2 %v3252_v58  ;;  %v3206_v29 = vadd.f32 %v3175_v43, %v2940_v14  ;;  %v3558_v43 = vrot.slane %v3486_v3, 6 }
 0x310   : > { %v2464_v24 = vpop.f32.mrf.mxu2 }
 0x311   : > { %v2733_v0 = vpop.f32.mrf.mxu3  ;;  %v2494_v13 = vadd.f32 %v2464_v24, %v9531_v52  ;;  %v3224_v11 = vadd.f32 %v9706_v49, %v3206_v29  ;;  %v7835_v52 = vld [vmem:[%s10681_s2 + $0x318] sm:$0xff]  ;;  %v3560_v47 = vrot.slane %v3558_v43, 4  ;;  %v3559_v27 = vsel %vm9660_vm8, %v7001_v4, %v3558_v43 }
 0x312   : > { %v2914_v41 = vpop.f32.mrf.mxu0  ;;  %4340 = vmatpush.bf16.msra.mxu3 %v7835_v52  ;;  %v3766_v44 = vunpack.c.l.b16 %v3559_v27  ;;  %v7814_v43 = vld [vmem:[%s8864_s10 + $0x98] sm:$0xff]  ;;  %v7841_v27 = vld [vmem:[%s10681_s2 + $0x348] sm:$0xff] }
 0x313   : > { %v2763_v6 = vadd.f32 %v2733_v0, %v2494_v13  ;;  %v3240_v23 = vmax.f32 %v3224_v11, 0.0  ;;  %v3562_v62 = vsel %vm9660_vm8, %v3560_v47, %v3561_v30  ;;  %v3489_v13 = vld [vmem:[%s8864_s10 + $0x98] sm:$0xf] }
 0x314   : > { %v3767_v39 = vunpack.c.l.b16 %v3562_v62  ;;  %v3492_v62 = vld [vmem:[%s8864_s10 + $0xb0] sm:$0xf] }
 0x315   : > { %v3180_v9 = vpop.f32.mrf.mxu1  ;;  %v2941_v46 = vadd.f32 %v2911_v28, %v2763_v6  ;;  %3735 = vmatmul.bf16.gmra.mxu0 %v7812_v26  ;;  %v3565_v6 = vrot.slane %v3489_v13, 6 }
 0x316   : > { %3447 = vmatmul.bf16.gmra.mxu3 %v9252_v33  ;;  %v3777_v16 = vpack.c.b16 %v3767_v39, %v3766_v44 }
 0x317   : > { %v3207_v20 = vadd.f32 %v3177_v1, %v2941_v46  ;;  %v3567_v11 = vrot.slane %v3565_v6, 4 }
 0x318   : > { %3864 = vmatmul.bf16.gmra.mxu1 %v3776_v45  ;;  %v2467_v15 = vpop.f32.mrf.mxu2  ;;  %v3488_v45 = vld [vmem:[%s8864_s10 + $0x94] sm:$0xc] }
 0x319   : > { %v2736_v38 = vpop.f32.mrf.mxu3  ;;  %v2495_v32 = vadd.f32 %v2467_v15, %v9554_v34  ;;  %v3225_v10 = vadd.f32 %v9706_v49, %v3207_v20  ;;  %v7843_v34 = vld [vmem:[%s10681_s2 + $0x358] sm:$0xff]  ;;  %v7002_v20 = vrot.slane %v3488_v45, 10  ;;  %v7815_v45 = vld [vmem:[%s8864_s10 + $0xb0] sm:$0xff] }
 0x31a   : > { %v2916_v48 = vpop.f32.mrf.mxu0  ;;  %4470 = vmatpush.bf16.msra.mxu0 %v7843_v34 }
 0x31b   : > { %v2764_v33 = vadd.f32 %v2736_v38, %v2495_v32  ;;  %v3241_v36 = vmax.f32 %v3225_v10, 0.0  ;;  %v7825_v38 = vld [vmem:[%s10681_s2 + $0x2c8] sm:$0xff]  ;;  %v3566_v32 = vsel %vm9660_vm8, %v7002_v20, %v3565_v6 }
 0x31c   : > { %4092 = vmatpush.bf16.msra.mxu2 %v7825_v38  ;;  %v8049_v6 = vld [vmem:[%s8864_s10 + $0x68] sm:$0xf]  ;;  %v7189_v38 = vld [vmem:[%s8864_s10 + $0x6c] sm:$0x3] }
 0x31d   : > { %v3182_v63 = vpop.f32.mrf.mxu1  ;;  %v3253_v25 = vpack.c.bf16 %v3241_v36, %v3240_v23  ;;  %v2942_v5 = vadd.f32 %v2914_v41, %v2764_v33 }
 0x31f   : > { %3345 = vmatmul.bf16.gmra.mxu2 %v3253_v25  ;;  %v3208_v58 = vadd.f32 %v3180_v9, %v2942_v5  ;;  %v3490_v9 = vld [vmem:[%s8864_s10 + $0x9c] sm:$0x3] }
 0x320   : > { %v2469_v28 = vpop.f32.mrf.mxu2  ;;  %v3568_v52 = vrot.slane %v3490_v9, 6  ;;  %v7853_v9 = vld [vmem:[%s10681_s2 + $0x3a8] sm:$0xff] }
 0x321   : > { %v2738_v12 = vpop.f32.mrf.mxu3  ;;  %v2496_v1 = vadd.f32 %v2469_v28, %v9568_v18  ;;  %v3226_v19 = vadd.f32 %v9706_v49, %v3208_v58  ;;  %v7834_v18 = vld [vmem:[%s10681_s2 + $0x310] sm:$0xff]  ;;  %v3572_v58 = vrot.slane %v3492_v62, 6 }
 0x322   : > { %v2919_v40 = vpop.f32.mrf.mxu0  ;;  %4341 = vmatpush.bf16.msra.mxu3 %v7834_v18  ;;  %v3569_v33 = vsel %vm9660_vm8, %v3567_v11, %v3568_v52  ;;  %v7824_v18 = vld [vmem:[%s10681_s2 + $0x2c0] sm:$0xff] }
 0x323   : > { %v2765_v53 = vadd.f32 %v2738_v12, %v2496_v1  ;;  %v3242_v26 = vmax.f32 %v3226_v19, 0.0  ;;  %v3769_v36 = vunpack.c.l.b16 %v3569_v33  ;;  %4093 = vmatpush.bf16.msra.mxu2 %v7824_v18 }
 0x325   : > { %v3185_v14 = vpop.f32.mrf.mxu1  ;;  %v2943_v2 = vadd.f32 %v2916_v48, %v2765_v53  ;;  %3740 = vmatmul.bf16.gmra.mxu0 %v7813_v61  ;;  %v3768_v48 = vunpack.c.l.b16 %v3566_v32 }
 0x326   : > { %3452 = vmatmul.bf16.gmra.mxu3 %v9302_v37 }
 0x327   : > { %v3209_v21 = vadd.f32 %v3182_v63, %v2943_v2  ;;  %v3778_v25 = vpack.c.b16 %v3769_v36, %v3768_v48 }
 0x328   : > { %3869 = vmatmul.bf16.gmra.mxu1 %v3777_v16  ;;  %v2472_v24 = vpop.f32.mrf.mxu2  ;;  %v3493_v16 = vld [vmem:[%s8864_s10 + $0xb4] sm:$0x3] }
 0x329   : > { %v2741_v0 = vpop.f32.mrf.mxu3  ;;  %v2497_v35 = vadd.f32 %v2472_v24, %v9594_v42  ;;  %v3227_v8 = vadd.f32 %v9706_v49, %v3209_v21  ;;  %v7842_v42 = vld [vmem:[%s10681_s2 + $0x350] sm:$0xff]  ;;  %v3574_v21 = vrot.slane %v3572_v58, 4  ;;  %v3575_v19 = vrot.slane %v3493_v16, 6 }
 0x32a   : > { %v2921_v56 = vpop.f32.mrf.mxu0  ;;  %4471 = vmatpush.bf16.msra.mxu0 %v7842_v42  ;;  %v7188_v42 = vld [vmem:[%s8864_s10 + $0x64] sm:$0xc] }
 0x32b   : > { %v2766_v37 = vadd.f32 %v2741_v0, %v2497_v35  ;;  %v3243_v29 = vmax.f32 %v3227_v8, 0.0  ;;  %v7854_v8 = vld [vmem:[%s10681_s2 + $0x3b0] sm:$0xff]  ;;  %v3576_v13 = vsel %vm9660_vm8, %v3574_v21, %v3575_v19  ;;  %v7190_v19 = vld [vmem:[%s8864_s10 + $0x7c] sm:$0xc] }
 0x32d   : > { %v3187_v41 = vpop.f32.mrf.mxu1  ;;  %v3254_v46 = vpack.c.bf16 %v3243_v29, %v3242_v26  ;;  %v2944_v15 = vadd.f32 %v2919_v40, %v2766_v37  ;;  %v3491_v40 = vld [vmem:[%s8864_s10 + $0xac] sm:$0xc]  ;;  %v3771_v29 = vunpack.c.l.b16 %v3576_v13  ;;  %v7308_v13 = vld [vmem:[%s8864_s10 + $0x68] sm:$0xc] }
 0x32e   : > { %4472 = vmatpush.bf16.msra.mxu0 %v7841_v27  ;;  %v7003_v2 = vrot.slane %v3491_v40, 10 }
 0x32f   : > { %3350 = vmatmul.bf16.gmra.mxu2 %v3254_v46  ;;  %v3210_v63 = vadd.f32 %v3185_v14, %v2944_v15 }
 0x330   : > { %v2474_v10 = vpop.f32.mrf.mxu2  ;;  %v3573_v24 = vsel %vm9660_vm8, %v7003_v2, %v3572_v58  ;;  %v7849_v2 = vld [vmem:[%s10681_s2 + $0x388] sm:$0xff] }
 0x331   : > { %v2743_v3 = vpop.f32.mrf.mxu3  ;;  %v2498_v23 = vadd.f32 %v2474_v10, %v9614_v57  ;;  %v3228_v5 = vadd.f32 %v9706_v49, %v3210_v63  ;;  %v7833_v57 = vld [vmem:[%s10681_s2 + $0x308] sm:$0xff]  ;;  %v3770_v37 = vunpack.c.l.b16 %v3573_v24  ;;  %v7204_v10 = vrot.slane %v7188_v42, 10  ;;  %v7840_v63 = vld [vmem:[%s10681_s2 + $0x340] sm:$0xff] }
 0x332   : > { %v2924_v59 = vpop.f32.mrf.mxu0  ;;  %4342 = vmatpush.bf16.msra.mxu3 %v7833_v57  ;;  %4473 = vmatpush.bf16.msra.mxu0 %v7840_v63  ;;  %v7205_v24 = vrot.slane %v7190_v19, 10  ;;  %v3885_v63 = vld [vmem:[%s8864_s10 + $0x8] sm:$0xc] }
 0x333   : > { %v2767_v51 = vadd.f32 %v2743_v3, %v2498_v23  ;;  %v3244_v39 = vmax.f32 %v3228_v5, 0.0  ;;  %v3779_v52 = vpack.c.b16 %v3771_v29, %v3770_v37  ;;  %v4188_v3 = vrot.slane %v7189_v38, 6  ;;  %v7309_v37 = vld [vmem:[%s8864_s10 + $0x70] sm:$0x3] }
 0x335   : > { %v3190_v4 = vpop.f32.mrf.mxu1  ;;  %v2945_v47 = vadd.f32 %v2921_v56, %v2767_v51  ;;  %3745 = vmatmul.bf16.gmra.mxu0 %v7814_v43  ;;  %v7832_v56 = vld [vmem:[%s10681_s2 + $0x300] sm:$0xff] }
 0x336   : > { %3457 = vmatmul.bf16.gmra.mxu3 %v9340_v55  ;;  %v7855_v55 = vld [vmem:[%s10681_s2 + $0x3b8] sm:$0xff]  ;;  %v7852_v43 = vld [vmem:[%s10681_s2 + $0x3a0] sm:$0xff] }
 0x337   : > { %v3211_v30 = vadd.f32 %v3187_v41, %v2945_v47  ;;  %4716 = vmatpush.bf16.msra.mxu1 %v7855_v55  ;;  %v4185_v41 = vrot.slane %v8049_v6, 6  ;;  %4343 = vmatpush.bf16.msra.mxu3 %v7832_v56  ;;  %v8052_v56 = vld [vmem:[%s8864_s10 + $0x6c] sm:$0xf] }
 0x338   : > { %3874 = vmatmul.bf16.gmra.mxu1 %v3778_v25  ;;  %v2477_v34 = vpop.f32.mrf.mxu2 }
 0x339   : > { %v2746_v7 = vpop.f32.mrf.mxu3  ;;  %v2499_v28 = vadd.f32 %v2477_v34, %v9635_v22  ;;  %v3229_v12 = vadd.f32 %v9706_v49, %v3211_v30 }
 0x33a   : > { %v2926_v1 = vpop.f32.mrf.mxu0 }
 0x33b   : > { %v2768_v44 = vadd.f32 %v2746_v7, %v2499_v28  ;;  %v3245_v61 = vmax.f32 %v3229_v12, 0.0  ;;  %4717 = vmatpush.bf16.msra.mxu1 %v7854_v8  ;;  %v7863_v28 = vld [vmem:[%s10681_s2 + $0x3f8] sm:$0xff] }
 0x33c   : > { %4985 = vmatpush.bf16.msrb.mxu2 %v7863_v28 }
 0x33d   : > { %v3192_v53 = vpop.f32.mrf.mxu1  ;;  %v3255_v14 = vpack.c.bf16 %v3245_v61, %v3244_v39  ;;  %v2946_v22 = vadd.f32 %v2924_v59, %v2768_v44  ;;  %v4186_v59 = vsel %vm9660_vm8, %v7204_v10, %v4185_v41  ;;  %v7850_v44 = vld [vmem:[%s10681_s2 + $0x390] sm:$0xff]  ;;  %v8050_v39 = vld [vmem:[%s8864_s10 + $0x80] sm:$0xf] }
 0x33e   : > { %v4256_v7 = vunpack.c.l.b16 %v4186_v59  ;;  %v4192_v61 = vrot.slane %v8050_v39, 6 }
 0x33f   : > { %3355 = vmatmul.bf16.gmra.mxu2 %v3255_v14  ;;  %v3212_v46 = vadd.f32 %v3190_v4, %v2946_v22  ;;  %4718 = vmatpush.bf16.msra.mxu1 %v7853_v9  ;;  %v7851_v4 = vld [vmem:[%s10681_s2 + $0x398] sm:$0xff]  ;;  %v7191_v22 = vld [vmem:[%s8864_s10 + $0x84] sm:$0x3] }
 0x340   : > { %v2479_v0 = vpop.f32.mrf.mxu2  ;;  %v4195_v8 = vrot.slane %v7191_v22, 6  ;;  %v4193_v38 = vsel %vm9660_vm8, %v7205_v24, %v4192_v61 }
 0x341   : > { %v2748_v35 = vpop.f32.mrf.mxu3  ;;  %v2500_v26 = vadd.f32 %v2479_v0, %v9651_v54  ;;  %v4187_v54 = vrot.slane %v4185_v41, 4  ;;  %v3230_v48 = vadd.f32 %v9706_v49, %v3212_v46  ;;  %v4194_v0 = vrot.slane %v4192_v61, 4  ;;  %v7848_v46 = vld [vmem:[%s10681_s2 + $0x380] sm:$0xff] }
 0x342   : > { %v2929_v11 = vpop.f32.mrf.mxu0  ;;  %v7324_v41 = vrot.slane %v7308_v13, 10  ;;  %v3889_v13 = vld [vmem:[%s8864_s10 + $0x24] sm:$0xf] }
 0x343   : > { %v2769_v20 = vadd.f32 %v2748_v35, %v2500_v26  ;;  %4719 = vmatpush.bf16.msra.mxu1 %v7852_v43  ;;  %v4189_v25 = vsel %vm9660_vm8, %v4187_v54, %v4188_v3  ;;  %v3246_v5 = vmax.f32 %v3230_v48, 0.0  ;;  %v8051_v35 = vld [vmem:[%s8864_s10 + $0x68] sm:$0xff]  ;;  %v4565_v26 = vrot.slane %v8052_v56, 6 }
 0x344   : > { %v4257_v27 = vunpack.c.l.b16 %v4189_v25 }
 0x345   : > { %v3195_v15 = vpop.f32.mrf.mxu1  ;;  %v2947_v32 = vadd.f32 %v2926_v1, %v2769_v20  ;;  %3750 = vmatmul.bf16.gmra.mxu0 %v7815_v45  ;;  %v7879_v1 = vld [vmem:[%s10681_s2 + $0x438] sm:$0xff]  ;;  %v4568_v45 = vrot.slane %v7309_v37, 6  ;;  %v4566_v42 = vsel %vm9660_vm8, %v7324_v41, %v4565_v26 }
 0x346   : > { %3462 = vmatmul.bf16.gmra.mxu3 %v9383_v60  ;;  %v7887_v20 = vld [vmem:[%s10681_s2 + $0x478] sm:$0xff]  ;;  %v4636_v10 = vunpack.c.l.b16 %v4566_v42 }
 0x347   : > { %v3213_v33 = vadd.f32 %v3192_v53, %v2947_v32  ;;  %4720 = vmatpush.bf16.msra.mxu1 %v7851_v4  ;;  %v4272_v53 = vpack.c.b16 %v4257_v27, %v4256_v7  ;;  %5163 = vmatpush.bf16.msrb.mxu3 %v7879_v1  ;;  %v4196_v32 = vsel %vm9660_vm8, %v4194_v0, %v4195_v8  ;;  %v7862_v4 = vld [vmem:[%s10681_s2 + $0x3f0] sm:$0xff]  ;;  %v7193_v1 = vld [vmem:[%s8864_s10 + $0x9c] sm:$0x3] }
 0x348   : > { %3879 = vmatmul.bf16.gmra.mxu1 %v3779_v52  ;;  %v2482_v23 = vpop.f32.mrf.mxu2  ;;  %5429 = vmatpush.bf16.msrb.mxu0 %v7887_v20  ;;  %v4259_v59 = vunpack.c.l.b16 %v4196_v32  ;;  %v3942_v20 = vrot.slane %v3889_v13, 6 }
 0x349   : > { %v2751_v36 = vpop.f32.mrf.mxu3  ;;  %v2501_v60 = vadd.f32 %v2482_v23, %v9675_v17  ;;  %v3231_v51 = vadd.f32 %v9706_v49, %v3213_v33  ;;  %4986 = vmatpush.bf16.msrb.mxu2 %v7862_v4 }
 0x34a   : > { %v2931_v30 = vpop.f32.mrf.mxu0 }
 0x34b   : > { %v2770_v47 = vadd.f32 %v2751_v36, %v2501_v60  ;;  %v3247_v57 = vmax.f32 %v3231_v51, 0.0  ;;  %4721 = vmatpush.bf16.msra.mxu1 %v7850_v44  ;;  %v3887_v60 = vld [vmem:[%s8864_s10 + $0x10] sm:$0x3]  ;;  %v4258_v51 = vunpack.c.l.b16 %v4193_v38  ;;  %v7192_v44 = vld [vmem:[%s8864_s10 + $0x94] sm:$0xc] }
 0x34c   : > { %v7206_v61 = vrot.slane %v7192_v44, 10 }
 0x34d   : > { %v3197_v17 = vpop.f32.mrf.mxu1  ;;  %v3256_v34 = vpack.c.bf16 %v3247_v57, %v3246_v5  ;;  %v2948_v55 = vadd.f32 %v2929_v11, %v2770_v47  ;;  %v4567_v11 = vrot.slane %v4565_v26, 4  ;;  %v3938_v57 = vrot.slane %v3887_v60, 6 }
 0x34e   : > { %v4273_v27 = vpack.c.b16 %v4259_v59, %v4258_v51 }
 0x34f   : > { %3360 = vmatmul.bf16.gmra.mxu2 %v3256_v34  ;;  %v3214_v40 = vadd.f32 %v3195_v15, %v2948_v55  ;;  %4722 = vmatpush.bf16.msra.mxu1 %v7849_v2  ;;  %v3886_v15 = vld [vmem:[%s8864_s10 + $0xc] sm:$0xf]  ;;  %v4569_v54 = vsel %vm9660_vm8, %v4567_v11, %v4568_v45  ;;  %v8053_v34 = vld [vmem:[%s8864_s10 + $0x98] sm:$0xf]  ;;  %v8055_v2 = vld [vmem:[%s8864_s10 + $0x84] sm:$0xf] }
 0x350   : > { %v2484_v12 = vpop.f32.mrf.mxu2  ;;  %v4637_v48 = vunpack.c.l.b16 %v4569_v54  ;;  %v3935_v23 = vrot.slane %v3886_v15, 6  ;;  %v4199_v7 = vrot.slane %v8053_v34, 6  ;;  %v3890_v15 = vld [vmem:[%s8864_s10 + $0x28] sm:$0x3] }
 0x351   : > { %v2753_v62 = vpop.f32.mrf.mxu3  ;;  %v2502_v58 = vadd.f32 %v2484_v12, %v9685_v31  ;;  %v3232_v6 = vadd.f32 %v9706_v49, %v3214_v40  ;;  %v4202_v40 = vrot.slane %v7193_v1, 6  ;;  %v7861_v54 = vld [vmem:[%s10681_s2 + $0x3e8] sm:$0xff] }
 0x352   : > { %v3716_v14 = vpop.f32.mrf.mxu0  ;;  %v4652_v25 = vpack.c.b16 %v4637_v48, %v4636_v10  ;;  %v3937_v5 = vrot.slane %v3935_v23, 4  ;;  %v4200_v56 = vsel %vm9660_vm8, %v7206_v61, %v4199_v7  ;;  %v3945_v48 = vrot.slane %v3890_v15, 6  ;;  %4987 = vmatpush.bf16.msrb.mxu2 %v7861_v54  ;;  %v7876_v54 = vld [vmem:[%s10681_s2 + $0x420] sm:$0xff] }
 0x353   : > { %v2771_v16 = vadd.f32 %v2753_v62, %v2502_v58  ;;  %4723 = vmatpush.bf16.msra.mxu1 %v7848_v46  ;;  %v3248_v3 = vmax.f32 %v3232_v6, 0.0  ;;  %v4201_v58 = vrot.slane %v4199_v7, 4  ;;  %v4260_v42 = vunpack.c.l.b16 %v4200_v56 }
 0x354   : > { %v3939_v12 = vsel %vm9660_vm8, %v3937_v5, %v3938_v57  ;;  %v7194_v57 = vld [vmem:[%s8864_s10 + $0xac] sm:$0xc] }
 0x355   : > { %v3845_v21 = vpop.f32.mrf.mxu1  ;;  %v2949_v18 = vadd.f32 %v2931_v30, %v2771_v16  ;;  %4474 = vmatmul.bf16.vlgmr.msra.gmra.mxu0 %v8051_v35  ;;  %v7132_v30 = vrot.slane %v3885_v63, 10  ;;  %v7310_v16 = vld [vmem:[%s8864_s10 + $0x80] sm:$0xc]  ;;  %v4007_v22 = vunpack.c.l.b16 %v3939_v12  ;;  %v7886_v35 = vld [vmem:[%s10681_s2 + $0x470] sm:$0xff]  ;;  %v4203_v26 = vsel %vm9660_vm8, %v4201_v58, %v4202_v40  ;;  %v7313_v12 = vld [vmem:[%s8864_s10 + $0xa0] sm:$0x3] }
 0x356   : > { %4344 = vmatmul.bf16.vlgmr.msra.gmra.mxu3 %v4272_v53  ;;  %v9888_v31 = vadd.f32 %v3845_v21, %v3716_v14  ;;  %v8054_v53 = vld [vmem:[%s8864_s10 + $0x80] sm:$0xff]  ;;  %v7311_v14 = vld [vmem:[%s8864_s10 + $0x88] sm:$0x3]  ;;  %v4572_v21 = vrot.slane %v8055_v2, 6  ;;  %5430 = vmatpush.bf16.msrb.mxu0 %v7886_v35  ;;  %v4261_v38 = vunpack.c.l.b16 %v4203_v26  ;;  %v7207_v7 = vrot.slane %v7194_v57, 10 }
 0x357   : > { %v3215_v29 = vadd.f32 %v3197_v17, %v2949_v18  ;;  %v7878_v17 = vld [vmem:[%s10681_s2 + $0x430] sm:$0xff]  ;;  %v3936_v28 = vsel %vm9660_vm8, %v7132_v30, %v3935_v23  ;;  %v7325_v18 = vrot.slane %v7310_v16, 10  ;;  %v4575_v24 = vrot.slane %v7311_v14, 6  ;;  %v7877_v23 = vld [vmem:[%s10681_s2 + $0x428] sm:$0xff]  ;;  %v3892_v2 = vld [vmem:[%s8864_s10 + $0x3c] sm:$0xf] }
 0x358   : > { %4724 = vmatmul.bf16.vlgmr.msra.gmra.mxu1 %v4652_v25  ;;  %5164 = vmatpush.bf16.msrb.mxu3 %v7878_v17  ;;  %v4006_v19 = vunpack.c.l.b16 %v3936_v28  ;;  %v4574_v8 = vrot.slane %v4572_v21, 4  ;;  %v4274_v60 = vpack.c.b16 %v4261_v38, %v4260_v42  ;;  %v7195_v17 = vld [vmem:[%s8864_s10 + $0xb4] sm:$0x3]  ;;  %v7312_v28 = vld [vmem:[%s8864_s10 + $0x98] sm:$0xc]  ;;  %v7885_v16 = vld [vmem:[%s10681_s2 + $0x468] sm:$0xff] }
 0x359   : > { %v9895_v9 = vpop.f32.mrf.mxu3  ;;  %v3233_v52 = vadd.f32 %v9706_v49, %v3215_v29  ;;  %v4573_v37 = vsel %vm9660_vm8, %v7325_v18, %v4572_v21  ;;  %v7326_v58 = vrot.slane %v7312_v28, 10  ;;  %v3949_v26 = vrot.slane %v3892_v2, 6 }
 0x35a   : > { %v9913_v33 = vpop.f32.mrf.mxu0  ;;  %v4576_v29 = vsel %vm9660_vm8, %v4574_v8, %v4575_v24  ;;  %v4638_v6 = vunpack.c.l.b16 %v4573_v37  ;;  %v4022_v41 = vpack.c.b16 %v4007_v22, %v4006_v19  ;;  %5431 = vmatpush.bf16.msrb.mxu0 %v7885_v16  ;;  %v3895_v16 = vld [vmem:[%s8864_s10 + $0x54] sm:$0xf] }
 0x35b   : > { %v3249_v49 = vmax.f32 %v3233_v52, 0.0  ;;  %v4639_v46 = vunpack.c.l.b16 %v4576_v29  ;;  %v3888_v52 = vld [vmem:[%s8864_s10 + $0x20] sm:$0xc]  ;;  %v3951_v38 = vrot.slane %v3949_v26, 4 }
 0x35c   : > { %5165 = vmatpush.bf16.msrb.mxu3 %v7877_v23 }
 0x35d   : > { %v9915_v36 = vpop.f32.mrf.mxu1  ;;  %v3257_v43 = vpack.c.bf16 %v3249_v49, %v3248_v3  ;;  %v4653_v32 = vpack.c.b16 %v4639_v46, %v4638_v6  ;;  %v7133_v3 = vrot.slane %v3888_v52, 10  ;;  %v3944_v49 = vrot.slane %v3942_v20, 4  ;;  %v3891_v6 = vld [vmem:[%s8864_s10 + $0x38] sm:$0xc] }
 0x35e   : > { %v7134_v42 = vrot.slane %v3891_v6, 10 }
 0x35f   : > { %3365 = vmatmul.bf16.gmra.mxu2 %v3257_v43  ;;  %v8056_v43 = vld [vmem:[%s8864_s10 + $0xb0] sm:$0xf]  ;;  %v3943_v4 = vsel %vm9660_vm8, %v7133_v3, %v3942_v20  ;;  %v3946_v30 = vsel %vm9660_vm8, %v3944_v49, %v3945_v48  ;;  %v8059_v3 = vld [vmem:[%s8864_s10 + $0xc8] sm:$0xf] }
 0x360   : > { %v4206_v63 = vrot.slane %v8056_v43, 6  ;;  %v4008_v1 = vunpack.c.l.b16 %v3943_v4  ;;  %v4009_v61 = vunpack.c.l.b16 %v3946_v30  ;;  %v4213_v49 = vrot.slane %v8059_v3, 6  ;;  %5166 = vmatpush.bf16.msrb.mxu3 %v7876_v54  ;;  %v7196_v4 = vld [vmem:[%s8864_s10 + $0xc4] sm:$0xc]  ;;  %v7197_v30 = vld [vmem:[%s8864_s10 + $0xcc] sm:$0x3] }
 0x361   : > { %v9922_v47 = vpop.f32.mrf.mxu3  ;;  %v7208_v57 = vrot.slane %v7196_v4, 10  ;;  %v7875_v3 = vld [vmem:[%s10681_s2 + $0x418] sm:$0xff] }
 0x362   : > { %v3721_v55 = vpop.f32.mrf.mxu0  ;;  %v4207_v22 = vsel %vm9660_vm8, %v7207_v7, %v4206_v63  ;;  %v4023_v13 = vpack.c.b16 %v4009_v61, %v4008_v1  ;;  %v8060_v7 = vld [vmem:[%s8864_s10 + $0xb0] sm:$0xff] }
 0x363   : > { %v4262_v46 = vunpack.c.l.b16 %v4207_v22 }
 0x364   : > { %5167 = vmatpush.bf16.msrb.mxu3 %v7875_v3 }
 0x365   : > { %v3850_v62 = vpop.f32.mrf.mxu1  ;;  %4479 = vmatmul.bf16.gmra.mxu0 %v8054_v53  ;;  %v4582_v53 = vrot.slane %v7313_v12, 6 }
 0x366   : > { %4349 = vmatmul.bf16.gmra.mxu3 %v4273_v27  ;;  %v9934_v39 = vadd.f32 %v3850_v62, %v3721_v55  ;;  %v4208_v27 = vrot.slane %v4206_v63, 4  ;;  %v8057_v55 = vld [vmem:[%s8864_s10 + $0x98] sm:$0xff] }
 0x367   : > { %v8058_v62 = vld [vmem:[%s8864_s10 + $0x9c] sm:$0xf] }
 0x368   : > { %4729 = vmatmul.bf16.gmra.mxu1 %v4653_v32  ;;  %v4579_v44 = vrot.slane %v8058_v62, 6 }
 0x369   : > { %v9940_v0 = vpop.f32.mrf.mxu3 }
 0x36a   : > { %v9954_v45 = vpop.f32.mrf.mxu0  ;;  %v4581_v14 = vrot.slane %v4579_v44, 4  ;;  %v4580_v21 = vsel %vm9660_vm8, %v7326_v58, %v4579_v44  ;;  %v7884_v58 = vld [vmem:[%s10681_s2 + $0x460] sm:$0xff] }
 0x36b   : > { %v4640_v35 = vunpack.c.l.b16 %v4580_v21  ;;  %v4214_v21 = vsel %vm9660_vm8, %v7208_v57, %v4213_v49  ;;  %5432 = vmatpush.bf16.msrb.mxu0 %v7884_v58  ;;  %v7198_v57 = vld [vmem:[%s8864_s10 + $0xdc] sm:$0xc] }
 0x36c   : > { %v4583_v24 = vsel %vm9660_vm8, %v4581_v14, %v4582_v53 }
 0x36d   : > { %v9956_v11 = vpop.f32.mrf.mxu1  ;;  %v4641_v56 = vunpack.c.l.b16 %v4583_v24 }
 0x36f   : > { %4094 = vmatmul.bf16.vlgmr.msra.gmra.mxu2 %v4022_v41  ;;  %v3893_v41 = vld [vmem:[%s8864_s10 + $0x40] sm:$0x3]  ;;  %v4654_v52 = vpack.c.b16 %v4641_v56, %v4640_v35 }
 0x370   : > { %v3952_v32 = vrot.slane %v3893_v41, 6  ;;  %v3894_v41 = vld [vmem:[%s8864_s10 + $0x50] sm:$0xc] }
 0x371   : > { %v9963_v10 = vpop.f32.mrf.mxu3 }
 0x372   : > { %v3331_v51 = vpop.f32.mrf.mxu2  ;;  %v3726_v25 = vpop.f32.mrf.mxu0 }
 0x373   : > { %v9970_v59 = vadd.f32 %v9895_v9, %v3331_v51  ;;  %v4209_v9 = vrot.slane %v7195_v17, 6  ;;  %v3953_v51 = vsel %vm9660_vm8, %v3951_v38, %v3952_v32  ;;  %v4215_v17 = vrot.slane %v4213_v49, 4  ;;  %v8062_v49 = vld [vmem:[%s8864_s10 + $0xe0] sm:$0xf] }
 0x374   : > { %v4011_v62 = vunpack.c.l.b16 %v3953_v51  ;;  %v7135_v38 = vrot.slane %v3894_v41, 10 }
 0x375   : > { %v3855_v5 = vpop.f32.mrf.mxu1  ;;  %4484 = vmatmul.bf16.gmra.mxu0 %v8057_v55  ;;  %v4210_v18 = vsel %vm9660_vm8, %v4208_v27, %v4209_v9  ;;  %v7314_v27 = vld [vmem:[%s8864_s10 + $0xb0] sm:$0xc]  ;;  %v7315_v55 = vld [vmem:[%s8864_s10 + $0xb8] sm:$0x3]  ;;  %v8061_v9 = vld [vmem:[%s8864_s10 + $0xb4] sm:$0xf] }
 0x376   : > { %4354 = vmatmul.bf16.gmra.mxu3 %v4274_v60  ;;  %v9978_v34 = vadd.f32 %v3855_v5, %v3726_v25  ;;  %v4263_v20 = vunpack.c.l.b16 %v4210_v18  ;;  %v3950_v60 = vsel %vm9660_vm8, %v7134_v42, %v3949_v26  ;;  %v4586_v28 = vrot.slane %v8061_v9, 6  ;;  %v7316_v9 = vld [vmem:[%s8864_s10 + $0xc8] sm:$0xc] }
 0x377   : > { %v4010_v12 = vunpack.c.l.b16 %v3950_v60  ;;  %v7327_v44 = vrot.slane %v7314_v27, 10  ;;  %v4589_v1 = vrot.slane %v7315_v55, 6  ;;  %v3956_v26 = vrot.slane %v3895_v16, 6  ;;  %v8063_v55 = vld [vmem:[%s8864_s10 + $0xc8] sm:$0xff] }
 0x378   : > { %4734 = vmatmul.bf16.gmra.mxu1 %v4654_v52  ;;  %v4275_v48 = vpack.c.b16 %v4263_v20, %v4262_v46  ;;  %v4588_v53 = vrot.slane %v4586_v28, 4  ;;  %v3896_v46 = vld [vmem:[%s8864_s10 + $0x58] sm:$0x3]  ;;  %v4264_v20 = vunpack.c.l.b16 %v4214_v21  ;;  %v7328_v58 = vrot.slane %v7316_v9, 10  ;;  %v3898_v21 = vld [vmem:[%s8864_s10 + $0x6c] sm:$0xf] }
 0x379   : > { %v9984_v40 = vpop.f32.mrf.mxu3  ;;  %v4587_v14 = vsel %vm9660_vm8, %v7327_v44, %v4586_v28  ;;  %v4024_v35 = vpack.c.b16 %v4011_v62, %v4010_v12  ;;  %v3958_v32 = vrot.slane %v3956_v26, 4  ;;  %v3959_v54 = vrot.slane %v3896_v46, 6  ;;  %v7317_v28 = vld [vmem:[%s8864_s10 + $0xd0] sm:$0x3]  ;;  %v8064_v12 = vld [vmem:[%s8864_s10 + $0xcc] sm:$0xf] }
 0x37a   : > { %v3333_v19 = vpop.f32.mrf.mxu2  ;;  %v10001_v37 = vpop.f32.mrf.mxu0  ;;  %v4590_v22 = vsel %vm9660_vm8, %v4588_v53, %v4589_v1  ;;  %v4642_v18 = vunpack.c.l.b16 %v4587_v14  ;;  %v4593_v62 = vrot.slane %v8064_v12, 6  ;;  %v4596_v53 = vrot.slane %v7317_v28, 6  ;;  %v7883_v14 = vld [vmem:[%s10681_s2 + $0x458] sm:$0xff]  ;;  %v7200_v28 = vld [vmem:[%s8864_s10 + $0xf4] sm:$0xc] }
 0x37b   : > { %v9999_v8 = vadd.f32 %v9922_v47, %v3333_v19  ;;  %v7860_v47 = vld [vmem:[%s10681_s2 + $0x3e0] sm:$0xff]  ;;  %v4643_v56 = vunpack.c.l.b16 %v4590_v22  ;;  %v3960_v4 = vsel %vm9660_vm8, %v3958_v32, %v3959_v54  ;;  %5433 = vmatpush.bf16.msrb.mxu0 %v7883_v14  ;;  %v3899_v32 = vld [vmem:[%s8864_s10 + $0x70] sm:$0x3]  ;;  %v7201_v12 = vld [vmem:[%s8864_s10 + $0xfc] sm:$0x3] }
 0x37c   : > { %4988 = vmatpush.bf16.msrb.mxu2 %v7860_v47  ;;  %v4013_v1 = vunpack.c.l.b16 %v3960_v4  ;;  %v8065_v4 = vld [vmem:[%s8864_s10 + $0xf8] sm:$0xf]  ;;  %v7319_v14 = vld [vmem:[%s8864_s10 + $0xe8] sm:$0x3] }
 0x37d   : > { %v10003_v29 = vpop.f32.mrf.mxu1  ;;  %v4655_v47 = vpack.c.b16 %v4643_v56, %v4642_v18 }
 0x37f   : > { %4099 = vmatmul.bf16.gmra.mxu2 %v4023_v13 }
 0x381   : > { %v10010_v15 = vpop.f32.mrf.mxu3 }
 0x382   : > { %v3336_v23 = vpop.f32.mrf.mxu2  ;;  %v3731_v63 = vpop.f32.mrf.mxu0 }
 0x383   : > { %v10017_v43 = vadd.f32 %v9940_v0, %v3336_v23  ;;  %v4216_v0 = vrot.slane %v7197_v30, 6 }
 0x385   : > { %v3860_v25 = vpop.f32.mrf.mxu1  ;;  %4489 = vmatmul.bf16.gmra.mxu0 %v8060_v7  ;;  %v4217_v19 = vsel %vm9660_vm8, %v4215_v17, %v4216_v0  ;;  %v7199_v17 = vld [vmem:[%s8864_s10 + $0xe4] sm:$0x3]  ;;  %v7209_v0 = vrot.slane %v7198_v57, 10 }
 0x386   : > { %4359 = vmatmul.bf16.gmra.mxu3 %v4275_v48  ;;  %v10025_v5 = vadd.f32 %v3860_v25, %v3731_v63  ;;  %v4265_v52 = vunpack.c.l.b16 %v4217_v19  ;;  %v4220_v48 = vrot.slane %v8062_v49, 6  ;;  %v3957_v25 = vsel %vm9660_vm8, %v7135_v38, %v3956_v26  ;;  %v3897_v38 = vld [vmem:[%s8864_s10 + $0x68] sm:$0xc] }
 0x387   : > { %v4012_v44 = vunpack.c.l.b16 %v3957_v25  ;;  %v4594_v19 = vsel %vm9660_vm8, %v7328_v58, %v4593_v62  ;;  %v7874_v25 = vld [vmem:[%s10681_s2 + $0x410] sm:$0xff]  ;;  %v8066_v58 = vld [vmem:[%s8864_s10 + $0xe0] sm:$0xff] }
 0x388   : > { %4739 = vmatmul.bf16.gmra.mxu1 %v4655_v47  ;;  %v4276_v23 = vpack.c.b16 %v4265_v52, %v4264_v20  ;;  %v4222_v27 = vrot.slane %v4220_v48, 4  ;;  %v4221_v18 = vsel %vm9660_vm8, %v7209_v0, %v4220_v48  ;;  %v4644_v26 = vunpack.c.l.b16 %v4594_v19  ;;  %5168 = vmatpush.bf16.msrb.mxu3 %v7874_v25 }
 0x389   : > { %v10031_v61 = vpop.f32.mrf.mxu3  ;;  %v4025_v46 = vpack.c.b16 %v4013_v1, %v4012_v44  ;;  %v3963_v47 = vrot.slane %v3898_v21, 6  ;;  %v4266_v54 = vunpack.c.l.b16 %v4221_v18  ;;  %v7210_v44 = vrot.slane %v7200_v28, 10 }
 0x38a   : > { %v3338_v2 = vpop.f32.mrf.mxu2  ;;  %v10048_v13 = vpop.f32.mrf.mxu0 }
 0x38b   : > { %v10046_v24 = vadd.f32 %v9963_v10, %v3338_v2  ;;  %v7859_v10 = vld [vmem:[%s10681_s2 + $0x3d8] sm:$0xff]  ;;  %v4595_v2 = vrot.slane %v4593_v62, 4 }
 0x38c   : > { %4989 = vmatpush.bf16.msrb.mxu2 %v7859_v10 }
 0x38d   : > { %v10050_v6 = vpop.f32.mrf.mxu1  ;;  %v4597_v56 = vsel %vm9660_vm8, %v4595_v2, %v4596_v53  ;;  %v7318_v53 = vld [vmem:[%s8864_s10 + $0xe0] sm:$0xc]  ;;  %v8067_v2 = vld [vmem:[%s8864_s10 + $0xe4] sm:$0xf] }
 0x38e   : > { %v4645_v52 = vunpack.c.l.b16 %v4597_v56  ;;  %v4600_v21 = vrot.slane %v8067_v2, 6  ;;  %v7329_v18 = vrot.slane %v7318_v53, 10 }
 0x38f   : > { %4104 = vmatmul.bf16.gmra.mxu2 %v4024_v35 }
 0x390   : > { %v4656_v49 = vpack.c.b16 %v4645_v52, %v4644_v26  ;;  %v7882_v26 = vld [vmem:[%s10681_s2 + $0x450] sm:$0xff]  ;;  %v3901_v52 = vld [vmem:[%s8864_s10 + $0x84] sm:$0xf] }
 0x391   : > { %v10057_v42 = vpop.f32.mrf.mxu3  ;;  %5434 = vmatpush.bf16.msrb.mxu0 %v7882_v26  ;;  %v3970_v25 = vrot.slane %v3901_v52, 6  ;;  %v8069_v52 = vld [vmem:[%s8864_s10 + $0xfc] sm:$0xf] }
 0x392   : > { %v3341_v63 = vpop.f32.mrf.mxu2  ;;  %v3736_v51 = vpop.f32.mrf.mxu0 }
 0x393   : > { %v10064_v60 = vadd.f32 %v9984_v40, %v3341_v63  ;;  %v4223_v40 = vrot.slane %v7199_v17, 6  ;;  %v3965_v63 = vrot.slane %v3963_v47, 4  ;;  %v3972_v28 = vrot.slane %v3970_v25, 4 }
 0x395   : > { %v3865_v30 = vpop.f32.mrf.mxu1  ;;  %4494 = vmatmul.bf16.gmra.mxu0 %v8063_v55  ;;  %v4224_v35 = vsel %vm9660_vm8, %v4222_v27, %v4223_v40 }
 0x396   : > { %4364 = vmatmul.bf16.gmra.mxu3 %v4276_v23  ;;  %v10072_v7 = vadd.f32 %v3865_v30, %v3736_v51  ;;  %v4267_v3 = vunpack.c.l.b16 %v4224_v35  ;;  %v7136_v23 = vrot.slane %v3897_v38, 10  ;;  %v3966_v51 = vrot.slane %v3899_v32, 6 }
 0x397   : > { %v4227_v30 = vrot.slane %v8065_v4, 6  ;;  %v4603_v35 = vrot.slane %v7319_v14, 6 }
 0x398   : > { %4744 = vmatmul.bf16.gmra.mxu1 %v4656_v49  ;;  %v4277_v57 = vpack.c.b16 %v4267_v3, %v4266_v54  ;;  %v3964_v55 = vsel %vm9660_vm8, %v7136_v23, %v3963_v47  ;;  %v3967_v40 = vsel %vm9660_vm8, %v3965_v63, %v3966_v51  ;;  %v4601_v47 = vsel %vm9660_vm8, %v7329_v18, %v4600_v21 }
 0x399   : > { %v10078_v16 = vpop.f32.mrf.mxu3  ;;  %v4229_v1 = vrot.slane %v4227_v30, 4  ;;  %v4014_v19 = vunpack.c.l.b16 %v3964_v55  ;;  %v4228_v32 = vsel %vm9660_vm8, %v7210_v44, %v4227_v30  ;;  %v4646_v49 = vunpack.c.l.b16 %v4601_v47  ;;  %v3900_v30 = vld [vmem:[%s8864_s10 + $0x80] sm:$0xc]  ;;  %v7873_v44 = vld [vmem:[%s10681_s2 + $0x408] sm:$0xff] }
 0x39a   : > { %v3343_v22 = vpop.f32.mrf.mxu2  ;;  %v10095_v20 = vpop.f32.mrf.mxu0  ;;  %5169 = vmatpush.bf16.msrb.mxu3 %v7873_v44  ;;  %v4607_v47 = vrot.slane %v8069_v52, 6  ;;  %v7872_v52 = vld [vmem:[%s10681_s2 + $0x400] sm:$0xff] }
 0x39b   : > { %v10093_v41 = vadd.f32 %v10010_v15, %v3343_v22  ;;  %v7858_v15 = vld [vmem:[%s10681_s2 + $0x3d0] sm:$0xff]  ;;  %v4015_v22 = vunpack.c.l.b16 %v3967_v40 }
 0x39c   : > { %4990 = vmatpush.bf16.msrb.mxu2 %v7858_v15 }
 0x39d   : > { %v10097_v10 = vpop.f32.mrf.mxu1  ;;  %v4026_v23 = vpack.c.b16 %v4015_v22, %v4014_v19  ;;  %v7203_v19 = vld [vmem:[%s8864_s10 + $0x114] sm:$0x3]  ;;  %v7881_v22 = vld [vmem:[%s10681_s2 + $0x448] sm:$0xff] }
 0x39e   : > { %5435 = vmatpush.bf16.msrb.mxu0 %v7881_v22  ;;  %5170 = vmatpush.bf16.msrb.mxu3 %v7872_v52  ;;  %v7550_v52 = vld [vmem:[%s8864_s10 + $0xcc] sm:$0xf] }
 0x39f   : > { %4109 = vmatmul.bf16.gmra.mxu2 %v4025_v46  ;;  %v4602_v46 = vrot.slane %v4600_v21, 4  ;;  %v7202_v21 = vld [vmem:[%s8864_s10 + $0x10c] sm:$0xc] }
 0x3a1   : > { %v10104_v48 = vpop.f32.mrf.mxu3  ;;  %v4604_v3 = vsel %vm9660_vm8, %v4602_v46, %v4603_v35 }
 0x3a2   : > { %v3346_v17 = vpop.f32.mrf.mxu2  ;;  %v3741_v27 = vpop.f32.mrf.mxu0  ;;  %v4647_v51 = vunpack.c.l.b16 %v4604_v3  ;;  %v7320_v3 = vld [vmem:[%s8864_s10 + $0xf8] sm:$0xc] }
 0x3a3   : > { %v10111_v0 = vadd.f32 %v10031_v61, %v3346_v17  ;;  %v4230_v61 = vrot.slane %v7201_v12, 6  ;;  %v4268_v17 = vunpack.c.l.b16 %v4228_v32  ;;  %v7211_v32 = vrot.slane %v7202_v21, 10  ;;  %v3903_v21 = vld [vmem:[%s8864_s10 + $0x98] sm:$0xc] }
 0x3a4   : > { %v4657_v55 = vpack.c.b16 %v4647_v51, %v4646_v49  ;;  %v7321_v49 = vld [vmem:[%s8864_s10 + $0x100] sm:$0x3] }
 0x3a5   : > { %v3870_v9 = vpop.f32.mrf.mxu1  ;;  %4499 = vmatmul.bf16.gmra.mxu0 %v8066_v58  ;;  %v4231_v54 = vsel %vm9660_vm8, %v4229_v1, %v4230_v61  ;;  %v8068_v1 = vld [vmem:[%s8864_s10 + $0x110] sm:$0xf] }
 0x3a6   : > { %4369 = vmatmul.bf16.gmra.mxu3 %v4277_v57  ;;  %v10119_v62 = vadd.f32 %v3870_v9, %v3741_v27  ;;  %v3902_v57 = vld [vmem:[%s8864_s10 + $0x88] sm:$0x3]  ;;  %v4269_v27 = vunpack.c.l.b16 %v4231_v54  ;;  %v7137_v9 = vrot.slane %v3900_v30, 10  ;;  %v4234_v58 = vrot.slane %v8068_v1, 6 }
 0x3a7   : > { %v3973_v12 = vrot.slane %v3902_v57, 6  ;;  %v4237_v54 = vrot.slane %v7203_v19, 6  ;;  %v4609_v30 = vrot.slane %v4607_v47, 4 }
 0x3a8   : > { %4749 = vmatmul.bf16.gmra.mxu1 %v4657_v55  ;;  %v4278_v61 = vpack.c.b16 %v4269_v27, %v4268_v17  ;;  %v3971_v18 = vsel %vm9660_vm8, %v7137_v9, %v3970_v25  ;;  %v7330_v25 = vrot.slane %v7320_v3, 10  ;;  %v4610_v17 = vrot.slane %v7321_v49, 6  ;;  %v3904_v27 = vld [vmem:[%s8864_s10 + $0x9c] sm:$0xf] }
 0x3a9   : > { %v10125_v56 = vpop.f32.mrf.mxu3  ;;  %v3974_v35 = vsel %vm9660_vm8, %v3972_v28, %v3973_v12  ;;  %v4235_v9 = vsel %vm9660_vm8, %v7211_v32, %v4234_v58  ;;  %v3977_v19 = vrot.slane %v3904_v27, 6 }
 0x3aa   : > { %v3348_v38 = vpop.f32.mrf.mxu2  ;;  %v10142_v63 = vpop.f32.mrf.mxu0  ;;  %v4017_v51 = vunpack.c.l.b16 %v3974_v35  ;;  %v4608_v55 = vsel %vm9660_vm8, %v7330_v25, %v4607_v47  ;;  %v4611_v12 = vsel %vm9660_vm8, %v4609_v30, %v4610_v17  ;;  %v7880_v25 = vld [vmem:[%s10681_s2 + $0x440] sm:$0xff] }
 0x3ab   : > { %v10140_v15 = vadd.f32 %v10057_v42, %v3348_v38  ;;  %v7857_v42 = vld [vmem:[%s10681_s2 + $0x3c8] sm:$0xff]  ;;  %v8070_v38 = vld [vmem:[%s8864_s10 + $0xf8] sm:$0xff]  ;;  %v4648_v44 = vunpack.c.l.b16 %v4608_v55  ;;  %5436 = vmatpush.bf16.msrb.mxu0 %v7880_v25  ;;  %v8071_v55 = vld [vmem:[%s8864_s10 + $0x114] sm:$0xf] }
 0x3ac   : > { %4991 = vmatpush.bf16.msrb.mxu2 %v7857_v42  ;;  %v7549_v25 = vld [vmem:[%s8864_s10 + $0xc8] sm:$0xc] }
 0x3ad   : > { %v10144_v4 = vpop.f32.mrf.mxu1 }
 0x3af   : > { %4114 = vmatmul.bf16.gmra.mxu2 %v4026_v23  ;;  %v4016_v23 = vunpack.c.l.b16 %v3971_v18  ;;  %v3905_v18 = vld [vmem:[%s8864_s10 + $0xa0] sm:$0x3] }
 0x3b0   : > { %v3980_v32 = vrot.slane %v3905_v18, 6  ;;  %v3907_v18 = vld [vmem:[%s8864_s10 + $0xb4] sm:$0xf] }
 0x3b1   : > { %v10151_v40 = vpop.f32.mrf.mxu3 }
 0x3b2   : > { %v3351_v53 = vpop.f32.mrf.mxu2  ;;  %v3746_v2 = vpop.f32.mrf.mxu0 }
 0x3b3   : > { %v10158_v14 = vadd.f32 %v10078_v16, %v3351_v53  ;;  %v4236_v16 = vrot.slane %v4234_v58, 4  ;;  %v4270_v58 = vunpack.c.l.b16 %v4235_v9  ;;  %v8072_v9 = vld [vmem:[%s8864_s10 + $0x110] sm:$0xff] }
 0x3b5   : > { %v3875_v26 = vpop.f32.mrf.mxu1  ;;  %4504 = vmatmul.bf16.gmra.mxu0 %v8070_v38  ;;  %v4238_v28 = vsel %vm9660_vm8, %v4236_v16, %v4237_v54  ;;  %v7138_v16 = vrot.slane %v3903_v21, 10  ;;  %v3979_v38 = vrot.slane %v3977_v19, 4 }
 0x3b6   : > { %4374 = vmatmul.bf16.gmra.mxu3 %v4278_v61  ;;  %v10169_v46 = vadd.f32 %v3875_v26, %v3746_v2  ;;  %v4027_v61 = vpack.c.b16 %v4017_v51, %v4016_v23  ;;  %v4649_v2 = vunpack.c.l.b16 %v4611_v12  ;;  %v4271_v35 = vunpack.c.l.b16 %v4238_v28  ;;  %v7322_v28 = vld [vmem:[%s8864_s10 + $0x110] sm:$0xc]  ;;  %v7323_v12 = vld [vmem:[%s8864_s10 + $0x118] sm:$0x3] }
 0x3b7   : > { %v3978_v23 = vsel %vm9660_vm8, %v7138_v16, %v3977_v19  ;;  %v3981_v30 = vsel %vm9660_vm8, %v3979_v38, %v3980_v32  ;;  %v4617_v21 = vrot.slane %v7323_v12, 6 }
 0x3b8   : > { %v4658_v26 = vpack.c.b16 %v4649_v2, %v4648_v44  ;;  %v4279_v54 = vpack.c.b16 %v4271_v35, %v4270_v58  ;;  %v4019_v44 = vunpack.c.l.b16 %v3981_v30  ;;  %v7551_v30 = vld [vmem:[%s8864_s10 + $0xd0] sm:$0x3] }
 0x3b9   : > { %v10175_v57 = vpop.f32.mrf.mxu3 }
 0x3ba   : > { %v3353_v42 = vpop.f32.mrf.mxu2  ;;  %v10189_v53 = vpop.f32.mrf.mxu0  ;;  %4754 = vmatmul.bf16.gmra.mxu1 %v4658_v26 }
 0x3bb   : > { %v10187_v1 = vadd.f32 %v10104_v48, %v3353_v42  ;;  %v7856_v48 = vld [vmem:[%s10681_s2 + $0x3c0] sm:$0xff]  ;;  %v4018_v42 = vunpack.c.l.b16 %v3978_v23  ;;  %v3984_v23 = vrot.slane %v3907_v18, 6  ;;  %v7864_v18 = vld [vmem:[%s8864_s10 + $0xc8] sm:$0xff] }
 0x3bc   : > { %4992 = vmatpush.bf16.msrb.mxu2 %v7856_v48 }
 0x3bd   : > { %v10192_v22 = vpop.f32.mrf.mxu1  ;;  %v4028_v32 = vpack.c.b16 %v4019_v44, %v4018_v42  ;;  %v3986_v44 = vrot.slane %v3984_v23, 4 }
 0x3bf   : > { %4119 = vmatmul.bf16.gmra.mxu2 %v4027_v61  ;;  %v7331_v61 = vrot.slane %v7322_v28, 10  ;;  %v5281_v28 = vrot.slane %v7551_v30, 6 }
 0x3c1   : > { %v10201_v47 = vpop.f32.mrf.mxu3 }
 0x3c2   : > { %v3356_v3 = vpop.f32.mrf.mxu2  ;;  %v3751_v51 = vpop.f32.mrf.mxu0 }
 0x3c3   : > { %v10204_v49 = vadd.f32 %v10125_v56, %v3356_v3  ;;  %v4614_v56 = vrot.slane %v8071_v55, 6  ;;  %v3908_v55 = vld [vmem:[%s8864_s10 + $0xb8] sm:$0x3] }
 0x3c5   : > { %v3880_v17 = vpop.f32.mrf.mxu1  ;;  %4509 = vmatmul.bf16.gmra.mxu0 %v8072_v9  ;;  %v4616_v2 = vrot.slane %v4614_v56, 4  ;;  %v4615_v58 = vsel %vm9660_vm8, %v7331_v61, %v4614_v56  ;;  %v7573_v56 = vrot.slane %v7549_v25, 10  ;;  %v3987_v61 = vrot.slane %v3908_v55, 6 }
 0x3c6   : > { %4379 = vmatmul.bf16.gmra.mxu3 %v4279_v54  ;;  %v10213_v27 = vadd.f32 %v3880_v17, %v3751_v51  ;;  %v4650_v16 = vunpack.c.l.b16 %v4615_v58  ;;  %v3906_v54 = vld [vmem:[%s8864_s10 + $0xb0] sm:$0xc]  ;;  %v5278_v17 = vrot.slane %v7550_v52, 6 }
 0x3c7   : > { %v4618_v35 = vsel %vm9660_vm8, %v4616_v2, %v4617_v21  ;;  %v7139_v12 = vrot.slane %v3906_v54, 10 }
 0x3c8   : > { %v4651_v48 = vunpack.c.l.b16 %v4618_v35  ;;  %v5280_v9 = vrot.slane %v5278_v17, 4 }
 0x3c9   : > { %v10219_v19 = vpop.f32.mrf.mxu3  ;;  %v3985_v52 = vsel %vm9660_vm8, %v7139_v12, %v3984_v23  ;;  %v7552_v12 = vld [vmem:[%s8864_s10 + $0xe0] sm:$0xc] }
 0x3ca   : > { %v3358_v26 = vpop.f32.mrf.mxu2  ;;  %v10231_v3 = vpop.f32.mrf.mxu0  ;;  %v4659_v51 = vpack.c.b16 %v4651_v48, %v4650_v16  ;;  %v5282_v2 = vsel %vm9660_vm8, %v5280_v9, %v5281_v28  ;;  %v4020_v54 = vunpack.c.l.b16 %v3985_v52  ;;  %v7381_v9 = vld [vmem:[%s8864_s10 + $0xc4] sm:$0xc] }
 0x3cb   : > { %v10228_v38 = vadd.f32 %v10151_v40, %v3358_v26  ;;  %v5279_v40 = vsel %vm9660_vm8, %v7573_v56, %v5278_v17  ;;  %v5350_v58 = vunpack.c.l.b16 %v5282_v2  ;;  %v7553_v17 = vld [vmem:[%s8864_s10 + $0xe4] sm:$0xf]  ;;  %v7574_v2 = vrot.slane %v7552_v12, 10 }
 0x3cc   : > { %4759 = vmatmul.bf16.gmra.mxu1 %v4659_v51  ;;  %v5349_v21 = vunpack.c.l.b16 %v5279_v40  ;;  %v7554_v40 = vld [vmem:[%s8864_s10 + $0xe8] sm:$0x3] }
 0x3ce   : > { %v5365_v48 = vpack.c.b16 %v5350_v58, %v5349_v21  ;;  %v5288_v21 = vrot.slane %v7554_v40, 6  ;;  %v7405_v58 = vrot.slane %v7381_v9, 10 }
 0x3cf   : > { %4124 = vmatmul.bf16.gmra.mxu2 %v4028_v32  ;;  %v3988_v32 = vsel %vm9660_vm8, %v3986_v44, %v3987_v61  ;;  %v5285_v44 = vrot.slane %v7553_v17, 6  ;;  %v7383_v61 = vld [vmem:[%s8864_s10 + $0xcc] sm:$0x3] }
 0x3d0   : > { %v4021_v51 = vunpack.c.l.b16 %v3988_v32 }
 0x3d1   : > { %v3465_v42 = vpop.f32.mrf.mxu3 }
 0x3d2   : > { %v3361_v35 = vpop.f32.mrf.mxu2  ;;  %v10244_v16 = vpop.f32.mrf.mxu0  ;;  %v4029_v56 = vpack.c.b16 %v4021_v51, %v4020_v54  ;;  %v7865_v51 = vld [vmem:[%s8864_s10 + $0xe0] sm:$0xff] }
 0x3d3   : > { %v10242_v26 = vadd.f32 %v10175_v57, %v3361_v35  ;;  %v7382_v57 = vld [vmem:[%s8864_s10 + $0xc8] sm:$0xf]  ;;  %v5286_v35 = vsel %vm9660_vm8, %v7574_v2, %v5285_v44 }
 0x3d4   : > { %v4834_v28 = vrot.slane %v7382_v57, 6  ;;  %v5351_v54 = vunpack.c.l.b16 %v5286_v35 }
 0x3d5   : > { %5437 = vmatmul.bf16.vlgmr.msrb.gmra.mxu0 %v5365_v48  ;;  %v4837_v48 = vrot.slane %v7383_v61, 6 }
 0x3d6   : > { %5171 = vmatmul.bf16.vlgmr.msrb.gmra.mxu3 %v7864_v18  ;;  %v5287_v18 = vrot.slane %v5285_v44, 4  ;;  %v4835_v12 = vsel %vm9660_vm8, %v7405_v58, %v4834_v28  ;;  %v7895_v44 = vld [vmem:[%s10682_s3 + $0xb8] sm:$0xff] }
 0x3d7   : > { %5600 = vmatpush.bf16.msrb.mxu1 %v7895_v44 }
 0x3d8   : > { %v5289_v32 = vsel %vm9660_vm8, %v5287_v18, %v5288_v21  ;;  %v7385_v21 = vld [vmem:[%s8864_s10 + $0xe0] sm:$0xf] }
 0x3d9   : > { %v10250_v25 = vpop.f32.mrf.mxu3  ;;  %v5352_v57 = vunpack.c.l.b16 %v5289_v32  ;;  %v4841_v32 = vrot.slane %v7385_v21, 6 }
 0x3da   : > { %v3363_v30 = vpop.f32.mrf.mxu2  ;;  %v10258_v23 = vpop.f32.mrf.mxu0 }
 0x3db   : > { %v10255_v55 = vadd.f32 %v10201_v47, %v3363_v30  ;;  %v4836_v47 = vrot.slane %v4834_v28, 4  ;;  %v5366_v9 = vpack.c.b16 %v5352_v57, %v5351_v54  ;;  %v7556_v28 = vld [vmem:[%s8864_s10 + $0xfc] sm:$0xf]  ;;  %v7555_v54 = vld [vmem:[%s8864_s10 + $0xf8] sm:$0xc] }
 0x3dc   : > { %v5292_v57 = vrot.slane %v7556_v28, 6 }
 0x3dd   : > { %10709 = vst [vmem:[#allocation23_spill] sm:$0xff] %v10255_v55  ;;  %v4838_v40 = vsel %vm9660_vm8, %v4836_v47, %v4837_v48  ;;  %v7384_v47 = vld [vmem:[%s8864_s10 + $0xdc] sm:$0xc] }
 0x3de   : > { %v4906_v61 = vunpack.c.l.b16 %v4838_v40  ;;  %v5294_v40 = vrot.slane %v5292_v57, 4  ;;  %v7406_v44 = vrot.slane %v7384_v47, 10 }
 0x3df   : > { %4129 = vmatmul.bf16.gmra.mxu2 %v4029_v56 }
 0x3e0   : > { %v4842_v47 = vsel %vm9660_vm8, %v7406_v44, %v4841_v32 }
 0x3e1   : > { %v10265_v52 = vpop.f32.mrf.mxu3 }
 0x3e2   : > { %v3366_v30 = vpop.f32.mrf.mxu2  ;;  %v10273_v56 = vpop.f32.mrf.mxu0 }
 0x3e3   : > { %v10271_v17 = vadd.f32 %v10219_v19, %v3366_v30  ;;  %v4905_v19 = vunpack.c.l.b16 %v4835_v12  ;;  %v7386_v30 = vld [vmem:[%s8864_s10 + $0xe4] sm:$0x3] }
 0x3e5   : > { %10710 = vst [vmem:[#allocation24_spill] sm:$0xff] %v10271_v17  ;;  %5442 = vmatmul.bf16.gmra.mxu0 %v5366_v9  ;;  %v4921_v35 = vpack.c.b16 %v4906_v61, %v4905_v19  ;;  %v7575_v9 = vrot.slane %v7555_v54, 10 }
 0x3e6   : > { %5176 = vmatmul.bf16.gmra.mxu3 %v7865_v51  ;;  %v7557_v51 = vld [vmem:[%s8864_s10 + $0x100] sm:$0x3] }
 0x3e7   : > { %v5295_v12 = vrot.slane %v7557_v51, 6  ;;  %v5293_v17 = vsel %vm9660_vm8, %v7575_v9, %v5292_v57 }
 0x3e8   : > { %v5353_v21 = vunpack.c.l.b16 %v5293_v17  ;;  %v7894_v17 = vld [vmem:[%s10682_s3 + $0xb0] sm:$0xff] }
 0x3e9   : > { %v10282_v2 = vpop.f32.mrf.mxu3  ;;  %v5296_v61 = vsel %vm9660_vm8, %v5294_v40, %v5295_v12  ;;  %5601 = vmatpush.bf16.msrb.mxu1 %v7894_v17  ;;  %v7559_v40 = vld [vmem:[%s8864_s10 + $0x114] sm:$0xf] }
 0x3ea   : > { %v3368_v18 = vpop.f32.mrf.mxu2  ;;  %v10289_v48 = vpop.f32.mrf.mxu0  ;;  %v5354_v55 = vunpack.c.l.b16 %v5296_v61 }
 0x3eb   : > { %v10286_v58 = vadd.f32 %v3465_v42, %v3368_v18  ;;  %v4843_v42 = vrot.slane %v4841_v32, 4  ;;  %v4844_v18 = vrot.slane %v7386_v30, 6 }
 0x3ed   : > { %10711 = vst [vmem:[#allocation25_spill] sm:$0xff] %v10286_v58  ;;  %v7866_v58 = vld [vmem:[%s8864_s10 + $0xf8] sm:$0xff]  ;;  %v4845_v57 = vsel %vm9660_vm8, %v4843_v42, %v4844_v18  ;;  %v7387_v18 = vld [vmem:[%s8864_s10 + $0xf4] sm:$0xc] }
 0x3ee   : > { %v4908_v9 = vunpack.c.l.b16 %v4845_v57 }
 0x3ef   : > { %4993 = vmatmul.bf16.vlgmr.msrb.gmra.mxu2 %v4921_v35  ;;  %v5367_v35 = vpack.c.b16 %v5354_v55, %v5353_v21  ;;  %v4907_v55 = vunpack.c.l.b16 %v4842_v47  ;;  %v7389_v47 = vld [vmem:[%s8864_s10 + $0xfc] sm:$0x3] }
 0x3f1   : > { %v10296_v19 = vpop.f32.mrf.mxu3  ;;  %v4922_v42 = vpack.c.b16 %v4908_v9, %v4907_v55 }
 0x3f2   : > { %v4095_v28 = vpop.f32.mrf.mxu2  ;;  %v10302_v51 = vpop.f32.mrf.mxu0 }
 0x3f3   : > { %v4135_v54 = vadd.f32 %v4095_v28, %v9888_v31  ;;  %v7560_v28 = vld [vmem:[%s8864_s10 + $0x118] sm:$0x3] }
 0x3f4   : > { %v5302_v17 = vrot.slane %v7560_v28, 6 }
 0x3f5   : > { %v4385_v30 = vadd.f32 %v10250_v25, %v4135_v54  ;;  %5447 = vmatmul.bf16.gmra.mxu0 %v5367_v35  ;;  %v3848_v25 = vadd.f32 %v9915_v36, %v9913_v33  ;;  %v5299_v54 = vrot.slane %v7559_v40, 6  ;;  %v7407_v36 = vrot.slane %v7387_v18, 10  ;;  %v7867_v40 = vld [vmem:[%s8864_s10 + $0x110] sm:$0xff] }
 0x3f6   : > { %5181 = vmatmul.bf16.gmra.mxu3 %v7866_v58  ;;  %v7388_v58 = vld [vmem:[%s8864_s10 + $0xf8] sm:$0xf] }
 0x3f7   : > { %v10313_v31 = vadd.f32 %v10244_v16, %v4385_v30  ;;  %v4848_v21 = vrot.slane %v7388_v58, 6  ;;  %v7558_v16 = vld [vmem:[%s8864_s10 + $0x110] sm:$0xc]  ;;  %v5301_v30 = vrot.slane %v5299_v54, 4 }
 0x3f8   : > { %v7576_v57 = vrot.slane %v7558_v16, 10 }
 0x3f9   : > { %v10315_v32 = vpop.f32.mrf.mxu3  ;;  %v4850_v9 = vrot.slane %v4848_v21, 4  ;;  %v4849_v28 = vsel %vm9660_vm8, %v7407_v36, %v4848_v21 }
 0x3fa   : > { %v4097_v12 = vpop.f32.mrf.mxu2  ;;  %v10322_v61 = vpop.f32.mrf.mxu0  ;;  %v5300_v55 = vsel %vm9660_vm8, %v7576_v57, %v5299_v54  ;;  %v4909_v57 = vunpack.c.l.b16 %v4849_v28 }
 0x3fb   : > { %v4136_v44 = vadd.f32 %v4097_v12, %v3848_v25  ;;  %v4851_v25 = vrot.slane %v7389_v47, 6  ;;  %v5303_v12 = vsel %vm9660_vm8, %v5301_v30, %v5302_v17  ;;  %v7893_v47 = vld [vmem:[%s10682_s3 + $0xa8] sm:$0xff]  ;;  %v7391_v17 = vld [vmem:[%s8864_s10 + $0x110] sm:$0xf] }
 0x3fc   : > { %5602 = vmatpush.bf16.msrb.mxu1 %v7893_v47 }
 0x3fd   : > { %v4386_v35 = vadd.f32 %v10265_v52, %v4136_v44  ;;  %v5355_v52 = vunpack.c.l.b16 %v5300_v55  ;;  %v5356_v44 = vunpack.c.l.b16 %v5303_v12  ;;  %v4852_v54 = vsel %vm9660_vm8, %v4850_v9, %v4851_v25  ;;  %v7562_v55 = vld [vmem:[%s8864_s10 + $0x12c] sm:$0xf] }
 0x3fe   : > { %v4910_v30 = vunpack.c.l.b16 %v4852_v54  ;;  %v7390_v12 = vld [vmem:[%s8864_s10 + $0x10c] sm:$0xc] }
 0x3ff   : > { %4998 = vmatmul.bf16.gmra.mxu2 %v4922_v42  ;;  %v10329_v33 = vadd.f32 %v10258_v23, %v4386_v35  ;;  %v5368_v18 = vpack.c.b16 %v5356_v44, %v5355_v52  ;;  %v7563_v44 = vld [vmem:[%s8864_s10 + $0x130] sm:$0x3] }
 0x400   : > { %v4923_v25 = vpack.c.b16 %v4910_v30, %v4909_v57 }
 0x401   : > { %v10333_v58 = vpop.f32.mrf.mxu3 }
 0x402   : > { %v4100_v16 = vpop.f32.mrf.mxu2  ;;  %v10339_v23 = vpop.f32.mrf.mxu0 }
 0x403   : > { %v4137_v42 = vadd.f32 %v4100_v16, %v9934_v39  ;;  %v5306_v16 = vrot.slane %v7562_v55, 6 }
 0x405   : > { %v4387_v35 = vadd.f32 %v10282_v2, %v4137_v42  ;;  %5452 = vmatmul.bf16.gmra.mxu0 %v5368_v18  ;;  %v3853_v2 = vadd.f32 %v9956_v11, %v9954_v45  ;;  %v7392_v18 = vld [vmem:[%s8864_s10 + $0x114] sm:$0x3]  ;;  %v5308_v54 = vrot.slane %v5306_v16, 4  ;;  %v7408_v11 = vrot.slane %v7390_v12, 10 }
 0x406   : > { %5186 = vmatmul.bf16.gmra.mxu3 %v7867_v40  ;;  %v4855_v40 = vrot.slane %v7391_v17, 6  ;;  %v4858_v30 = vrot.slane %v7392_v18, 6 }
 0x407   : > { %v10350_v39 = vadd.f32 %v10273_v56, %v4387_v35  ;;  %v7561_v56 = vld [vmem:[%s8864_s10 + $0x128] sm:$0xc]  ;;  %v5309_v35 = vrot.slane %v7563_v44, 6 }
 0x408   : > { %v7577_v28 = vrot.slane %v7561_v56, 10  ;;  %v4857_v57 = vrot.slane %v4855_v40, 4  ;;  %v4856_v56 = vsel %vm9660_vm8, %v7408_v11, %v4855_v40  ;;  %v7565_v11 = vld [vmem:[%s8864_s10 + $0x144] sm:$0xf] }
 0x409   : > { %v10352_v21 = vpop.f32.mrf.mxu3  ;;  %v5310_v17 = vsel %vm9660_vm8, %v5308_v54, %v5309_v35  ;;  %v4911_v18 = vunpack.c.l.b16 %v4856_v56  ;;  %v7394_v54 = vld [vmem:[%s8864_s10 + $0x128] sm:$0xf] }
 0x40a   : > { %v4102_v36 = vpop.f32.mrf.mxu2  ;;  %v10359_v52 = vpop.f32.mrf.mxu0  ;;  %v5307_v47 = vsel %vm9660_vm8, %v7577_v28, %v5306_v16  ;;  %v5358_v55 = vunpack.c.l.b16 %v5310_v17  ;;  %v4859_v44 = vsel %vm9660_vm8, %v4857_v57, %v4858_v30  ;;  %v7393_v30 = vld [vmem:[%s8864_s10 + $0x124] sm:$0xc] }
 0x40b   : > { %v4138_v9 = vadd.f32 %v4102_v36, %v3853_v2  ;;  %v7868_v36 = vld [vmem:[%s8864_s10 + $0x128] sm:$0xff]  ;;  %v4912_v28 = vunpack.c.l.b16 %v4859_v44 }
 0x40d   : > { %v4388_v42 = vadd.f32 %v10296_v19, %v4138_v9  ;;  %v5357_v19 = vunpack.c.l.b16 %v5307_v47  ;;  %v4924_v57 = vpack.c.b16 %v4912_v28, %v4911_v18 }
 0x40f   : > { %5003 = vmatmul.bf16.gmra.mxu2 %v4923_v25  ;;  %v10366_v45 = vadd.f32 %v10289_v48, %v4388_v42  ;;  %v5369_v12 = vpack.c.b16 %v5358_v55, %v5357_v19  ;;  %v7892_v42 = vld [vmem:[%s10682_s3 + $0xa0] sm:$0xff]  ;;  %v4862_v19 = vrot.slane %v7394_v54, 6  ;;  %v5313_v55 = vrot.slane %v7565_v11, 6 }
 0x410   : > { %5603 = vmatpush.bf16.msrb.mxu1 %v7892_v42  ;;  %v7869_v54 = vld [vmem:[%s8864_s10 + $0x140] sm:$0xff] }
 0x411   : > { %v10370_v2 = vpop.f32.mrf.mxu3  ;;  %v5315_v56 = vrot.slane %v5313_v55, 4  ;;  %v4864_v42 = vrot.slane %v4862_v19, 4 }
 0x412   : > { %v4105_v9 = vpop.f32.mrf.mxu2  ;;  %v10376_v48 = vpop.f32.mrf.mxu0 }
 0x413   : > { %v4139_v25 = vadd.f32 %v4105_v9, %v9978_v34 }
 0x415   : > { %v4389_v16 = vadd.f32 %v10315_v32, %v4139_v25  ;;  %5457 = vmatmul.bf16.gmra.mxu0 %v5369_v12  ;;  %v3858_v32 = vadd.f32 %v10003_v29, %v10001_v37  ;;  %v7395_v25 = vld [vmem:[%s8864_s10 + $0x12c] sm:$0x3]  ;;  %v7409_v29 = vrot.slane %v7393_v30, 10 }
 0x416   : > { %5191 = vmatmul.bf16.gmra.mxu3 %v7868_v36  ;;  %v7566_v36 = vld [vmem:[%s8864_s10 + $0x148] sm:$0x3]  ;;  %v4865_v18 = vrot.slane %v7395_v25, 6 }
 0x417   : > { %v10387_v34 = vadd.f32 %v10302_v51, %v4389_v16  ;;  %v7564_v51 = vld [vmem:[%s8864_s10 + $0x140] sm:$0xc]  ;;  %v5316_v44 = vrot.slane %v7566_v36, 6  ;;  %v4863_v30 = vsel %vm9660_vm8, %v7409_v29, %v4862_v19 }
 0x418   : > { %v7578_v12 = vrot.slane %v7564_v51, 10  ;;  %v4866_v51 = vsel %vm9660_vm8, %v4864_v42, %v4865_v18  ;;  %v7396_v42 = vld [vmem:[%s8864_s10 + $0x13c] sm:$0xc] }
 0x419   : > { %v10389_v40 = vpop.f32.mrf.mxu3  ;;  %v4914_v25 = vunpack.c.l.b16 %v4866_v51 }
 0x41a   : > { %v4107_v35 = vpop.f32.mrf.mxu2  ;;  %v10396_v17 = vpop.f32.mrf.mxu0  ;;  %v5314_v16 = vsel %vm9660_vm8, %v7578_v12, %v5313_v55  ;;  %v7891_v55 = vld [vmem:[%s10682_s3 + $0x98] sm:$0xff]  ;;  %v7397_v12 = vld [vmem:[%s8864_s10 + $0x140] sm:$0xf] }
 0x41b   : > { %v4140_v47 = vadd.f32 %v4107_v35, %v3858_v32  ;;  %v5317_v32 = vsel %vm9660_vm8, %v5315_v56, %v5316_v44  ;;  %5604 = vmatpush.bf16.msrb.mxu1 %v7891_v55  ;;  %v7568_v44 = vld [vmem:[%s8864_s10 + $0x15c] sm:$0xf] }
 0x41c   : > { %v5360_v35 = vunpack.c.l.b16 %v5317_v32  ;;  %v4869_v32 = vrot.slane %v7397_v12, 6 }
 0x41d   : > { %v4390_v9 = vadd.f32 %v10333_v58, %v4140_v47  ;;  %v5359_v58 = vunpack.c.l.b16 %v5314_v16 }
 0x41f   : > { %5008 = vmatmul.bf16.gmra.mxu2 %v4924_v57  ;;  %v10403_v37 = vadd.f32 %v10322_v61, %v4390_v9  ;;  %v5370_v57 = vpack.c.b16 %v5360_v35, %v5359_v58  ;;  %v4913_v9 = vunpack.c.l.b16 %v4863_v30  ;;  %v7569_v58 = vld [vmem:[%s8864_s10 + $0x160] sm:$0x3] }
 0x420   : > { %v5323_v30 = vrot.slane %v7569_v58, 6  ;;  %v7890_v58 = vld [vmem:[%s10682_s3 + $0x90] sm:$0xff] }
 0x421   : > { %v10407_v28 = vpop.f32.mrf.mxu3  ;;  %v4925_v16 = vpack.c.b16 %v4914_v25, %v4913_v9  ;;  %5605 = vmatpush.bf16.msrb.mxu1 %v7890_v58 }
 0x422   : > { %v4110_v11 = vpop.f32.mrf.mxu2  ;;  %v10413_v61 = vpop.f32.mrf.mxu0 }
 0x423   : > { %v4141_v47 = vadd.f32 %v4110_v11, %v10025_v5  ;;  %v7398_v11 = vld [vmem:[%s8864_s10 + $0x144] sm:$0x3] }
 0x424   : > { %v4872_v55 = vrot.slane %v7398_v11, 6  ;;  %v7400_v11 = vld [vmem:[%s8864_s10 + $0x158] sm:$0xf] }
 0x425   : > { %v4391_v36 = vadd.f32 %v10352_v21, %v4141_v47  ;;  %5462 = vmatmul.bf16.gmra.mxu0 %v5370_v57  ;;  %v3863_v21 = vadd.f32 %v10050_v6, %v10048_v13  ;;  %v7410_v6 = vrot.slane %v7396_v42, 10 }
 0x426   : > { %5196 = vmatmul.bf16.gmra.mxu3 %v7869_v54  ;;  %v5320_v54 = vrot.slane %v7568_v44, 6 }
 0x427   : > { %v10424_v5 = vadd.f32 %v10339_v23, %v4391_v36  ;;  %v7567_v23 = vld [vmem:[%s8864_s10 + $0x158] sm:$0xc]  ;;  %v4871_v36 = vrot.slane %v4869_v32, 4 }
 0x428   : > { %v7579_v47 = vrot.slane %v7567_v23, 10  ;;  %v5322_v57 = vrot.slane %v5320_v54, 4 }
 0x429   : > { %v10426_v19 = vpop.f32.mrf.mxu3  ;;  %v4873_v42 = vsel %vm9660_vm8, %v4871_v36, %v4872_v55  ;;  %v4876_v55 = vrot.slane %v7400_v11, 6 }
 0x42a   : > { %v4112_v56 = vpop.f32.mrf.mxu2  ;;  %v10433_v18 = vpop.f32.mrf.mxu0  ;;  %v5321_v51 = vsel %vm9660_vm8, %v7579_v47, %v5320_v54  ;;  %v5324_v25 = vsel %vm9660_vm8, %v5322_v57, %v5323_v30  ;;  %v7571_v57 = vld [vmem:[%s8864_s10 + $0x174] sm:$0xf] }
 0x42b   : > { %v4142_v29 = vadd.f32 %v4112_v56, %v3863_v21  ;;  %v7870_v21 = vld [vmem:[%s8864_s10 + $0x158] sm:$0xff]  ;;  %v5362_v12 = vunpack.c.l.b16 %v5324_v25 }
 0x42c   : > { %v7572_v25 = vld [vmem:[%s8864_s10 + $0x178] sm:$0x3] }
 0x42d   : > { %v4392_v35 = vadd.f32 %v10370_v2, %v4142_v29  ;;  %v5361_v2 = vunpack.c.l.b16 %v5321_v51  ;;  %v7399_v51 = vld [vmem:[%s8864_s10 + $0x154] sm:$0xc] }
 0x42f   : > { %5013 = vmatmul.bf16.gmra.mxu2 %v4925_v16  ;;  %v10440_v13 = vadd.f32 %v10359_v52, %v4392_v35  ;;  %v5371_v29 = vpack.c.b16 %v5362_v12, %v5361_v2  ;;  %v4870_v16 = vsel %vm9660_vm8, %v7410_v6, %v4869_v32  ;;  %v4916_v35 = vunpack.c.l.b16 %v4873_v42  ;;  %v7401_v12 = vld [vmem:[%s8864_s10 + $0x15c] sm:$0x3] }
 0x430   : > { %v4915_v54 = vunpack.c.l.b16 %v4870_v16  ;;  %v5327_v2 = vrot.slane %v7571_v57, 6  ;;  %v4878_v42 = vrot.slane %v4876_v55, 4 }
 0x431   : > { %v10444_v9 = vpop.f32.mrf.mxu3 }
 0x432   : > { %v4115_v56 = vpop.f32.mrf.mxu2  ;;  %v10450_v52 = vpop.f32.mrf.mxu0  ;;  %v4926_v6 = vpack.c.b16 %v4916_v35, %v4915_v54 }
 0x433   : > { %v4143_v44 = vadd.f32 %v4115_v56, %v10072_v7 }
 0x435   : > { %v4393_v23 = vadd.f32 %v10389_v40, %v4143_v44  ;;  %5467 = vmatmul.bf16.gmra.mxu0 %v5371_v29  ;;  %v3868_v40 = vadd.f32 %v10097_v10, %v10095_v20  ;;  %v5329_v44 = vrot.slane %v5327_v2, 4  ;;  %v5330_v29 = vrot.slane %v7572_v25, 6 }
 0x436   : > { %5201 = vmatmul.bf16.gmra.mxu3 %v7870_v21  ;;  %v7411_v10 = vrot.slane %v7399_v51, 10 }
 0x437   : > { %v10461_v7 = vadd.f32 %v10376_v48, %v4393_v23  ;;  %v7570_v48 = vld [vmem:[%s8864_s10 + $0x170] sm:$0xc]  ;;  %v4879_v23 = vrot.slane %v7401_v12, 6  ;;  %v5331_v54 = vsel %vm9660_vm8, %v5329_v44, %v5330_v29  ;;  %v3873_v12 = vadd.f32 %v10144_v4, %v10142_v63 }
 0x438   : > { %v7580_v56 = vrot.slane %v7570_v48, 10  ;;  %v7889_v48 = vld [vmem:[%s10682_s3 + $0x88] sm:$0xff] }
 0x439   : > { %v10463_v32 = vpop.f32.mrf.mxu3  ;;  %5606 = vmatpush.bf16.msrb.mxu1 %v7889_v48 }
 0x43a   : > { %v4117_v47 = vpop.f32.mrf.mxu2  ;;  %v10470_v36 = vpop.f32.mrf.mxu0  ;;  %v5328_v16 = vsel %vm9660_vm8, %v7580_v56, %v5327_v2 }
 0x43b   : > { %v4144_v30 = vadd.f32 %v4117_v47, %v3868_v40  ;;  %v5363_v35 = vunpack.c.l.b16 %v5328_v16  ;;  %v5364_v40 = vunpack.c.l.b16 %v5331_v54 }
 0x43d   : > { %v4394_v21 = vadd.f32 %v10407_v28, %v4144_v30  ;;  %v7871_v28 = vld [vmem:[%s8864_s10 + $0x170] sm:$0xff]  ;;  %v5372_v57 = vpack.c.b16 %v5364_v40, %v5363_v35  ;;  %v4880_v30 = vsel %vm9660_vm8, %v4878_v42, %v4879_v23  ;;  %v7402_v42 = vld [vmem:[%s8864_s10 + $0x16c] sm:$0xc]  ;;  %5607 = vmatpush.bf16.msrb.mxu1 %v7888_v50 }
 0x43e   : > { %v4918_v2 = vunpack.c.l.b16 %v4880_v30  ;;  %v7404_v23 = vld [vmem:[%s8864_s10 + $0x174] sm:$0x3] }
 0x43f   : > { %5018 = vmatmul.bf16.gmra.mxu2 %v4926_v6  ;;  %v10477_v20 = vadd.f32 %v10396_v17, %v4394_v21  ;;  %v4877_v17 = vsel %vm9660_vm8, %v7411_v10, %v4876_v55  ;;  %v3882_v55 = vpop.f32.mrf.mxu1 }
 0x440   : > { %v4917_v25 = vunpack.c.l.b16 %v4877_v17 }
 0x441   : > { %v4377_v58 = vpop.f32.mrf.mxu3 }
 0x442   : > { %v4120_v11 = vpop.f32.mrf.mxu2  ;;  %v4510_v6 = vpop.f32.mrf.mxu0  ;;  %v4927_v29 = vpack.c.b16 %v4918_v2, %v4917_v25  ;;  %v3878_v2 = vadd.f32 %v10192_v22, %v10189_v53 }
 0x443   : > { %v4145_v47 = vadd.f32 %v4120_v11, %v10119_v62  ;;  %v4886_v11 = vrot.slane %v7404_v23, 6  ;;  %v3883_v23 = vadd.f32 %v3882_v55, %v10231_v3  ;;  %v10533_v55 = vld [vmem:[%s10683_s4 + $0x2] ss:$0 sm:$0xff] }
 0x445   : > { %v4395_v51 = vadd.f32 %v10426_v19, %v4145_v47  ;;  %5472 = vmatmul.bf16.gmra.mxu0 %v5372_v57  ;;  %v7403_v19 = vld [vmem:[%s8864_s10 + $0x170] sm:$0xf]  ;;  %s10716_s10 = sand.u32 1, %s8153_s25  }
 0x446   : > { %5206 = vmatmul.bf16.gmra.mxu3 %v7871_v28  ;;  %v4883_v10 = vrot.slane %v7403_v19, 6  ;;  %v7412_v28 = vrot.slane %v7402_v42, 10  ;;  %s5754_s9 = scalar_lea.sflag [#allocation5], %s10716_s10 }
 0x447   : > { %v10494_v62 = vadd.f32 %v10413_v61, %v4395_v51  ;;  %v4725_v35 = vpop.f32.mrf.mxu1 }
 0x448   : > { %v4885_v40 = vrot.slane %v4883_v10, 4  ;;  %v4884_v57 = vsel %vm9660_vm8, %v7412_v28, %v4883_v10 }
 0x449   : > { %v4380_v21 = vpop.f32.mrf.mxu3 }
 0x44a   : > { %v4122_v56 = vpop.f32.mrf.mxu2  ;;  %v4512_v54 = vpop.f32.mrf.mxu0 }
 0x44b   : > { %v4146_v44 = vadd.f32 %v4122_v56, %v3873_v12 }
 0x44d   : > { %v4396_v16 = vadd.f32 %v10444_v9, %v4146_v44  ;;  %v4887_v9 = vsel %vm9660_vm8, %v4885_v40, %v4886_v11 }
 0x44e   : > { %v4920_v51 = vunpack.c.l.b16 %v4887_v9 }
 0x44f   : > { %5023 = vmatmul.bf16.gmra.mxu2 %v4927_v29  ;;  %v10503_v61 = vadd.f32 %v10433_v18, %v4396_v16  ;;  %v4919_v18 = vunpack.c.l.b16 %v4884_v57  ;;  %v4727_v12 = vpop.f32.mrf.mxu1 }
 0x451   : > { %v4382_v47 = vpop.f32.mrf.mxu3  ;;  %v4928_v56 = vpack.c.b16 %v4920_v51, %v4919_v18 }
 0x452   : > { %v4125_v63 = vpop.f32.mrf.mxu2  ;;  %v5438_v25 = vpop.f32.mrf.mxu0 }
 0x453   : > { %v4147_v4 = vadd.f32 %v4125_v63, %v10169_v46 }
 0x455   : > { %v4397_v17 = vadd.f32 %v10463_v32, %v4147_v4 }
 0x457   : > { %v10512_v30 = vadd.f32 %v10450_v52, %v4397_v17  ;;  %v4730_v53 = vpop.f32.mrf.mxu1 }
 0x459   : > { %v5172_v48 = vpop.f32.mrf.mxu3 }
 0x45a   : > { %v4127_v46 = vpop.f32.mrf.mxu2  ;;  %v5440_v10 = vpop.f32.mrf.mxu0 }
 0x45b   : > { %v4148_v19 = vadd.f32 %v4127_v46, %v3878_v2 }
 0x45d   : > { %v4398_v44 = vadd.f32 %v4377_v58, %v4148_v19 }
 0x45f   : > { %5028 = vmatmul.bf16.gmra.mxu2 %v4928_v56  ;;  %v10520_v52 = vadd.f32 %v10470_v36, %v4398_v44  ;;  %v4732_v4 = vpop.f32.mrf.mxu1  ;;  %v4765_v36 = vadd.f32 %v4725_v35, %v10313_v31  ;;  %v4767_v56 = vadd.f32 %v4730_v53, %v10350_v39 }
 0x461   : > { %v5174_v32 = vpop.f32.mrf.mxu3 }
 0x462   : > { %v4130_v29 = vpop.f32.mrf.mxu2  ;;  %v5443_v58 = vpop.f32.mrf.mxu0 }
 0x463   : > { %v4149_v16 = vadd.f32 %v4130_v29, %v10213_v27 }
 0x465   : > { %v4399_v22 = vadd.f32 %v4380_v21, %v4149_v16 }
 0x467   : > { %v10523_v42 = vadd.f32 %v4510_v6, %v4399_v22  ;;  %v4735_v21 = vpop.f32.mrf.mxu1  ;;  %v4766_v6 = vadd.f32 %v4727_v12, %v10329_v33 }
 0x469   : > { %v5177_v40 = vpop.f32.mrf.mxu3 }
 0x46a   : > { %v4132_v28 = vpop.f32.mrf.mxu2  ;;  %v5445_v27 = vpop.f32.mrf.mxu0 }
 0x46b   : > { %v4150_v11 = vadd.f32 %v4132_v28, %v3883_v23 }
 0x46d   : > { %v4400_v63 = vadd.f32 %v4382_v47, %v4150_v11 }
 0x46f   : > { %v10526_v57 = vadd.f32 %v4512_v54, %v4400_v63  ;;  %v4737_v50 = vpop.f32.mrf.mxu1 }
 0x471   : > { %v5179_v18 = vpop.f32.mrf.mxu3 }
 0x472   : > { %v4994_v9 = vpop.f32.mrf.mxu2  ;;  %v5448_v19 = vpop.f32.mrf.mxu0 }
 0x473   : > { %v5034_v17 = vadd.f32 %v4994_v9, %v4765_v36  ;;  %v4769_v9 = vadd.f32 %v4735_v21, %v10387_v34 }
 0x475   : > { %v5212_v51 = vadd.f32 %v5172_v48, %v5034_v17 }
 0x477   : > { %v5478_v3 = vadd.f32 %v5438_v25, %v5212_v51  ;;  %v4740_v63 = vpop.f32.mrf.mxu1 }
 0x479   : > { %v5182_v46 = vpop.f32.mrf.mxu3  ;;  %v5496_v31 = vadd.f32 %v10533_v55, %v5478_v3 }
 0x47a   : > { %v4996_v2 = vpop.f32.mrf.mxu2  ;;  %v5450_v28 = vpop.f32.mrf.mxu0 }
 0x47b   : > { %v5035_v47 = vadd.f32 %v4996_v2, %v4766_v6  ;;  %v5512_v12 = vmax.f32 %v5496_v31, 0.0 }
 0x47d   : > { %v5213_v54 = vadd.f32 %v5174_v32, %v5035_v47  ;;  %v4768_v32 = vadd.f32 %v4732_v4, %v10366_v45 }
 0x47f   : > { %v5479_v35 = vadd.f32 %v5440_v10, %v5213_v54  ;;  %v4742_v4 = vpop.f32.mrf.mxu1 }
 0x481   : > { %v5497_v48 = vadd.f32 %v10533_v55, %v5479_v35  ;;  %v5184_v22 = vpop.f32.mrf.mxu3 }
 0x482   : > { %v4999_v33 = vpop.f32.mrf.mxu2  ;;  %v5453_v47 = vpop.f32.mrf.mxu0 }
 0x483   : > { %v5513_v25 = vmax.f32 %v5497_v48, 0.0  ;;  %v5036_v44 = vadd.f32 %v4999_v33, %v4767_v56 }
 0x485   : > { %v5528_v29 = vpack.c.bf16 %v5513_v25, %v5512_v12  ;;  %v5214_v16 = vadd.f32 %v5177_v40, %v5036_v44  ;;  %v4771_v12 = vadd.f32 %v4740_v63, %v10424_v5 }
 0x487   : > { %5608 = vmatmul.bf16.vlgmr.msrb.gmra.mxu1 %v5528_v29  ;;  %v5480_v11 = vadd.f32 %v5443_v58, %v5214_v16  ;;  %v4770_v58 = vadd.f32 %v4737_v50, %v10403_v37  ;;  %v4745_v33 = vpop.f32.mrf.mxu1 }
 0x489   : > { %v5498_v53 = vadd.f32 %v10533_v55, %v5480_v11  ;;  %v5187_v6 = vpop.f32.mrf.mxu3 }
 0x48a   : > { %v5001_v23 = vpop.f32.mrf.mxu2  ;;  %v5455_v34 = vpop.f32.mrf.mxu0 }
 0x48b   : > { %v5037_v10 = vadd.f32 %v5001_v23, %v4768_v32  ;;  %v5514_v2 = vmax.f32 %v5498_v53, 0.0  ;;  %v4773_v53 = vadd.f32 %v4745_v33, %v10461_v7 }
 0x48d   : > { %v5215_v36 = vadd.f32 %v5179_v18, %v5037_v10 }
 0x48f   : > { %v5481_v39 = vadd.f32 %v5445_v27, %v5215_v36  ;;  %v4747_v23 = vpop.f32.mrf.mxu1 }
 0x491   : > { %v5499_v17 = vadd.f32 %v10533_v55, %v5481_v39  ;;  %v5189_v35 = vpop.f32.mrf.mxu3 }
 0x492   : > { %v5004_v51 = vpop.f32.mrf.mxu2 }
 0x493   : > { %v5038_v40 = vadd.f32 %v5004_v51, %v4769_v9  ;;  %v5515_v3 = vmax.f32 %v5499_v17, 0.0 }
 0x495   : > { %v5529_v45 = vpack.c.bf16 %v5515_v3, %v5514_v2  ;;  %v5216_v54 = vadd.f32 %v5182_v46, %v5038_v40 }
 0x497   : > { %5613 = vmatmul.bf16.gmra.mxu1 %v5529_v45  ;;  %v5482_v27 = vadd.f32 %v5448_v19, %v5216_v54  ;;  %v5458_v19 = vpop.f32.mrf.mxu0  ;;  %v4750_v3 = vpop.f32.mrf.mxu1 }
 0x499   : > { %v5500_v48 = vadd.f32 %v10533_v55, %v5482_v27  ;;  %v5192_v37 = vpop.f32.mrf.mxu3 }
 0x49a   : > { %v5006_v18 = vpop.f32.mrf.mxu2 }
 0x49b   : > { %v5039_v31 = vadd.f32 %v5006_v18, %v4770_v58  ;;  %v5516_v46 = vmax.f32 %v5500_v48, 0.0 }
 0x49d   : > { %v5217_v56 = vadd.f32 %v5184_v22, %v5039_v31  ;;  %v4772_v22 = vadd.f32 %v4742_v4, %v10440_v13 }
 0x49f   : > { %v5483_v21 = vadd.f32 %v5450_v28, %v5217_v56  ;;  %v5460_v51 = vpop.f32.mrf.mxu0  ;;  %v4752_v7 = vpop.f32.mrf.mxu1 }
 0x4a1   : > { %v5501_v25 = vadd.f32 %v10533_v55, %v5483_v21  ;;  %v5194_v63 = vpop.f32.mrf.mxu3 }
 0x4a2   : > { %v5009_v44 = vpop.f32.mrf.mxu2 }
 0x4a3   : > { %v5040_v29 = vadd.f32 %v5009_v44, %v4771_v12  ;;  %v5517_v16 = vmax.f32 %v5501_v25, 0.0 }
 0x4a5   : > { %v5530_v32 = vpack.c.bf16 %v5517_v16, %v5516_v46  ;;  %v5218_v50 = vadd.f32 %v5187_v6, %v5040_v29 }
 0x4a7   : > { %5618 = vmatmul.bf16.gmra.mxu1 %v5530_v32  ;;  %v5484_v11 = vadd.f32 %v5453_v47, %v5218_v50  ;;  %v4774_v47 = vadd.f32 %v4747_v23, %v10477_v20  ;;  %v5463_v27 = vpop.f32.mrf.mxu0  ;;  %v4755_v16 = vpop.f32.mrf.mxu1  ;;  %v4776_v32 = vadd.f32 %v4752_v7, %v10503_v61 }
 0x4a9   : > { %v5502_v5 = vadd.f32 %v10533_v55, %v5484_v11  ;;  %v5197_v54 = vpop.f32.mrf.mxu3 }
 0x4aa   : > { %v5011_v28 = vpop.f32.mrf.mxu2 }
 0x4ab   : > { %v5041_v10 = vadd.f32 %v5011_v28, %v4772_v22  ;;  %v5518_v40 = vmax.f32 %v5502_v5, 0.0 }
 0x4ad   : > { %v5219_v36 = vadd.f32 %v5189_v35, %v5041_v10  ;;  %v4777_v10 = vadd.f32 %v4755_v16, %v10512_v30 }
 0x4af   : > { %v5485_v39 = vadd.f32 %v5455_v34, %v5219_v36  ;;  %v4775_v34 = vadd.f32 %v4750_v3, %v10494_v62  ;;  %v5465_v29 = vpop.f32.mrf.mxu0 }
 0x4b1   : > { %v5503_v9 = vadd.f32 %v10533_v55, %v5485_v39  ;;  %v5199_v44 = vpop.f32.mrf.mxu3  ;;  %v4757_v39 = vpop.f32.mrf.mxu1 }
 0x4b2   : > { %v5014_v17 = vpop.f32.mrf.mxu2 }
 0x4b3   : > { %v5042_v6 = vadd.f32 %v5014_v17, %v4773_v53  ;;  %v5519_v2 = vmax.f32 %v5503_v9, 0.0 }
 0x4b5   : > { %v5531_v13 = vpack.c.bf16 %v5519_v2, %v5518_v40  ;;  %v5220_v45 = vadd.f32 %v5192_v37, %v5042_v6  ;;  %v4778_v6 = vadd.f32 %v4757_v39, %v10520_v52 }
 0x4b7   : > { %5623 = vmatmul.bf16.gmra.mxu1 %v5531_v13  ;;  %v5486_v58 = vadd.f32 %v5458_v19, %v5220_v45  ;;  %v5468_v11 = vpop.f32.mrf.mxu0 }
 0x4b9   : > { %v5504_v56 = vadd.f32 %v10533_v55, %v5486_v58  ;;  %v5202_v23 = vpop.f32.mrf.mxu3  ;;  %v4760_v45 = vpop.f32.mrf.mxu1 }
 0x4ba   : > { %v5016_v4 = vpop.f32.mrf.mxu2 }
 0x4bb   : > { %v5043_v18 = vadd.f32 %v5016_v4, %v4774_v47  ;;  %v5520_v12 = vmax.f32 %v5504_v56, 0.0 }
 0x4bd   : > { %v5221_v31 = vadd.f32 %v5194_v63, %v5043_v18 }
 0x4bf   : > { %v5487_v35 = vadd.f32 %v5460_v51, %v5221_v31  ;;  %v5470_v40 = vpop.f32.mrf.mxu0 }
 0x4c1   : > { %v5505_v21 = vadd.f32 %v10533_v55, %v5487_v35  ;;  %v5204_v51 = vpop.f32.mrf.mxu3 }
 0x4c2   : > { %v5019_v48 = vpop.f32.mrf.mxu2 }
 0x4c3   : > { %v5044_v33 = vadd.f32 %v5019_v48, %v4775_v34  ;;  %v5521_v25 = vmax.f32 %v5505_v21, 0.0  ;;  %v4762_v34 = vpop.f32.mrf.mxu1 }
 0x4c4   : > { %v4780_v48 = vadd.f32 %v4762_v34, %v10526_v57 }
 0x4c5   : > { %v5532_v20 = vpack.c.bf16 %v5521_v25, %v5520_v12  ;;  %v5222_v46 = vadd.f32 %v5197_v54, %v5044_v33  ;;  %v4779_v54 = vadd.f32 %v4760_v45, %v10523_v42 }
 0x4c7   : > { %5628 = vmatmul.bf16.gmra.mxu1 %v5532_v20  ;;  %v5488_v50 = vadd.f32 %v5463_v27, %v5222_v46  ;;  %v5473_v56 = vpop.f32.mrf.mxu0 }
 0x4c9   : > { %v5506_v28 = vadd.f32 %v10533_v55, %v5488_v50  ;;  %v5207_v18 = vpop.f32.mrf.mxu3 }
 0x4ca   : > { %v5021_v37 = vpop.f32.mrf.mxu2 }
 0x4cb   : > { %v5045_v19 = vadd.f32 %v5021_v37, %v4776_v32  ;;  %v5522_v53 = vmax.f32 %v5506_v28, 0.0 }
 0x4cd   : > { %v5223_v22 = vadd.f32 %v5199_v44, %v5045_v19 }
 0x4cf   : > { %v5489_v62 = vadd.f32 %v5465_v29, %v5223_v22  ;;  %v5475_v20 = vpop.f32.mrf.mxu0  ;;  %v10571_v22 = vld [vmem:[%s10712_s20] ss:$0 sm:$0xff]  ;;  %s8093_s20 = scalar_lea.hbm %s10686_s7, 256 }
 0x4d0   : > { %p8095_p5 = scmp.lt.s32.totalorder %s8093_s20, %s8089_s26 }
 0x4d1   : > { %v5507_v36 = vadd.f32 %v10533_v55, %v5489_v62  ;;  %v5209_v44 = vpop.f32.mrf.mxu3 }
 0x4d2   : > { %v5024_v5 = vpop.f32.mrf.mxu2  ;;  %p8096_p6 = por %p8095_p5, %p8094_p4 }
 0x4d3   : > { %v5046_v63 = vadd.f32 %v5024_v5, %v4777_v10  ;;  %v5523_v9 = vmax.f32 %v5507_v36, 0.0 }
 0x4d4   : > { %p8097_p7 = pnand %p8096_p6, %p8092_p2 }
 0x4d5   : > { %v5533_v17 = vpack.c.bf16 %v5523_v9, %v5522_v53  ;;  %v5224_v61 = vadd.f32 %v5202_v23, %v5046_v63 }
 0x4d7   : > { %5633 = vmatmul.bf16.gmra.mxu1 %v5533_v17  ;;  %v5490_v3 = vadd.f32 %v5468_v11, %v5224_v61 }
 0x4d9   : > { %v5508_v4 = vadd.f32 %v10533_v55, %v5490_v3 }
 0x4da   : > { %v5026_v2 = vpop.f32.mrf.mxu2 }
 0x4db   : > { %v5047_v13 = vadd.f32 %v5026_v2, %v4778_v6  ;;  %v5524_v7 = vmax.f32 %v5508_v4, 0.0 }
 0x4dd   : > { %v5225_v47 = vadd.f32 %v5204_v51, %v5047_v13 }
 0x4df   : > { %v5491_v30 = vadd.f32 %v5470_v40, %v5225_v47 }
 0x4e1   : > { %v5509_v58 = vadd.f32 %v10533_v55, %v5491_v30 }
 0x4e2   : > { %v5029_v27 = vpop.f32.mrf.mxu2 }
 0x4e3   : > { %v5048_v31 = vadd.f32 %v5029_v27, %v4779_v54  ;;  %v5525_v35 = vmax.f32 %v5509_v58, 0.0 }
 0x4e5   : > { %v5534_v52 = vpack.c.bf16 %v5525_v35, %v5524_v7  ;;  %v5226_v21 = vadd.f32 %v5207_v18, %v5048_v31 }
 0x4e7   : > { %5638 = vmatmul.bf16.gmra.mxu1 %v5534_v52  ;;  %v5492_v12 = vadd.f32 %v5473_v56, %v5226_v21 }
 0x4e9   : > { %v5510_v46 = vadd.f32 %v10533_v55, %v5492_v12 }
 0x4ea   : > { %v5031_v33 = vpop.f32.mrf.mxu2 }
 0x4eb   : > { %v5049_v25 = vadd.f32 %v5031_v33, %v4780_v48  ;;  %v5526_v32 = vmax.f32 %v5510_v46, 0.0 }
 0x4ed   : > { %v5227_v42 = vadd.f32 %v5209_v44, %v5049_v25 }
 0x4ef   : > { %v5493_v29 = vadd.f32 %v5475_v20, %v5227_v42 }
 0x4f1   : > { %v5511_v16 = vadd.f32 %v10533_v55, %v5493_v29  ;;  %v10577_v55 = vld [vmem:[%s10685_s6] ss:$0 sm:$0xff] }
 0x4f3   : > { %v5527_v37 = vmax.f32 %v5511_v16, 0.0 }
 0x4f5   : > { %v5535_v50 = vpack.c.bf16 %v5527_v37, %v5526_v32 }
 0x4f7   : > { %5643 = vmatmul.bf16.gmra.mxu1 %v5535_v50 }
 0x504   : > { %v5609_v19 = vpop.f32.mrf.mxu1 }
 0x505   : > { %v5649_v57 = vadd.f32 %v5609_v19, %v9970_v59 }
 0x507   : > { %v5669_v23 = vadd.f32 %v10571_v22, %v5649_v57 }
 0x509   : > { %v5689_v11 = vadd.f32 %v10577_v55, %v5669_v23 }
 0x50b   : > { %v5705_v36 = vmax.f32 %v5689_v11, 0.0 }
 0x50c   : > { %v5611_v62 = vpop.f32.mrf.mxu1 }
 0x50d   : > { %v5650_v28 = vadd.f32 %v5611_v62, %v9999_v8 }
 0x50f   : > { %v5670_v59 = vadd.f32 %v10571_v22, %v5650_v28 }
 0x511   : > { %v5690_v10 = vadd.f32 %v10577_v55, %v5670_v59 }
 0x513   : > { %v5706_v39 = vmax.f32 %v5690_v10, 0.0 }
 0x514   : > { %v5614_v5 = vpop.f32.mrf.mxu1 }
 0x515   : > { %v7900_v63 = vpack.c.bf16 %v5706_v39, %v5705_v36  ;;  %v5651_v53 = vadd.f32 %v5614_v5, %v10017_v43 }
 0x517   : > { %7901 = vst [vmem:[%s8313_s11] sm:$0xff] %v7900_v63   ;;  %v5671_v9 = vadd.f32 %v10571_v22, %v5651_v53 }
 0x519   : > { %v5691_v8 = vadd.f32 %v10577_v55, %v5671_v9 }
 0x51b   : > { %v5707_v40 = vmax.f32 %v5691_v8, 0.0 }
 0x51c   : > { %v5616_v17 = vpop.f32.mrf.mxu1 }
 0x51d   : > { %v5652_v61 = vadd.f32 %v5616_v17, %v10046_v24 }
 0x51f   : > { %v5672_v51 = vadd.f32 %v10571_v22, %v5652_v61 }
 0x521   : > { %v5692_v6 = vadd.f32 %v10577_v55, %v5672_v51 }
 0x523   : > { %v5708_v2 = vmax.f32 %v5692_v6, 0.0 }
 0x524   : > { %v5619_v3 = vpop.f32.mrf.mxu1 }
 0x525   : > { %v7905_v13 = vpack.c.bf16 %v5708_v2, %v5707_v40  ;;  %v5653_v45 = vadd.f32 %v5619_v3, %v10064_v60  ;;  %v10715_v3 = vld [vmem:[#allocation25_spill] sm:$0xff] }
 0x527   : > { %7937 = vst [vmem:[%s8313_s11 + $0x8] sm:$0xff] %v7905_v13   ;;  %v5673_v43 = vadd.f32 %v10571_v22, %v5653_v45 }
 0x529   : > { %v5693_v24 = vadd.f32 %v10577_v55, %v5673_v43 }
 0x52b   : > { %v5709_v58 = vmax.f32 %v5693_v24, 0.0 }
 0x52c   : > { %v5621_v47 = vpop.f32.mrf.mxu1 }
 0x52d   : > { %v5654_v30 = vadd.f32 %v5621_v47, %v10093_v41 }
 0x52f   : > { %v5674_v4 = vadd.f32 %v10571_v22, %v5654_v30 }
 0x531   : > { %v5694_v54 = vadd.f32 %v10577_v55, %v5674_v4 }
 0x533   : > { %v5710_v18 = vmax.f32 %v5694_v54, 0.0 }
 0x534   : > { %v5624_v27 = vpop.f32.mrf.mxu1 }
 0x535   : > { %v7910_v31 = vpack.c.bf16 %v5710_v18, %v5709_v58  ;;  %v5655_v7 = vadd.f32 %v5624_v27, %v10111_v0 }
 0x537   : > { %7938 = vst [vmem:[%s8313_s11 + $0x10] sm:$0xff] %v7910_v31   ;;  %v5675_v60 = vadd.f32 %v10571_v22, %v5655_v7 }
 0x539   : > { %v5695_v41 = vadd.f32 %v10577_v55, %v5675_v60 }
 0x53b   : > { %v5711_v21 = vmax.f32 %v5695_v41, 0.0 }
 0x53c   : > { %v5626_v35 = vpop.f32.mrf.mxu1 }
 0x53d   : > { %v5656_v56 = vadd.f32 %v5626_v35, %v10140_v15 }
 0x53f   : > { %v5676_v52 = vadd.f32 %v10571_v22, %v5656_v56 }
 0x541   : > { %v5696_v34 = vadd.f32 %v10577_v55, %v5676_v52 }
 0x543   : > { %v5712_v48 = vmax.f32 %v5696_v34, 0.0 }
 0x544   : > { %v5629_v33 = vpop.f32.mrf.mxu1 }
 0x545   : > { %v7915_v12 = vpack.c.bf16 %v5712_v48, %v5711_v21  ;;  %v5657_v25 = vadd.f32 %v5629_v33, %v10158_v14 }
 0x547   : > { %7939 = vst [vmem:[%s8313_s11 + $0x18] sm:$0xff] %v7915_v12   ;;  %v5677_v0 = vadd.f32 %v10571_v22, %v5657_v25 }
 0x549   : > { %v5697_v15 = vadd.f32 %v10577_v55, %v5677_v0 }
 0x54b   : > { %v5713_v46 = vmax.f32 %v5697_v15, 0.0 }
 0x54c   : > { %v5631_v44 = vpop.f32.mrf.mxu1 }
 0x54d   : > { %v5658_v42 = vadd.f32 %v5631_v44, %v10187_v1 }
 0x54f   : > { %v5678_v20 = vadd.f32 %v10571_v22, %v5658_v42 }
 0x551   : > { %v5698_v29 = vadd.f32 %v10577_v55, %v5678_v20 }
 0x553   : > { %v5714_v16 = vmax.f32 %v5698_v29, 0.0 }
 0x554   : > { %v5634_v32 = vpop.f32.mrf.mxu1 }
 0x555   : > { %v7920_v37 = vpack.c.bf16 %v5714_v16, %v5713_v46  ;;  %v5659_v50 = vadd.f32 %v5634_v32, %v10204_v49 }
 0x557   : > { %7940 = vst [vmem:[%s8313_s11 + $0x20] sm:$0xff] %v7920_v37   ;;  %v5679_v14 = vadd.f32 %v10571_v22, %v5659_v50 }
 0x559   : > { %v5699_v1 = vadd.f32 %v10577_v55, %v5679_v14 }
 0x55b   : > { %v5715_v28 = vmax.f32 %v5699_v1, 0.0 }
 0x55c   : > { %v5636_v19 = vpop.f32.mrf.mxu1 }
 0x55d   : > { %v5660_v57 = vadd.f32 %v5636_v19, %v10228_v38  ;;  %v10713_v38 = vld [vmem:[#allocation23_spill] sm:$0xff] }
 0x55f   : > { %v5680_v23 = vadd.f32 %v10571_v22, %v5660_v57 }
 0x561   : > { %v5700_v62 = vadd.f32 %v10577_v55, %v5680_v23 }
 0x563   : > { %v5716_v11 = vmax.f32 %v5700_v62, 0.0 }
 0x564   : > { %v5639_v59 = vpop.f32.mrf.mxu1 }
 0x565   : > { %v7925_v10 = vpack.c.bf16 %v5716_v11, %v5715_v28  ;;  %v5661_v49 = vadd.f32 %v5639_v59, %v10242_v26  ;;  %v10714_v26 = vld [vmem:[#allocation24_spill] sm:$0xff] }
 0x567   : > { %7941 = vst [vmem:[%s8313_s11 + $0x28] sm:$0xff] %v7925_v10   ;;  %v5681_v36 = vadd.f32 %v10571_v22, %v5661_v49 }
 0x569   : > { %v5701_v63 = vadd.f32 %v10577_v55, %v5681_v36 }
 0x56b   : > { %v5717_v17 = vmax.f32 %v5701_v63, 0.0 }
 0x56c   : > { %v5641_v39 = vpop.f32.mrf.mxu1 }
 0x56d   : > { %v5662_v5 = vadd.f32 %v5641_v39, %v10713_v38 }
 0x56f   : > { %v5682_v53 = vadd.f32 %v10571_v22, %v5662_v5 }
 0x571   : > { %v5702_v9 = vadd.f32 %v10577_v55, %v5682_v53 }
 0x573   : > { %v5718_v61 = vmax.f32 %v5702_v9, 0.0 }
 0x574   : > { %v5644_v8 = vpop.f32.mrf.mxu1 }
 0x575   : > { %v7930_v51 = vpack.c.bf16 %v5718_v61, %v5717_v17  ;;  %v5663_v6 = vadd.f32 %v5644_v8, %v10714_v26 }
 0x577   : > { %7942 = vst [vmem:[%s8313_s11 + $0x30] sm:$0xff] %v7930_v51   ;;  %v5683_v40 = vadd.f32 %v10571_v22, %v5663_v6 }
 0x579   : > { %v5703_v45 = vadd.f32 %v10577_v55, %v5683_v40 }
 0x57b   : > { %v5719_v30 = vmax.f32 %v5703_v45, 0.0 }
 0x57c   : > { %v5646_v2 = vpop.f32.mrf.mxu1 }
 0x57d   : > { %v5664_v13 = vadd.f32 %v5646_v2, %v10715_v3 }
 0x57f   : > { %v5684_v43 = vadd.f32 %v10571_v22, %v5664_v13 }
 0x581   : > { %v5704_v47 = vadd.f32 %v10577_v55, %v5684_v43 }
 0x583   : > { %v5720_v24 = vmax.f32 %v5704_v47, 0.0 }
 0x585   : > { %v7935_v4 = vpack.c.bf16 %v5720_v24, %v5719_v30 }
 0x587   : > { %7943 = vst [vmem:[%s8313_s11 + $0x38] sm:$0xff] %v7935_v4  }
 0x588   : > { %8100 = shalt.err (!%p8097_p7)
}
 0x589   : > { %s8184_s11 = smov 64   ;;  %s8185_s23 = smov 4  }
 0x58a   : > { %7964 = dma.vmem_to_hbm [thread:$0]  (%p8277_p3), %s5770_s27, 1024, %s5772_s28, %s5754_s9, %s8184_s11, %s8184_s11, %s8185_s23  }
 0x58b PF: > { %p7972_p9 = scmp.ge.s32.totalorder %s8177_s8, 2  ;;  %s5786_s15 = sand.u32 1, %s8149_s24  }
 0x58c   : > { %s5787_s30 = scalar_lea.sflag [#allocation5], %s5786_s15 }
 0x58d   : > { %p7967_p10 = pnand %p7972_p9, %p8286_p8 }
 0x58f   : > { %p7968_p11 = pneg %p7967_p10 }
 0x591   : > { %8144 = dma.done.wait (%p7968_p11), %s5787_s30, 1024  }
 0x592   : > { %8146 = vsyncadd (%p7968_p11), %s5787_s30, 4294966272  ;;  %s20_s8 = sadd.s32 1, %s8177_s8   ;;  %s10718_s18 = sld [smem:[#allocation16_spill]] }
 0x593   : > { %p17_p12 = scmp.ge.s32.totalorder %s20_s8, 6   ;;  %s10719_s26 = sld [smem:[#allocation22_spill]] }
 0x594   : > { %s10720_s27 = sld [smem:[#allocation17_spill]]  ;;  %s10724_s24 = smov %s8153_s25 }
 0x595   : > { %s10721_s28 = sld [smem:[#allocation18_spill]]  ;;  %19 = sbr.rel (!%p17_p12) target bundleno = 5 (0x5), region = 403 }
 0x596   : > { %s10722_s29 = sld [smem:[#allocation19_spill]] }
 0x597   : > { %s10723_s30 = sld [smem:[#allocation20_spill]] }
 0x598   : > { %s10725_s25 = smov %s10718_s18 }
 0x59a   :  { %5793 = vsyncpa [#allocation5], 1 }
 0x59b   :  { %5795 = vsyncpa [#allocation5 + $0x1], 1 }
 0x59c   :  { %5796 = vsyncmov [#allocation3] }
 0x59f   :  { %s5797_s14 = vpop.sfrf %5796 }
 0x5a0   :  { %p7668_p3 = scmp.ne.s32.totalorder %s5797_s14, 0 }
 0x5a2   :  { %5801 = shalt.err (%p7668_p3)  }
 0x5a3   :  { %5803 = vsyncmov [#allocation3 + $0x1] }
 0x5a6   :  { %s5804_s13 = vpop.sfrf %5803 }
 0x5a7   :  { %p7669_p8 = scmp.ne.s32.totalorder %s5804_s13, 0 }
 0x5a9   :  { %5808 = shalt.err (%p7669_p8)  }
 0x5aa   :  { %5810 = vsyncmov [#allocation3 + $0x2] }
 0x5ad   :  { %s5811_s16 = vpop.sfrf %5810 }
 0x5ae   :  { %p7670_p13 = scmp.ne.s32.totalorder %s5811_s16, 0 }
 0x5b0   :  { %5815 = shalt.err (%p7670_p13)  }
 0x5b1   :  { %5817 = vsyncmov [#allocation3 + $0x3] }
 0x5b4   :  { %s5818_s10 = vpop.sfrf %5817 }
 0x5b5   :  { %p7671_p0 = scmp.ne.s32.totalorder %s5818_s10, 0 }
 0x5b7   :  { %5822 = shalt.err (%p7671_p0)  }
 0x5b8   :  { %5824 = vsyncmov [#allocation3 + $0x4] }
 0x5bb   :  { %s5825_s8 = vpop.sfrf %5824 }
 0x5bc   :  { %p7672_p1 = scmp.ne.s32.totalorder %s5825_s8, 0 }
 0x5be   :  { %5829 = shalt.err (%p7672_p1)  }
 0x5bf   :  { %5831 = vsyncmov [#allocation3 + $0x5] }
 0x5c2   :  { %s5832_s0 = vpop.sfrf %5831 }
 0x5c3   :  { %p7673_p2 = scmp.ne.s32.totalorder %s5832_s0, 0 }
 0x5c5   :  { %5836 = shalt.err (%p7673_p2)  }

</bundles_post_ra>
